<compile_context>
chip_gen: v7x
topology: tpu7x:2x2x1
jax: 0.10.0
libtpu: 0.0.40
codegen_flags: <defaults>
</compile_context>

<pallas_src>
import jax
import jax.numpy as jnp
from jax.experimental import pallas as pl
from jax.experimental.pallas import tpu as pltpu


def _round_up(x, m):
    return ((x + m - 1) // m) * m


def _pick_time_chunk(seq_len, max_chunk=64):
    """Largest divisor of seq_len that is a multiple of 8 and <= max_chunk.

    Falls back to the full sequence (block dim == full dim is always legal)."""
    best = None
    for t in range(8, min(seq_len, max_chunk) + 1, 8):
        if seq_len % t == 0:
            best = t
    return best if best is not None else seq_len


def _pad_gate_rows(w, H, H_pad):
    """w: (4H, X) stacked [i, f, g, o] -> (4*H_pad, X), each gate zero-padded."""
    gates = [jnp.pad(w[k * H:(k + 1) * H], ((0, H_pad - H), (0, 0)))
             for k in range(4)]
    return jnp.concatenate(gates, axis=0)


def _prep_lstm_weights(w_ih, w_hh, b_ih, b_hh, H, H_pad):
    """Gate-blocked padding + transpose (layout plumbing, done once in XLA)."""
    w_ih_p = _pad_gate_rows(w_ih, H, H_pad)                       # (4Hp, E)
    w_hh_p = _pad_gate_rows(w_hh, H, H_pad)                       # (4Hp, H)
    w_hh_p = jnp.pad(w_hh_p, ((0, 0), (0, H_pad - H)))            # (4Hp, Hp)
    bias = (b_ih + b_hh).reshape(4 * H, 1)
    bias_p = _pad_gate_rows(bias, H, H_pad).reshape(1, 4 * H_pad)  # (1, 4Hp)
    return w_ih_p.T, w_hh_p.T, bias_p                              # (E,4Hp),(Hp,4Hp)


def _lstm_kernel(x_ref, wih_ref, whh_ref, b_ref, h_out_ref, h_sc, c_sc):
    """One grid step = one chunk of T time steps.

    x_ref:   (Bp, T, E)   input chunk (auto-pipelined)
    wih_ref: (E, 4Hp)     pre-transposed W_ih
    whh_ref: (Hp, 4Hp)    pre-transposed W_hh
    b_ref:   (1, 4Hp)     b_ih + b_hh
    h_out_ref: (Bp, Hp)   last hidden state (written on final grid step)
    h_sc, c_sc: (Bp, Hp)  recurrent state, persistent across grid steps
    """
    s = pl.program_id(0)

    @pl.when(s == 0)
    def _init():
        h_sc[...] = jnp.zeros_like(h_sc)
        c_sc[...] = jnp.zeros_like(c_sc)

    Bp, T, E = x_ref.shape
    Hp = h_sc.shape[1]

    # Hoisted input projection: one (Bp*T, E) x (E, 4Hp) matmul for the whole chunk.
    x = x_ref[...]
    g_chunk = (jnp.dot(x.reshape(Bp * T, E), wih_ref[...],
                       preferred_element_type=jnp.float32)
               + b_ref[...])
    g_chunk = g_chunk.reshape(Bp, T, 4 * Hp)

    h = h_sc[...]
    c = c_sc[...]
    whh = whh_ref[...]            # loaded once, reused across the unrolled loop

    # Unrolled recurrence (static trip count, static slices -> LLO can overlap
    # EUP sigmoid/tanh with the next step's MXU push).
    for i in range(T):
        g = g_chunk[:, i, :] + jnp.dot(h, whh,
                                       preferred_element_type=jnp.float32)
        i_g = jax.nn.sigmoid(g[:, 0 * Hp:1 * Hp])
        f_g = jax.nn.sigmoid(g[:, 1 * Hp:2 * Hp])
        g_g = jnp.tanh(g[:, 2 * Hp:3 * Hp])
        o_g = jax.nn.sigmoid(g[:, 3 * Hp:4 * Hp])
        c = f_g * c + i_g * g_g
        h = o_g * jnp.tanh(c)

    h_sc[...] = h
    c_sc[...] = c

    @pl.when(s == pl.num_programs(0) - 1)
    def _store():
        h_out_ref[...] = h


def lstm_classifier_emb_forward(embeds, params):
    """embeds: (batch, seq, emb) float32.  Returns logits (batch, label_size)."""
    w_ih, w_hh = params["w_ih"], params["w_hh"]          # (4H, E), (4H, H)
    b_ih, b_hh = params["b_ih"], params["b_hh"]          # (4H,), (4H,)
    w_label, b_label = params["w_label"], params["b_label"]  # (L, H), (L,)

    B, S, E = embeds.shape
    H = w_hh.shape[1]

    H_pad = _round_up(H, 128)     # lane-aligned gate slices
    B_pad = _round_up(B, 8)       # full f32 sublanes
    T = _pick_time_chunk(S)       # time chunk per grid step

    w_ih_t, w_hh_t, bias_p = _prep_lstm_weights(w_ih, w_hh, b_ih, b_hh, H, H_pad)

    x = embeds
    if B_pad != B:
        x = jnp.pad(x, ((0, B_pad - B), (0, 0), (0, 0)))

    grid_spec = pltpu.PrefetchScalarGridSpec(
        num_scalar_prefetch=0,
        grid=(S // T,),
        in_specs=[
            pl.BlockSpec((B_pad, T, E), lambda s: (0, s, 0)),        # x chunk
            pl.BlockSpec((E, 4 * H_pad), lambda s: (0, 0)),          # W_ih^T
            pl.BlockSpec((H_pad, 4 * H_pad), lambda s: (0, 0)),      # W_hh^T
            pl.BlockSpec((1, 4 * H_pad), lambda s: (0, 0)),          # bias
        ],
        out_specs=pl.BlockSpec((B_pad, H_pad), lambda s: (0, 0)),    # h_last
        scratch_shapes=[
            pltpu.VMEM((B_pad, H_pad), jnp.float32),                 # h
            pltpu.VMEM((B_pad, H_pad), jnp.float32),                 # c
        ],
    )

    h_last = pl.pallas_call(
        _lstm_kernel,
        out_shape=jax.ShapeDtypeStruct((B_pad, H_pad), jnp.float32),
        grid_spec=grid_spec,
        compiler_params=pltpu.CompilerParams(
            dimension_semantics=("arbitrary",)),
    )(x, w_ih_t, w_hh_t, bias_p)

    # hidden2label applied outside the recurrent kernel (keeps w_out/b_out out of
    # VMEM residency during the loop); padded rows/lanes are dropped here.
    h_last = h_last[:B, :H]
    return h_last @ w_label.T + b_label


def _reference_forward(embeds, params):
    """Pure-JAX reference of the same forward pass (correctness check)."""
    w_ih, w_hh = params["w_ih"], params["w_hh"]
    b_ih, b_hh = params["b_ih"], params["b_hh"]
    w_label, b_label = params["w_label"], params["b_label"]
    B = embeds.shape[0]
    H = w_hh.shape[1]
    x = jnp.transpose(embeds, (1, 0, 2))          # (S, B, E), time-major

    def step(carry, x_t):
        h, c = carry
        gates = x_t @ w_ih.T + h @ w_hh.T + b_ih + b_hh
        i = jax.nn.sigmoid(gates[:, 0 * H:1 * H])
        f = jax.nn.sigmoid(gates[:, 1 * H:2 * H])
        g = jnp.tanh(gates[:, 2 * H:3 * H])
        o = jax.nn.sigmoid(gates[:, 3 * H:4 * H])
        c = f * c + i * g
        h = o * jnp.tanh(c)
        return (h, c), h

    h0 = jnp.zeros((B, H), jnp.float32)
    c0 = jnp.zeros((B, H), jnp.float32)
    (h_last, _), _ = jax.lax.scan(step, (h0, c0), x)
    return h_last @ w_label.T + b_label


def init_params(key, emb_dim, hidden_dim, label_size):
    """Deterministic synthetic parameters in nn.LSTM / nn.Linear layouts."""
    ks = jax.random.split(key, 6)
    scale = 1.0 / jnp.sqrt(hidden_dim)
    u = lambda k, shape: jax.random.uniform(k, shape, jnp.float32, -scale, scale)
    return {
        "w_ih": u(ks[0], (4 * hidden_dim, emb_dim)),
        "w_hh": u(ks[1], (4 * hidden_dim, hidden_dim)),
        "b_ih": u(ks[2], (4 * hidden_dim,)),
        "b_hh": u(ks[3], (4 * hidden_dim,)),
        "w_label": u(ks[4], (label_size, hidden_dim)),
        "b_label": u(ks[5], (label_size,)),
    }


if __name__ == "__main__":
    # Small shapes consistent with the module (real model: batch x 200 x 300).
    batch, seq, emb_dim, hidden_dim, label_size = 2, 8, 32, 32, 4

    key = jax.random.PRNGKey(0)
    k_x, k_p = jax.random.split(key)
    embeds = jax.random.normal(k_x, (batch, seq, emb_dim), jnp.float32)
    params = init_params(k_p, emb_dim, hidden_dim, label_size)

    y = jax.jit(lstm_classifier_emb_forward)(embeds, params)
    y = jax.block_until_ready(y)

    y_ref = _reference_forward(embeds, params)
    assert y.shape == (batch, label_size)
    assert jnp.allclose(y, y_ref, atol=1e-4, rtol=1e-4), "mismatch vs JAX reference"

    print("KERNEL_OK")
</pallas_src>

<mosaic_0001>
module attributes {stable_mosaic.version = 11 : i64} {
  func.func @_lstm_kernel(%arg0: i32, %arg1: memref<8x8x32xf32, #tpu.memory_space<vmem>>, %arg2: memref<32x512xf32, #tpu.memory_space<vmem>>, %arg3: memref<128x512xf32, #tpu.memory_space<vmem>>, %arg4: memref<1x512xf32, #tpu.memory_space<vmem>>, %arg5: memref<8x128xf32, #tpu.memory_space<vmem>>, %arg6: memref<8x128xf32, #tpu.memory_space<vmem>>, %arg7: memref<8x128xf32, #tpu.memory_space<vmem>>) attributes {dimension_semantics = [#tpu.dimension_semantics<arbitrary>], iteration_bounds = array<i64: 1>, scalar_prefetch = 0 : i64, scratch_operands = 2 : i64, tpu.core_type = #tpu.core_type<tc>, window_params = [{transform_indices = @transform_0, window_bounds = array<i64: 8, 8, 32>}, {pipeline_mode = #tpu.pipeline_mode<synchronous>, transform_indices = @transform_1, window_bounds = array<i64: 32, 512>}, {pipeline_mode = #tpu.pipeline_mode<synchronous>, transform_indices = @transform_2, window_bounds = array<i64: 128, 512>}, {pipeline_mode = #tpu.pipeline_mode<synchronous>, transform_indices = @transform_3, window_bounds = array<i64: 1, 512>}, {pipeline_mode = #tpu.pipeline_mode<synchronous>, transform_indices = @transform_4, window_bounds = array<i64: 8, 128>}]} {
    %c0_i32 = arith.constant 0 : i32
    %0 = arith.cmpi eq, %arg0, %c0_i32 : i32
    %1 = arith.extui %0 : i1 to i32
    %c0_i32_0 = arith.constant 0 : i32
    %2 = arith.cmpi ne, %1, %c0_i32_0 : i32
    scf.if %2 {
      %cst_51 = arith.constant 0.000000e+00 : f32
      %251 = vector.broadcast %cst_51 : f32 to vector<8x128xf32>
      %c0_52 = arith.constant 0 : index
      %c0_53 = arith.constant 0 : index
      %252 = vector.load %arg6[%c0_52, %c0_53] : memref<8x128xf32, #tpu.memory_space<vmem>>, vector<8x128xf32>
      tpu.vector_store %arg6[%c0_52, %c0_53], %251 {strides = array<i32>} : memref<8x128xf32, #tpu.memory_space<vmem>>, vector<8x128xf32>,
      %cst_54 = arith.constant 0.000000e+00 : f32
      %253 = vector.broadcast %cst_54 : f32 to vector<8x128xf32>
      %c0_55 = arith.constant 0 : index
      %c0_56 = arith.constant 0 : index
      %254 = vector.load %arg7[%c0_55, %c0_56] : memref<8x128xf32, #tpu.memory_space<vmem>>, vector<8x128xf32>
      tpu.vector_store %arg7[%c0_55, %c0_56], %253 {strides = array<i32>} : memref<8x128xf32, #tpu.memory_space<vmem>>, vector<8x128xf32>,
    } else {
    }
    %c0 = arith.constant 0 : index
    %c0_1 = arith.constant 0 : index
    %c0_2 = arith.constant 0 : index
    %3 = vector.load %arg1[%c0, %c0_1, %c0_2] : memref<8x8x32xf32, #tpu.memory_space<vmem>>, vector<8x8x32xf32>
    %4 = vector.shape_cast %3 : vector<8x8x32xf32> to vector<64x32xf32>
    %c0_3 = arith.constant 0 : index
    %c0_4 = arith.constant 0 : index
    %5 = vector.load %arg2[%c0_3, %c0_4] : memref<32x512xf32, #tpu.memory_space<vmem>>, vector<32x512xf32>
    %cst = arith.constant dense<0.000000e+00> : vector<64x512xf32>
    %6 = tpu.matmul %4, %5, %cst {dimension_numbers = #tpu.dot_dimension_numbers<[1], [0], [0], [1], [0, 0, 1, 1], [], []>} : vector<64x32xf32>, vector<32x512xf32>, vector<64x512xf32> -> vector<64x512xf32>
    %c0_5 = arith.constant 0 : index
    %c0_6 = arith.constant 0 : index
    %7 = vector.load %arg4[%c0_5, %c0_6] : memref<1x512xf32, #tpu.memory_space<vmem>>, vector<1x512xf32>
    %8 = vector.broadcast %7 : vector<1x512xf32> to vector<64x512xf32>
    %9 = arith.addf %6, %8 : vector<64x512xf32>
    %10 = vector.shape_cast %9 : vector<64x512xf32> to vector<8x8x512xf32>
    %c0_7 = arith.constant 0 : index
    %c0_8 = arith.constant 0 : index
    %11 = vector.load %arg6[%c0_7, %c0_8] : memref<8x128xf32, #tpu.memory_space<vmem>>, vector<8x128xf32>
    %c0_9 = arith.constant 0 : index
    %c0_10 = arith.constant 0 : index
    %12 = vector.load %arg7[%c0_9, %c0_10] : memref<8x128xf32, #tpu.memory_space<vmem>>, vector<8x128xf32>
    %c0_11 = arith.constant 0 : index
    %c0_12 = arith.constant 0 : index
    %13 = vector.load %arg3[%c0_11, %c0_12] : memref<128x512xf32, #tpu.memory_space<vmem>>, vector<128x512xf32>
    %14 = vector.extract_strided_slice %10 {offsets = [0, 0, 0], sizes = [8, 1, 512], strides = [1, 1, 1]} : vector<8x8x512xf32> to vector<8x1x512xf32>
    %15 = vector.shape_cast %14 : vector<8x1x512xf32> to vector<8x512xf32>
    %cst_13 = arith.constant dense<0.000000e+00> : vector<8x512xf32>
    %16 = tpu.matmul %11, %13, %cst_13 {dimension_numbers = #tpu.dot_dimension_numbers<[1], [0], [0], [1], [0, 0, 1, 1], [], []>} : vector<8x128xf32>, vector<128x512xf32>, vector<8x512xf32> -> vector<8x512xf32>
    %17 = arith.addf %15, %16 : vector<8x512xf32>
    %18 = vector.extract_strided_slice %17 {offsets = [0, 0], sizes = [8, 128], strides = [1, 1]} : vector<8x512xf32> to vector<8x128xf32>
    %19 = arith.negf %18 : vector<8x128xf32>
    %20 = math.exp %19 : vector<8x128xf32>
    %cst_14 = arith.constant 1.000000e+00 : f32
    %21 = vector.broadcast %cst_14 : f32 to vector<8x128xf32>
    %22 = arith.addf %21, %20 : vector<8x128xf32>
    %23 = arith.divf %21, %22 : vector<8x128xf32>
    %24 = vector.extract_strided_slice %17 {offsets = [0, 128], sizes = [8, 128], strides = [1, 1]} : vector<8x512xf32> to vector<8x128xf32>
    %25 = arith.negf %24 : vector<8x128xf32>
    %26 = math.exp %25 : vector<8x128xf32>
    %cst_15 = arith.constant 1.000000e+00 : f32
    %27 = vector.broadcast %cst_15 : f32 to vector<8x128xf32>
    %28 = arith.addf %27, %26 : vector<8x128xf32>
    %29 = arith.divf %27, %28 : vector<8x128xf32>
    %30 = vector.extract_strided_slice %17 {offsets = [0, 256], sizes = [8, 128], strides = [1, 1]} : vector<8x512xf32> to vector<8x128xf32>
    %31 = math.tanh %30 : vector<8x128xf32>
    %32 = vector.extract_strided_slice %17 {offsets = [0, 384], sizes = [8, 128], strides = [1, 1]} : vector<8x512xf32> to vector<8x128xf32>
    %33 = arith.negf %32 : vector<8x128xf32>
    %34 = math.exp %33 : vector<8x128xf32>
    %cst_16 = arith.constant 1.000000e+00 : f32
    %35 = vector.broadcast %cst_16 : f32 to vector<8x128xf32>
    %36 = arith.addf %35, %34 : vector<8x128xf32>
    %37 = arith.divf %35, %36 : vector<8x128xf32>
    %38 = arith.mulf %29, %12 : vector<8x128xf32>
    %39 = arith.mulf %23, %31 : vector<8x128xf32>
    %40 = arith.addf %38, %39 : vector<8x128xf32>
    %41 = math.tanh %40 : vector<8x128xf32>
    %42 = arith.mulf %37, %41 : vector<8x128xf32>
    %43 = vector.extract_strided_slice %10 {offsets = [0, 1, 0], sizes = [8, 1, 512], strides = [1, 1, 1]} : vector<8x8x512xf32> to vector<8x1x512xf32>
    %44 = vector.shape_cast %43 : vector<8x1x512xf32> to vector<8x512xf32>
    %cst_17 = arith.constant dense<0.000000e+00> : vector<8x512xf32>
    %45 = tpu.matmul %42, %13, %cst_17 {dimension_numbers = #tpu.dot_dimension_numbers<[1], [0], [0], [1], [0, 0, 1, 1], [], []>} : vector<8x128xf32>, vector<128x512xf32>, vector<8x512xf32> -> vector<8x512xf32>
    %46 = arith.addf %44, %45 : vector<8x512xf32>
    %47 = vector.extract_strided_slice %46 {offsets = [0, 0], sizes = [8, 128], strides = [1, 1]} : vector<8x512xf32> to vector<8x128xf32>
    %48 = arith.negf %47 : vector<8x128xf32>
    %49 = math.exp %48 : vector<8x128xf32>
    %cst_18 = arith.constant 1.000000e+00 : f32
    %50 = vector.broadcast %cst_18 : f32 to vector<8x128xf32>
    %51 = arith.addf %50, %49 : vector<8x128xf32>
    %52 = arith.divf %50, %51 : vector<8x128xf32>
    %53 = vector.extract_strided_slice %46 {offsets = [0, 128], sizes = [8, 128], strides = [1, 1]} : vector<8x512xf32> to vector<8x128xf32>
    %54 = arith.negf %53 : vector<8x128xf32>
    %55 = math.exp %54 : vector<8x128xf32>
    %cst_19 = arith.constant 1.000000e+00 : f32
    %56 = vector.broadcast %cst_19 : f32 to vector<8x128xf32>
    %57 = arith.addf %56, %55 : vector<8x128xf32>
    %58 = arith.divf %56, %57 : vector<8x128xf32>
    %59 = vector.extract_strided_slice %46 {offsets = [0, 256], sizes = [8, 128], strides = [1, 1]} : vector<8x512xf32> to vector<8x128xf32>
    %60 = math.tanh %59 : vector<8x128xf32>
    %61 = vector.extract_strided_slice %46 {offsets = [0, 384], sizes = [8, 128], strides = [1, 1]} : vector<8x512xf32> to vector<8x128xf32>
    %62 = arith.negf %61 : vector<8x128xf32>
    %63 = math.exp %62 : vector<8x128xf32>
    %cst_20 = arith.constant 1.000000e+00 : f32
    %64 = vector.broadcast %cst_20 : f32 to vector<8x128xf32>
    %65 = arith.addf %64, %63 : vector<8x128xf32>
    %66 = arith.divf %64, %65 : vector<8x128xf32>
    %67 = arith.mulf %58, %40 : vector<8x128xf32>
    %68 = arith.mulf %52, %60 : vector<8x128xf32>
    %69 = arith.addf %67, %68 : vector<8x128xf32>
    %70 = math.tanh %69 : vector<8x128xf32>
    %71 = arith.mulf %66, %70 : vector<8x128xf32>
    %72 = vector.extract_strided_slice %10 {offsets = [0, 2, 0], sizes = [8, 1, 512], strides = [1, 1, 1]} : vector<8x8x512xf32> to vector<8x1x512xf32>
    %73 = vector.shape_cast %72 : vector<8x1x512xf32> to vector<8x512xf32>
    %cst_21 = arith.constant dense<0.000000e+00> : vector<8x512xf32>
    %74 = tpu.matmul %71, %13, %cst_21 {dimension_numbers = #tpu.dot_dimension_numbers<[1], [0], [0], [1], [0, 0, 1, 1], [], []>} : vector<8x128xf32>, vector<128x512xf32>, vector<8x512xf32> -> vector<8x512xf32>
    %75 = arith.addf %73, %74 : vector<8x512xf32>
    %76 = vector.extract_strided_slice %75 {offsets = [0, 0], sizes = [8, 128], strides = [1, 1]} : vector<8x512xf32> to vector<8x128xf32>
    %77 = arith.negf %76 : vector<8x128xf32>
    %78 = math.exp %77 : vector<8x128xf32>
    %cst_22 = arith.constant 1.000000e+00 : f32
    %79 = vector.broadcast %cst_22 : f32 to vector<8x128xf32>
    %80 = arith.addf %79, %78 : vector<8x128xf32>
    %81 = arith.divf %79, %80 : vector<8x128xf32>
    %82 = vector.extract_strided_slice %75 {offsets = [0, 128], sizes = [8, 128], strides = [1, 1]} : vector<8x512xf32> to vector<8x128xf32>
    %83 = arith.negf %82 : vector<8x128xf32>
    %84 = math.exp %83 : vector<8x128xf32>
    %cst_23 = arith.constant 1.000000e+00 : f32
    %85 = vector.broadcast %cst_23 : f32 to vector<8x128xf32>
    %86 = arith.addf %85, %84 : vector<8x128xf32>
    %87 = arith.divf %85, %86 : vector<8x128xf32>
    %88 = vector.extract_strided_slice %75 {offsets = [0, 256], sizes = [8, 128], strides = [1, 1]} : vector<8x512xf32> to vector<8x128xf32>
    %89 = math.tanh %88 : vector<8x128xf32>
    %90 = vector.extract_strided_slice %75 {offsets = [0, 384], sizes = [8, 128], strides = [1, 1]} : vector<8x512xf32> to vector<8x128xf32>
    %91 = arith.negf %90 : vector<8x128xf32>
    %92 = math.exp %91 : vector<8x128xf32>
    %cst_24 = arith.constant 1.000000e+00 : f32
    %93 = vector.broadcast %cst_24 : f32 to vector<8x128xf32>
    %94 = arith.addf %93, %92 : vector<8x128xf32>
    %95 = arith.divf %93, %94 : vector<8x128xf32>
    %96 = arith.mulf %87, %69 : vector<8x128xf32>
    %97 = arith.mulf %81, %89 : vector<8x128xf32>
    %98 = arith.addf %96, %97 : vector<8x128xf32>
    %99 = math.tanh %98 : vector<8x128xf32>
    %100 = arith.mulf %95, %99 : vector<8x128xf32>
    %101 = vector.extract_strided_slice %10 {offsets = [0, 3, 0], sizes = [8, 1, 512], strides = [1, 1, 1]} : vector<8x8x512xf32> to vector<8x1x512xf32>
    %102 = vector.shape_cast %101 : vector<8x1x512xf32> to vector<8x512xf32>
    %cst_25 = arith.constant dense<0.000000e+00> : vector<8x512xf32>
    %103 = tpu.matmul %100, %13, %cst_25 {dimension_numbers = #tpu.dot_dimension_numbers<[1], [0], [0], [1], [0, 0, 1, 1], [], []>} : vector<8x128xf32>, vector<128x512xf32>, vector<8x512xf32> -> vector<8x512xf32>
    %104 = arith.addf %102, %103 : vector<8x512xf32>
    %105 = vector.extract_strided_slice %104 {offsets = [0, 0], sizes = [8, 128], strides = [1, 1]} : vector<8x512xf32> to vector<8x128xf32>
    %106 = arith.negf %105 : vector<8x128xf32>
    %107 = math.exp %106 : vector<8x128xf32>
    %cst_26 = arith.constant 1.000000e+00 : f32
    %108 = vector.broadcast %cst_26 : f32 to vector<8x128xf32>
    %109 = arith.addf %108, %107 : vector<8x128xf32>
    %110 = arith.divf %108, %109 : vector<8x128xf32>
    %111 = vector.extract_strided_slice %104 {offsets = [0, 128], sizes = [8, 128], strides = [1, 1]} : vector<8x512xf32> to vector<8x128xf32>
    %112 = arith.negf %111 : vector<8x128xf32>
    %113 = math.exp %112 : vector<8x128xf32>
    %cst_27 = arith.constant 1.000000e+00 : f32
    %114 = vector.broadcast %cst_27 : f32 to vector<8x128xf32>
    %115 = arith.addf %114, %113 : vector<8x128xf32>
    %116 = arith.divf %114, %115 : vector<8x128xf32>
    %117 = vector.extract_strided_slice %104 {offsets = [0, 256], sizes = [8, 128], strides = [1, 1]} : vector<8x512xf32> to vector<8x128xf32>
    %118 = math.tanh %117 : vector<8x128xf32>
    %119 = vector.extract_strided_slice %104 {offsets = [0, 384], sizes = [8, 128], strides = [1, 1]} : vector<8x512xf32> to vector<8x128xf32>
    %120 = arith.negf %119 : vector<8x128xf32>
    %121 = math.exp %120 : vector<8x128xf32>
    %cst_28 = arith.constant 1.000000e+00 : f32
    %122 = vector.broadcast %cst_28 : f32 to vector<8x128xf32>
    %123 = arith.addf %122, %121 : vector<8x128xf32>
    %124 = arith.divf %122, %123 : vector<8x128xf32>
    %125 = arith.mulf %116, %98 : vector<8x128xf32>
    %126 = arith.mulf %110, %118 : vector<8x128xf32>
    %127 = arith.addf %125, %126 : vector<8x128xf32>
    %128 = math.tanh %127 : vector<8x128xf32>
    %129 = arith.mulf %124, %128 : vector<8x128xf32>
    %130 = vector.extract_strided_slice %10 {offsets = [0, 4, 0], sizes = [8, 1, 512], strides = [1, 1, 1]} : vector<8x8x512xf32> to vector<8x1x512xf32>
    %131 = vector.shape_cast %130 : vector<8x1x512xf32> to vector<8x512xf32>
    %cst_29 = arith.constant dense<0.000000e+00> : vector<8x512xf32>
    %132 = tpu.matmul %129, %13, %cst_29 {dimension_numbers = #tpu.dot_dimension_numbers<[1], [0], [0], [1], [0, 0, 1, 1], [], []>} : vector<8x128xf32>, vector<128x512xf32>, vector<8x512xf32> -> vector<8x512xf32>
    %133 = arith.addf %131, %132 : vector<8x512xf32>
    %134 = vector.extract_strided_slice %133 {offsets = [0, 0], sizes = [8, 128], strides = [1, 1]} : vector<8x512xf32> to vector<8x128xf32>
    %135 = arith.negf %134 : vector<8x128xf32>
    %136 = math.exp %135 : vector<8x128xf32>
    %cst_30 = arith.constant 1.000000e+00 : f32
    %137 = vector.broadcast %cst_30 : f32 to vector<8x128xf32>
    %138 = arith.addf %137, %136 : vector<8x128xf32>
    %139 = arith.divf %137, %138 : vector<8x128xf32>
    %140 = vector.extract_strided_slice %133 {offsets = [0, 128], sizes = [8, 128], strides = [1, 1]} : vector<8x512xf32> to vector<8x128xf32>
    %141 = arith.negf %140 : vector<8x128xf32>
    %142 = math.exp %141 : vector<8x128xf32>
    %cst_31 = arith.constant 1.000000e+00 : f32
    %143 = vector.broadcast %cst_31 : f32 to vector<8x128xf32>
    %144 = arith.addf %143, %142 : vector<8x128xf32>
    %145 = arith.divf %143, %144 : vector<8x128xf32>
    %146 = vector.extract_strided_slice %133 {offsets = [0, 256], sizes = [8, 128], strides = [1, 1]} : vector<8x512xf32> to vector<8x128xf32>
    %147 = math.tanh %146 : vector<8x128xf32>
    %148 = vector.extract_strided_slice %133 {offsets = [0, 384], sizes = [8, 128], strides = [1, 1]} : vector<8x512xf32> to vector<8x128xf32>
    %149 = arith.negf %148 : vector<8x128xf32>
    %150 = math.exp %149 : vector<8x128xf32>
    %cst_32 = arith.constant 1.000000e+00 : f32
    %151 = vector.broadcast %cst_32 : f32 to vector<8x128xf32>
    %152 = arith.addf %151, %150 : vector<8x128xf32>
    %153 = arith.divf %151, %152 : vector<8x128xf32>
    %154 = arith.mulf %145, %127 : vector<8x128xf32>
    %155 = arith.mulf %139, %147 : vector<8x128xf32>
    %156 = arith.addf %154, %155 : vector<8x128xf32>
    %157 = math.tanh %156 : vector<8x128xf32>
    %158 = arith.mulf %153, %157 : vector<8x128xf32>
    %159 = vector.extract_strided_slice %10 {offsets = [0, 5, 0], sizes = [8, 1, 512], strides = [1, 1, 1]} : vector<8x8x512xf32> to vector<8x1x512xf32>
    %160 = vector.shape_cast %159 : vector<8x1x512xf32> to vector<8x512xf32>
    %cst_33 = arith.constant dense<0.000000e+00> : vector<8x512xf32>
    %161 = tpu.matmul %158, %13, %cst_33 {dimension_numbers = #tpu.dot_dimension_numbers<[1], [0], [0], [1], [0, 0, 1, 1], [], []>} : vector<8x128xf32>, vector<128x512xf32>, vector<8x512xf32> -> vector<8x512xf32>
    %162 = arith.addf %160, %161 : vector<8x512xf32>
    %163 = vector.extract_strided_slice %162 {offsets = [0, 0], sizes = [8, 128], strides = [1, 1]} : vector<8x512xf32> to vector<8x128xf32>
    %164 = arith.negf %163 : vector<8x128xf32>
    %165 = math.exp %164 : vector<8x128xf32>
    %cst_34 = arith.constant 1.000000e+00 : f32
    %166 = vector.broadcast %cst_34 : f32 to vector<8x128xf32>
    %167 = arith.addf %166, %165 : vector<8x128xf32>
    %168 = arith.divf %166, %167 : vector<8x128xf32>
    %169 = vector.extract_strided_slice %162 {offsets = [0, 128], sizes = [8, 128], strides = [1, 1]} : vector<8x512xf32> to vector<8x128xf32>
    %170 = arith.negf %169 : vector<8x128xf32>
    %171 = math.exp %170 : vector<8x128xf32>
    %cst_35 = arith.constant 1.000000e+00 : f32
    %172 = vector.broadcast %cst_35 : f32 to vector<8x128xf32>
    %173 = arith.addf %172, %171 : vector<8x128xf32>
    %174 = arith.divf %172, %173 : vector<8x128xf32>
    %175 = vector.extract_strided_slice %162 {offsets = [0, 256], sizes = [8, 128], strides = [1, 1]} : vector<8x512xf32> to vector<8x128xf32>
    %176 = math.tanh %175 : vector<8x128xf32>
    %177 = vector.extract_strided_slice %162 {offsets = [0, 384], sizes = [8, 128], strides = [1, 1]} : vector<8x512xf32> to vector<8x128xf32>
    %178 = arith.negf %177 : vector<8x128xf32>
    %179 = math.exp %178 : vector<8x128xf32>
    %cst_36 = arith.constant 1.000000e+00 : f32
    %180 = vector.broadcast %cst_36 : f32 to vector<8x128xf32>
    %181 = arith.addf %180, %179 : vector<8x128xf32>
    %182 = arith.divf %180, %181 : vector<8x128xf32>
    %183 = arith.mulf %174, %156 : vector<8x128xf32>
    %184 = arith.mulf %168, %176 : vector<8x128xf32>
    %185 = arith.addf %183, %184 : vector<8x128xf32>
    %186 = math.tanh %185 : vector<8x128xf32>
    %187 = arith.mulf %182, %186 : vector<8x128xf32>
    %188 = vector.extract_strided_slice %10 {offsets = [0, 6, 0], sizes = [8, 1, 512], strides = [1, 1, 1]} : vector<8x8x512xf32> to vector<8x1x512xf32>
    %189 = vector.shape_cast %188 : vector<8x1x512xf32> to vector<8x512xf32>
    %cst_37 = arith.constant dense<0.000000e+00> : vector<8x512xf32>
    %190 = tpu.matmul %187, %13, %cst_37 {dimension_numbers = #tpu.dot_dimension_numbers<[1], [0], [0], [1], [0, 0, 1, 1], [], []>} : vector<8x128xf32>, vector<128x512xf32>, vector<8x512xf32> -> vector<8x512xf32>
    %191 = arith.addf %189, %190 : vector<8x512xf32>
    %192 = vector.extract_strided_slice %191 {offsets = [0, 0], sizes = [8, 128], strides = [1, 1]} : vector<8x512xf32> to vector<8x128xf32>
    %193 = arith.negf %192 : vector<8x128xf32>
    %194 = math.exp %193 : vector<8x128xf32>
    %cst_38 = arith.constant 1.000000e+00 : f32
    %195 = vector.broadcast %cst_38 : f32 to vector<8x128xf32>
    %196 = arith.addf %195, %194 : vector<8x128xf32>
    %197 = arith.divf %195, %196 : vector<8x128xf32>
    %198 = vector.extract_strided_slice %191 {offsets = [0, 128], sizes = [8, 128], strides = [1, 1]} : vector<8x512xf32> to vector<8x128xf32>
    %199 = arith.negf %198 : vector<8x128xf32>
    %200 = math.exp %199 : vector<8x128xf32>
    %cst_39 = arith.constant 1.000000e+00 : f32
    %201 = vector.broadcast %cst_39 : f32 to vector<8x128xf32>
    %202 = arith.addf %201, %200 : vector<8x128xf32>
    %203 = arith.divf %201, %202 : vector<8x128xf32>
    %204 = vector.extract_strided_slice %191 {offsets = [0, 256], sizes = [8, 128], strides = [1, 1]} : vector<8x512xf32> to vector<8x128xf32>
    %205 = math.tanh %204 : vector<8x128xf32>
    %206 = vector.extract_strided_slice %191 {offsets = [0, 384], sizes = [8, 128], strides = [1, 1]} : vector<8x512xf32> to vector<8x128xf32>
    %207 = arith.negf %206 : vector<8x128xf32>
    %208 = math.exp %207 : vector<8x128xf32>
    %cst_40 = arith.constant 1.000000e+00 : f32
    %209 = vector.broadcast %cst_40 : f32 to vector<8x128xf32>
    %210 = arith.addf %209, %208 : vector<8x128xf32>
    %211 = arith.divf %209, %210 : vector<8x128xf32>
    %212 = arith.mulf %203, %185 : vector<8x128xf32>
    %213 = arith.mulf %197, %205 : vector<8x128xf32>
    %214 = arith.addf %212, %213 : vector<8x128xf32>
    %215 = math.tanh %214 : vector<8x128xf32>
    %216 = arith.mulf %211, %215 : vector<8x128xf32>
    %217 = vector.extract_strided_slice %10 {offsets = [0, 7, 0], sizes = [8, 1, 512], strides = [1, 1, 1]} : vector<8x8x512xf32> to vector<8x1x512xf32>
    %218 = vector.shape_cast %217 : vector<8x1x512xf32> to vector<8x512xf32>
    %cst_41 = arith.constant dense<0.000000e+00> : vector<8x512xf32>
    %219 = tpu.matmul %216, %13, %cst_41 {dimension_numbers = #tpu.dot_dimension_numbers<[1], [0], [0], [1], [0, 0, 1, 1], [], []>} : vector<8x128xf32>, vector<128x512xf32>, vector<8x512xf32> -> vector<8x512xf32>
    %220 = arith.addf %218, %219 : vector<8x512xf32>
    %221 = vector.extract_strided_slice %220 {offsets = [0, 0], sizes = [8, 128], strides = [1, 1]} : vector<8x512xf32> to vector<8x128xf32>
    %222 = arith.negf %221 : vector<8x128xf32>
    %223 = math.exp %222 : vector<8x128xf32>
    %cst_42 = arith.constant 1.000000e+00 : f32
    %224 = vector.broadcast %cst_42 : f32 to vector<8x128xf32>
    %225 = arith.addf %224, %223 : vector<8x128xf32>
    %226 = arith.divf %224, %225 : vector<8x128xf32>
    %227 = vector.extract_strided_slice %220 {offsets = [0, 128], sizes = [8, 128], strides = [1, 1]} : vector<8x512xf32> to vector<8x128xf32>
    %228 = arith.negf %227 : vector<8x128xf32>
    %229 = math.exp %228 : vector<8x128xf32>
    %cst_43 = arith.constant 1.000000e+00 : f32
    %230 = vector.broadcast %cst_43 : f32 to vector<8x128xf32>
    %231 = arith.addf %230, %229 : vector<8x128xf32>
    %232 = arith.divf %230, %231 : vector<8x128xf32>
    %233 = vector.extract_strided_slice %220 {offsets = [0, 256], sizes = [8, 128], strides = [1, 1]} : vector<8x512xf32> to vector<8x128xf32>
    %234 = math.tanh %233 : vector<8x128xf32>
    %235 = vector.extract_strided_slice %220 {offsets = [0, 384], sizes = [8, 128], strides = [1, 1]} : vector<8x512xf32> to vector<8x128xf32>
    %236 = arith.negf %235 : vector<8x128xf32>
    %237 = math.exp %236 : vector<8x128xf32>
    %cst_44 = arith.constant 1.000000e+00 : f32
    %238 = vector.broadcast %cst_44 : f32 to vector<8x128xf32>
    %239 = arith.addf %238, %237 : vector<8x128xf32>
    %240 = arith.divf %238, %239 : vector<8x128xf32>
    %241 = arith.mulf %232, %214 : vector<8x128xf32>
    %242 = arith.mulf %226, %234 : vector<8x128xf32>
    %243 = arith.addf %241, %242 : vector<8x128xf32>
    %244 = math.tanh %243 : vector<8x128xf32>
    %245 = arith.mulf %240, %244 : vector<8x128xf32>
    %c0_45 = arith.constant 0 : index
    %c0_46 = arith.constant 0 : index
    %246 = vector.load %arg6[%c0_45, %c0_46] : memref<8x128xf32, #tpu.memory_space<vmem>>, vector<8x128xf32>
    tpu.vector_store %arg6[%c0_45, %c0_46], %245 {strides = array<i32>} : memref<8x128xf32, #tpu.memory_space<vmem>>, vector<8x128xf32>,
    %c0_47 = arith.constant 0 : index
    %c0_48 = arith.constant 0 : index
    %247 = vector.load %arg7[%c0_47, %c0_48] : memref<8x128xf32, #tpu.memory_space<vmem>>, vector<8x128xf32>
    tpu.vector_store %arg7[%c0_47, %c0_48], %243 {strides = array<i32>} : memref<8x128xf32, #tpu.memory_space<vmem>>, vector<8x128xf32>,
    %c0_i32_49 = arith.constant 0 : i32
    %248 = arith.cmpi eq, %arg0, %c0_i32_49 : i32
    %249 = arith.extui %248 : i1 to i32
    %c0_i32_50 = arith.constant 0 : i32
    %250 = arith.cmpi ne, %249, %c0_i32_50 : i32
    scf.if %250 {
      %c0_51 = arith.constant 0 : index
      %c0_52 = arith.constant 0 : index
      %251 = vector.load %arg5[%c0_51, %c0_52] : memref<8x128xf32, #tpu.memory_space<vmem>>, vector<8x128xf32>
      tpu.vector_store %arg5[%c0_51, %c0_52], %245 {strides = array<i32>} : memref<8x128xf32, #tpu.memory_space<vmem>>, vector<8x128xf32>,
    } else {
    }
    return
  }
  func.func @transform_0(%arg0: i32) -> (i32, i32, i32) {
    %c0_i32 = arith.constant 0 : i32
    %c0_i32_0 = arith.constant 0 : i32
    %c0_i32_1 = arith.constant 0 : i32
    return %c0_i32, %arg0, %c0_i32_0 : i32, i32, i32
  }
  func.func @transform_1(%arg0: i32) -> (i32, i32) {
    %c0_i32 = arith.constant 0 : i32
    %c0_i32_0 = arith.constant 0 : i32
    %c0_i32_1 = arith.constant 0 : i32
    return %c0_i32, %c0_i32_0 : i32, i32
  }
  func.func @transform_2(%arg0: i32) -> (i32, i32) {
    %c0_i32 = arith.constant 0 : i32
    %c0_i32_0 = arith.constant 0 : i32
    %c0_i32_1 = arith.constant 0 : i32
    return %c0_i32, %c0_i32_0 : i32, i32
  }
  func.func @transform_3(%arg0: i32) -> (i32, i32) {
    %c0_i32 = arith.constant 0 : i32
    %c0_i32_0 = arith.constant 0 : i32
    %c0_i32_1 = arith.constant 0 : i32
    return %c0_i32, %c0_i32_0 : i32, i32
  }
  func.func @transform_4(%arg0: i32) -> (i32, i32) {
    %c0_i32 = arith.constant 0 : i32
    %c0_i32_0 = arith.constant 0 : i32
    %c0_i32_1 = arith.constant 0 : i32
    return %c0_i32, %c0_i32_0 : i32, i32
  }
}

</mosaic_0001>

<bundles_post_ra>
// kernel: lstm_classifier_emb_forward.1
= control target key start
LH: loop header
LB: loop body
LE: loop exit
PB: predicated region body
PF: predicated region fallthrough
CT: control target
= control target key end

     0   :  { %v6001_v3 = vmov 0.0   ;;  %vm69_vm0 = vcmask 261120   ;;  %vm841_vm1 = vcmask 1041409   ;;  %vm844_vm2 = vcmask 1042434   ;;  %s7818_s1 = inlined_call_operand.vmem [shape: f32[32,512], index: 1, kind: input, shape index: {}]   ;;  %s7819_s2 = inlined_call_operand.vmem [shape: f32[128,512], index: 2, kind: input, shape index: {}]   ;;  %s7820_s0 = inlined_call_operand.vmem [shape: f32[8,8,32], index: 0, kind: input, shape index: {}]   ;;  %s7821_s3 = inlined_call_operand.vmem [shape: f32[1,512], index: 3, kind: input, shape index: {}]   ;;  %s7822_s4 = inlined_call_operand.vmem [shape: f32[8,128], index: 4, kind: output, shape index: {}]  }
   0x1   :  { %v32_v0 = vld [vmem:[%s7818_s1 + $0x8] sm:$0xff]  ;;  %v34_v2 = vld [vmem:[%s7818_s1 + $0x18] sm:$0xff]  ;;  %158 = vmatprep.mubr.f32.mxu0 %v6001_v3  ;;  %21 = vst [vmem:[#allocation2] sm:$0xff] %v6001_v3  ;;  %271 = vmatprep.mubr.f32.mxu1 %v6001_v3  ;;  %v31_v6 = vld [vmem:[%s7818_s1] sm:$0xff]  ;;  %vm847_vm3 = vcmask 1043459   ;;  %vm850_vm4 = vcmask 1044484  }
   0x2   :  { %v36_v1 = vld [vmem:[%s7818_s1 + $0x28] sm:$0xff]  ;;  %v38_v5 = vld [vmem:[%s7818_s1 + $0x38] sm:$0xff]  ;;  %v35_v7 = vld [vmem:[%s7818_s1 + $0x20] sm:$0xff]  ;;  %vm853_vm5 = vcmask 1045509   ;;  %vm856_vm6 = vcmask 1046534   ;;  %vm859_vm7 = vcmask 1047559  }
   0x3   :  { %v4445_v4 = vpack.c.bf16 %v36_v1, %v32_v0  ;;  %v4453_v8 = vpack.c.bf16 %v38_v5, %v34_v2  ;;  %v4447_v9 = vpack.c.bf16 %v35_v7, %v31_v6  ;;  %v33_v10 = vld [vmem:[%s7818_s1 + $0x10] sm:$0xff]  ;;  %v40_v12 = vld [vmem:[%s7818_s1 + $0x48] sm:$0xff]  ;;  %v42_v15 = vld [vmem:[%s7818_s1 + $0x58] sm:$0xff] }
   0x4   :  { %v37_v11 = vld [vmem:[%s7818_s1 + $0x30] sm:$0xff]  ;;  %v44_v14 = vld [vmem:[%s7818_s1 + $0x68] sm:$0xff]  ;;  %v46_v16 = vld [vmem:[%s7818_s1 + $0x78] sm:$0xff] }
   0x5   :  { %4446 = vmatprep.subr.bf16.mxu0 %v4445_v4  ;;  %v4455_v13 = vpack.c.bf16 %v37_v11, %v33_v10  ;;  %4454 = vmatprep.subr.bf16.mxu1 %v4453_v8  ;;  %v4449_v17 = vpack.c.bf16 %v44_v14, %v40_v12  ;;  %v4457_v18 = vpack.c.bf16 %v46_v16, %v42_v15  ;;  %v39_v19 = vld [vmem:[%s7818_s1 + $0x40] sm:$0xff]  ;;  %v41_v21 = vld [vmem:[%s7818_s1 + $0x50] sm:$0xff]  ;;  %v323_v24 = vld [vmem:[%s7819_s2 + $0x8] sm:$0xff] }
   0x6   :  { %4448 = vmatpush1.bf16.msra.mxu0 %v4447_v9  ;;  %v43_v20 = vld [vmem:[%s7818_s1 + $0x60] sm:$0xff]  ;;  %v45_v23 = vld [vmem:[%s7818_s1 + $0x70] sm:$0xff]  ;;  %v327_v26 = vld [vmem:[%s7819_s2 + $0x28] sm:$0xff] }
   0x7   :  { %4456 = vmatpush1.bf16.msra.mxu1 %v4455_v13  ;;  %v4451_v22 = vpack.c.bf16 %v43_v20, %v39_v19  ;;  %4450 = vmatprep.subr.bf16.mxu0 %v4449_v17  ;;  %v4459_v25 = vpack.c.bf16 %v45_v23, %v41_v21  ;;  %v325_v27 = vld [vmem:[%s7819_s2 + $0x18] sm:$0xff]  ;;  %v6090_v29 = vpack.c.bf16 %v327_v26, %v323_v24  ;;  %v322_v31 = vld [vmem:[%s7819_s2] sm:$0xff]  ;;  %v324_v33 = vld [vmem:[%s7819_s2 + $0x10] sm:$0xff] }
   0x8   :  { %4458 = vmatprep.subr.bf16.mxu1 %v4457_v18  ;;  %v329_v28 = vld [vmem:[%s7819_s2 + $0x38] sm:$0xff]  ;;  %v326_v32 = vld [vmem:[%s7819_s2 + $0x20] sm:$0xff]  ;;  %v328_v36 = vld [vmem:[%s7819_s2 + $0x30] sm:$0xff] }
   0x9   :  { %7933 = vst [vmem:[#allocation4_spill] sm:$0xff] %v6090_v29  ;;  %v6092_v30 = vpack.c.bf16 %v329_v28, %v325_v27  ;;  %v23_v34 = vld [vmem:[%s7820_s0] sm:$0xff]  ;;  %v6106_v35 = vpack.c.bf16 %v326_v32, %v322_v31  ;;  %v331_v37 = vld [vmem:[%s7819_s2 + $0x48] sm:$0xff]  ;;  %v6115_v38 = vpack.c.bf16 %v328_v36, %v324_v33  ;;  %v333_v40 = vld [vmem:[%s7819_s2 + $0x58] sm:$0xff] }
   0xa   :  { %4452 = vmatpush1.bf16.msra.mxu0 %v4451_v22  ;;  %v335_v39 = vld [vmem:[%s7819_s2 + $0x68] sm:$0xff]  ;;  %v337_v41 = vld [vmem:[%s7819_s2 + $0x78] sm:$0xff]  ;;  %v330_v43 = vld [vmem:[%s7819_s2 + $0x40] sm:$0xff] }
   0xb   :  { %7934 = vst [vmem:[#allocation5_spill] sm:$0xff] %v6092_v30  ;;  %4460 = vmatpush1.bf16.msra.mxu1 %v4459_v25  ;;  %4462 = vmatprep.subr.bf16.mxu0 %v6090_v29  ;;  %v6127_v42 = vpack.c.bf16 %v335_v39, %v331_v37  ;;  %v334_v44 = vld [vmem:[%s7819_s2 + $0x60] sm:$0xff]  ;;  %v332_v45 = vld [vmem:[%s7819_s2 + $0x50] sm:$0xff]  ;;  %v24_v46 = vld [vmem:[%s7820_s0 + $0x8] sm:$0xff]  ;;  %v6142_v47 = vpack.c.bf16 %v337_v41, %v333_v40 }
   0xc   :  { %4494 = vmatprep.subr.bf16.mxu1 %v6092_v30  ;;  %v336_v48 = vld [vmem:[%s7819_s2 + $0x70] sm:$0xff]  ;;  %v339_v49 = vld [vmem:[%s7819_s2 + $0x88] sm:$0xff]  ;;  %v6152_v50 = vpack.c.bf16 %v334_v44, %v330_v43  ;;  %v341_v52 = vld [vmem:[%s7819_s2 + $0x98] sm:$0xff] }
   0xd   :  { %4237 = vmatmul.mubr.msk.f32.vlgmr.msra.gmra.mrb[0].mxu0 %vm69_vm0, %v23_v34  ;;  %v343_v51 = vld [vmem:[%s7819_s2 + $0xa8] sm:$0xff]  ;;  %v345_v53 = vld [vmem:[%s7819_s2 + $0xb8] sm:$0xff]  ;;  %v6165_v54 = vpack.c.bf16 %v336_v48, %v332_v45  ;;  %v338_v55 = vld [vmem:[%s7819_s2 + $0x80] sm:$0xff] }
   0xe   :  { %4245 = vmatmul.mubr.msk.f32.vlgmr.msra.gmra.mrb[0].mxu1 %vm69_vm0, %v23_v34  ;;  %4464 = vmatpush1.bf16.msra.mxu0 %v6106_v35  ;;  %v342_v56 = vld [vmem:[%s7819_s2 + $0xa0] sm:$0xff]  ;;  %v6175_v57 = vpack.c.bf16 %v343_v51, %v339_v49  ;;  %v340_v58 = vld [vmem:[%s7819_s2 + $0x90] sm:$0xff]  ;;  %v6185_v60 = vpack.c.bf16 %v345_v53, %v341_v52  ;;  %v347_v61 = vld [vmem:[%s7819_s2 + $0xc8] sm:$0xff] }
   0xf   :  { %4496 = vmatpush1.bf16.msra.mxu1 %v6115_v38  ;;  %164 = vmatprep.mubr.f32.mxu0 %v6001_v3  ;;  %7935 = vst [vmem:[#allocation6_spill] sm:$0xff] %v6165_v54  ;;  %v344_v59 = vld [vmem:[%s7819_s2 + $0xb0] sm:$0xff]  ;;  %v351_v62 = vld [vmem:[%s7819_s2 + $0xe8] sm:$0xff]  ;;  %v6198_v0 = vpack.c.bf16 %v342_v56, %v338_v55  ;;  %v349_v1 = vld [vmem:[%s7819_s2 + $0xd8] sm:$0xff] }
  0x10   :  { %277 = vmatprep.mubr.f32.mxu1 %v6001_v3  ;;  %4466 = vmatprep.subr.bf16.mxu0 %v6127_v42  ;;  %7936 = vst [vmem:[#allocation7_spill] sm:$0xff] %v6175_v57  ;;  %7937 = vst [vmem:[#allocation8_spill] sm:$0xff] %v6185_v60  ;;  %v25_v63 = vld [vmem:[%s7820_s0 + $0x10] sm:$0xff]  ;;  %v353_v2 = vld [vmem:[%s7819_s2 + $0xf8] sm:$0xff]  ;;  %v6208_v4 = vpack.c.bf16 %v344_v59, %v340_v58  ;;  %v6218_v7 = vpack.c.bf16 %v351_v62, %v347_v61 }
  0x11   :  { %4238 = vmatmul.mubr.msk.f32.gmra.mrb[2].mxu0 %vm69_vm0, %v24_v46  ;;  %4498 = vmatprep.subr.bf16.mxu1 %v6142_v47  ;;  %7938 = vst [vmem:[#allocation9_spill] sm:$0xff] %v6198_v0  ;;  %v346_v5 = vld [vmem:[%s7819_s2 + $0xc0] sm:$0xff]  ;;  %v348_v8 = vld [vmem:[%s7819_s2 + $0xd0] sm:$0xff]  ;;  %v6228_v10 = vpack.c.bf16 %v353_v2, %v349_v1  ;;  %v355_v11 = vld [vmem:[%s7819_s2 + $0x108] sm:$0xff] }
  0x12   :  { %4246 = vmatmul.mubr.msk.f32.gmra.mrb[2].mxu1 %vm69_vm0, %v24_v46  ;;  %4468 = vmatpush1.bf16.msra.mxu0 %v6152_v50  ;;  %7939 = vst [vmem:[#allocation10_spill] sm:$0xff] %v6208_v4  ;;  %v350_v6 = vld [vmem:[%s7819_s2 + $0xe0] sm:$0xff]  ;;  %7940 = vst [vmem:[#allocation11_spill] sm:$0xff] %v6218_v7  ;;  %v352_v9 = vld [vmem:[%s7819_s2 + $0xf0] sm:$0xff] }
  0x13   :  { %4500 = vmatpush1.bf16.msra.mxu1 %v6165_v54  ;;  %170 = vmatprep.mubr.f32.mxu0 %v6001_v3  ;;  %7941 = vst [vmem:[#allocation12_spill] sm:$0xff] %v6228_v10  ;;  %v359_v12 = vld [vmem:[%s7819_s2 + $0x128] sm:$0xff]  ;;  %v26_v13 = vld [vmem:[%s7820_s0 + $0x18] sm:$0xff]  ;;  %v6241_v14 = vpack.c.bf16 %v350_v6, %v346_v5  ;;  %v6251_v17 = vpack.c.bf16 %v352_v9, %v348_v8  ;;  %v354_v18 = vld [vmem:[%s7819_s2 + $0x100] sm:$0xff] }
  0x14   :  { %283 = vmatprep.mubr.f32.mxu1 %v6001_v3  ;;  %4470 = vmatprep.subr.bf16.mxu0 %v6175_v57  ;;  %v357_v15 = vld [vmem:[%s7819_s2 + $0x118] sm:$0xff]  ;;  %v358_v19 = vld [vmem:[%s7819_s2 + $0x120] sm:$0xff]  ;;  %v6261_v20 = vpack.c.bf16 %v359_v12, %v355_v11  ;;  %v356_v21 = vld [vmem:[%s7819_s2 + $0x110] sm:$0xff] }
  0x15   :  { %4239 = vmatmul.mubr.msk.f32.gmra.mrb[4].mxu0 %vm69_vm0, %v25_v63  ;;  %4502 = vmatprep.subr.bf16.mxu1 %v6185_v60  ;;  %7942 = vst [vmem:[#allocation13_spill] sm:$0xff] %v6241_v14  ;;  %v361_v16 = vld [vmem:[%s7819_s2 + $0x138] sm:$0xff]  ;;  %7943 = vst [vmem:[#allocation14_spill] sm:$0xff] %v6251_v17  ;;  %v360_v22 = vld [vmem:[%s7819_s2 + $0x130] sm:$0xff]  ;;  %v6284_v27 = vpack.c.bf16 %v358_v19, %v354_v18 }
  0x16   :  { %4247 = vmatmul.mubr.msk.f32.gmra.mrb[4].mxu1 %vm69_vm0, %v25_v63  ;;  %4472 = vmatpush1.bf16.msra.mxu0 %v6198_v0  ;;  %7944 = vst [vmem:[#allocation15_spill] sm:$0xff] %v6261_v20  ;;  %v6271_v23 = vpack.c.bf16 %v361_v16, %v357_v15  ;;  %v363_v24 = vld [vmem:[%s7819_s2 + $0x148] sm:$0xff]  ;;  %v27_v26 = vld [vmem:[%s7820_s0 + $0x20] sm:$0xff]  ;;  %v365_v28 = vld [vmem:[%s7819_s2 + $0x158] sm:$0xff]  ;;  %v6294_v32 = vpack.c.bf16 %v360_v22, %v356_v21 }
  0x17   :  { %4504 = vmatpush1.bf16.msra.mxu1 %v6208_v4  ;;  %176 = vmatprep.mubr.f32.mxu0 %v6001_v3  ;;  %v367_v25 = vld [vmem:[%s7819_s2 + $0x168] sm:$0xff]  ;;  %7946 = vst [vmem:[#allocation17_spill] sm:$0xff] %v6284_v27  ;;  %v369_v31 = vld [vmem:[%s7819_s2 + $0x178] sm:$0xff]  ;;  %v362_v33 = vld [vmem:[%s7819_s2 + $0x140] sm:$0xff] }
  0x18   :  { %289 = vmatprep.mubr.f32.mxu1 %v6001_v3  ;;  %4474 = vmatprep.subr.bf16.mxu0 %v6218_v7  ;;  %7945 = vst [vmem:[#allocation16_spill] sm:$0xff] %v6271_v23  ;;  %7947 = vst [vmem:[#allocation18_spill] sm:$0xff] %v6294_v32  ;;  %v366_v34 = vld [vmem:[%s7819_s2 + $0x160] sm:$0xff]  ;;  %v6304_v36 = vpack.c.bf16 %v367_v25, %v363_v24  ;;  %v364_v37 = vld [vmem:[%s7819_s2 + $0x150] sm:$0xff]  ;;  %v6314_v40 = vpack.c.bf16 %v369_v31, %v365_v28 }
  0x19   :  { %4240 = vmatmul.mubr.msk.f32.gmra.mrb[6].mxu0 %vm69_vm0, %v26_v13  ;;  %4506 = vmatprep.subr.bf16.mxu1 %v6228_v10  ;;  %v368_v39 = vld [vmem:[%s7819_s2 + $0x170] sm:$0xff]  ;;  %v371_v41 = vld [vmem:[%s7819_s2 + $0x188] sm:$0xff]  ;;  %v6327_v45 = vpack.c.bf16 %v366_v34, %v362_v33  ;;  %v373_v46 = vld [vmem:[%s7819_s2 + $0x198] sm:$0xff] }
  0x1a   :  { %4248 = vmatmul.mubr.msk.f32.gmra.mrb[6].mxu1 %vm69_vm0, %v26_v13  ;;  %4476 = vmatpush1.bf16.msra.mxu0 %v6241_v14  ;;  %7948 = vst [vmem:[#allocation19_spill] sm:$0xff] %v6304_v36  ;;  %7949 = vst [vmem:[#allocation20_spill] sm:$0xff] %v6314_v40  ;;  %v375_v43 = vld [vmem:[%s7819_s2 + $0x1a8] sm:$0xff]  ;;  %v377_v48 = vld [vmem:[%s7819_s2 + $0x1b8] sm:$0xff]  ;;  %v6337_v49 = vpack.c.bf16 %v368_v39, %v364_v37 }
  0x1b   :  { %4508 = vmatpush1.bf16.msra.mxu1 %v6251_v17  ;;  %182 = vmatprep.mubr.f32.mxu0 %v6001_v3  ;;  %v28_v44 = vld [vmem:[%s7820_s0 + $0x28] sm:$0xff]  ;;  %7950 = vst [vmem:[#allocation21_spill] sm:$0xff] %v6327_v45  ;;  %v370_v51 = vld [vmem:[%s7819_s2 + $0x180] sm:$0xff]  ;;  %v6347_v53 = vpack.c.bf16 %v375_v43, %v371_v41  ;;  %v372_v55 = vld [vmem:[%s7819_s2 + $0x190] sm:$0xff]  ;;  %v6357_v58 = vpack.c.bf16 %v377_v48, %v373_v46  ;;  %v49_v46 = vlaneseq }
  0x1c   :  { %295 = vmatprep.mubr.f32.mxu1 %v6001_v3  ;;  %4478 = vmatprep.subr.bf16.mxu0 %v6261_v20  ;;  %7951 = vst [vmem:[#allocation22_spill] sm:$0xff] %v6337_v49  ;;  %v374_v52 = vld [vmem:[%s7819_s2 + $0x1a0] sm:$0xff]  ;;  %v376_v56 = vld [vmem:[%s7819_s2 + $0x1b0] sm:$0xff]  ;;  %v379_v59 = vld [vmem:[%s7819_s2 + $0x1c8] sm:$0xff] }
  0x1d   :  { %4241 = vmatmul.mubr.msk.f32.gmra.mrb[8].mxu0 %vm69_vm0, %v27_v26  ;;  %4510 = vmatprep.subr.bf16.mxu1 %v6271_v23  ;;  %7952 = vst [vmem:[#allocation23_spill] sm:$0xff] %v6347_v53  ;;  %7953 = vst [vmem:[#allocation24_spill] sm:$0xff] %v6357_v58  ;;  %v383_v61 = vld [vmem:[%s7819_s2 + $0x1e8] sm:$0xff]  ;;  %v29_v62 = vld [vmem:[%s7820_s0 + $0x30] sm:$0xff]  ;;  %v6370_v63 = vpack.c.bf16 %v374_v52, %v370_v51  ;;  %v6380_v5 = vpack.c.bf16 %v376_v56, %v372_v55  ;;  %v50_v56 = vshrl.u32 %v49_v46, 7 }
  0x1e   :  { %4249 = vmatmul.mubr.msk.f32.gmra.mrb[8].mxu1 %vm69_vm0, %v27_v26  ;;  %4480 = vmatpush1.bf16.msra.mxu0 %v6284_v27  ;;  %v381_v1 = vld [vmem:[%s7819_s2 + $0x1d8] sm:$0xff]  ;;  %v378_v6 = vld [vmem:[%s7819_s2 + $0x1c0] sm:$0xff]  ;;  %v6390_v9 = vpack.c.bf16 %v383_v61, %v379_v59  ;;  %v380_v11 = vld [vmem:[%s7819_s2 + $0x1d0] sm:$0xff] }
  0x1f   :  { %4512 = vmatpush1.bf16.msra.mxu1 %v6294_v32  ;;  %188 = vmatprep.mubr.f32.mxu0 %v6001_v3  ;;  %7954 = vst [vmem:[#allocation25_spill] sm:$0xff] %v6370_v63  ;;  %v385_v2 = vld [vmem:[%s7819_s2 + $0x1f8] sm:$0xff]  ;;  %7955 = vst [vmem:[#allocation26_spill] sm:$0xff] %v6380_v5  ;;  %v382_v8 = vld [vmem:[%s7819_s2 + $0x1e0] sm:$0xff] }
  0x20   :  { %301 = vmatprep.mubr.f32.mxu1 %v6001_v3  ;;  %4482 = vmatprep.subr.bf16.mxu0 %v6304_v36  ;;  %7956 = vst [vmem:[#allocation27_spill] sm:$0xff] %v6390_v9  ;;  %v384_v12 = vld [vmem:[%s7819_s2 + $0x1f0] sm:$0xff]  ;;  %v6400_v13 = vpack.c.bf16 %v385_v2, %v381_v1  ;;  %v30_v15 = vld [vmem:[%s7820_s0 + $0x38] sm:$0xff]  ;;  %v6407_v16 = vpack.c.bf16 %v382_v8, %v378_v6  ;;  %v51_v2 = vsub.s32 0, %v50_v56  ;;  %v47_v6 = vld [vmem:[%s7821_s3] sm:$0xf] }
  0x21   :  { %4242 = vmatmul.mubr.msk.f32.gmra.mrb[10].mxu0 %vm69_vm0, %v28_v44  ;;  %4514 = vmatprep.subr.bf16.mxu1 %v6314_v40  ;;  %v6411_v18 = vpack.c.bf16 %v384_v12, %v380_v11 }
  0x22   :  { %4250 = vmatmul.mubr.msk.f32.gmra.mrb[10].mxu1 %vm69_vm0, %v28_v44  ;;  %4484 = vmatpush1.bf16.msra.mxu0 %v6327_v45  ;;  %7957 = vst [vmem:[#allocation28_spill] sm:$0xff] %v6400_v13  ;;  %7958 = vst [vmem:[#allocation29_spill] sm:$0xff] %v6407_v16 }
  0x23   :  { %4516 = vmatpush1.bf16.msra.mxu1 %v6337_v49  ;;  %194 = vmatprep.mubr.f32.mxu0 %v6001_v3  ;;  %7959 = vst [vmem:[#allocation30_spill] sm:$0xff] %v6411_v18 }
  0x24   :  { %307 = vmatprep.mubr.f32.mxu1 %v6001_v3  ;;  %4486 = vmatprep.subr.bf16.mxu0 %v6347_v53 }
  0x25   :  { %4243 = vmatmul.mubr.msk.f32.gmra.mrb[12].mxu0 %vm69_vm0, %v29_v62  ;;  %4518 = vmatprep.subr.bf16.mxu1 %v6357_v58 }
  0x26   :  { %4251 = vmatmul.mubr.msk.f32.gmra.mrb[12].mxu1 %vm69_vm0, %v29_v62  ;;  %4488 = vmatpush1.bf16.msra.mxu0 %v6370_v63 }
  0x27   :  { %4520 = vmatpush1.bf16.msra.mxu1 %v6380_v5  ;;  %200 = vmatprep.mubr.f32.mxu0 %v6001_v3 }
  0x28   :  { %313 = vmatprep.mubr.f32.mxu1 %v6001_v3  ;;  %4490 = vmatprep.subr.bf16.mxu0 %v6390_v9 }
  0x29   :  { %4244 = vmatmul.mubr.msk.f32.gmra.mrb[14].mxu0 %vm69_vm0, %v30_v15  ;;  %4522 = vmatprep.subr.bf16.mxu1 %v6400_v13 }
  0x2a   :  { %4252 = vmatmul.mubr.msk.f32.gmra.mrb[14].mxu1 %vm69_vm0, %v30_v15  ;;  %4492 = vmatpush1.bf16.msra.mxu0 %v6407_v16  ;;  %v55_v15 = vsub.s32 1, %v50_v56 }
  0x2b   :  { %4524 = vmatpush1.bf16.msra.mxu1 %v6411_v18  ;;  %450 = vmatprep.mubr.f32.mxu0 %v6001_v3 }
  0x2c   :  { %521 = vmatprep.mubr.f32.mxu1 %v6001_v3  ;;  %4526 = vmatprep.subr.bf16.mxu0 %v6090_v29 }
  0x2d   :  { %451 = vmatmul.mubr.f32.vlgmr.msra.gmra.mrb[16].mxu0 %v6001_v3  ;;  %4558 = vmatprep.subr.bf16.mxu1 %v6092_v30 }
  0x2e   :  { %522 = vmatmul.mubr.f32.vlgmr.msra.gmra.mrb[16].mxu1 %v6001_v3  ;;  %4528 = vmatpush1.bf16.msra.mxu0 %v6106_v35 }
  0x2f   :  { %4560 = vmatpush1.bf16.msra.mxu1 %v6115_v38  ;;  %4530 = vmatprep.subr.bf16.mxu0 %v6127_v42 }
  0x30   :  { %4562 = vmatprep.subr.bf16.mxu1 %v6142_v47  ;;  %926 = vmatprep.mubr.f32.mxu0 %v6001_v3 }
  0x31   :  { %997 = vmatprep.mubr.f32.mxu1 %v6001_v3 }
  0x32   :  { %4532 = vmatpush1.bf16.msra.mxu0 %v6152_v50 }
  0x33   :  { %4564 = vmatpush1.bf16.msra.mxu1 %v6165_v54  ;;  %4534 = vmatprep.subr.bf16.mxu0 %v6175_v57 }
  0x34   :  { %4566 = vmatprep.subr.bf16.mxu1 %v6185_v60 }
  0x36   :  { %4536 = vmatpush1.bf16.msra.mxu0 %v6198_v0 }
  0x37   :  { %4568 = vmatpush1.bf16.msra.mxu1 %v6208_v4  ;;  %4538 = vmatprep.subr.bf16.mxu0 %v6218_v7 }
  0x38   :  { %4570 = vmatprep.subr.bf16.mxu1 %v6228_v10 }
  0x3a   :  { %4540 = vmatpush1.bf16.msra.mxu0 %v6241_v14 }
  0x3b   :  { %4572 = vmatpush1.bf16.msra.mxu1 %v6251_v17  ;;  %4542 = vmatprep.subr.bf16.mxu0 %v6261_v20 }
  0x3c   :  { %4574 = vmatprep.subr.bf16.mxu1 %v6271_v23 }
  0x3e   :  { %4544 = vmatpush1.bf16.msra.mxu0 %v6284_v27 }
  0x3f   :  { %4576 = vmatpush1.bf16.msra.mxu1 %v6294_v32  ;;  %4546 = vmatprep.subr.bf16.mxu0 %v6304_v36 }
  0x40   :  { %4578 = vmatprep.subr.bf16.mxu1 %v6314_v40 }
  0x42   :  { %4548 = vmatpush1.bf16.msra.mxu0 %v6327_v45 }
  0x43   :  { %4580 = vmatpush1.bf16.msra.mxu1 %v6337_v49  ;;  %4550 = vmatprep.subr.bf16.mxu0 %v6347_v53 }
  0x44   :  { %4582 = vmatprep.subr.bf16.mxu1 %v6357_v58 }
  0x46   :  { %4552 = vmatpush1.bf16.msra.mxu0 %v6370_v63  ;;  %v63_v63 = vsub.s32 3, %v50_v56 }
  0x47   :  { %4584 = vmatpush1.bf16.msra.mxu1 %v6380_v5  ;;  %4554 = vmatprep.subr.bf16.mxu0 %v6390_v9  ;;  %v6509_v9 = vrot.slane %v47_v6, %v55_v15 }
  0x48   :  { %4586 = vmatprep.subr.bf16.mxu1 %v6400_v13 }
  0x4a   :  { %4556 = vmatpush1.bf16.msra.mxu0 %v6407_v16 }
  0x4b   :  { %4588 = vmatpush1.bf16.msra.mxu1 %v6411_v18  ;;  %4590 = vmatprep.subr.bf16.mxu0 %v6090_v29  ;;  %v52_v29 = vrot.slane %v47_v6, %v51_v2 }
  0x4c   :  { %4622 = vmatprep.subr.bf16.mxu1 %v6092_v30  ;;  %v59_v30 = vsub.s32 2, %v50_v56 }
  0x4e   :  { %v6511_v5 = vrot.slane %v47_v6, %v59_v30 }
  0xe0   :  { %v160_v3 = vpop.f32.mrb[0].mxu0 }
  0xe1   :  { %v6460_v19 = vpop.f32.mrb[1].mxu0  ;;  %v6462_v21 = vpop.f32.mrb[0].mxu1  ;;  %v6515_v53 = vadd.f32 %v160_v3, %v52_v29 }
  0xe2   :  { %v6464_v22 = vpop.f32.mrb[1].mxu1 }
  0xe3   :  { %7960 = vst [vmem:[#allocation31_spill] sm:$0xff] %v6515_v53 }
  0xe4   :  { %v166_v24 = vpop.f32.mrb[2].mxu0 }
  0xe5   :  { %v6466_v25 = vpop.f32.mrb[3].mxu0  ;;  %v6468_v26 = vpop.f32.mrb[2].mxu1  ;;  %v6517_v49 = vadd.f32 %v166_v24, %v52_v29 }
  0xe6   :  { %v6470_v28 = vpop.f32.mrb[3].mxu1 }
  0xe7   :  { %7961 = vst [vmem:[#allocation32_spill] sm:$0xff] %v6517_v49 }
  0xe8   :  { %v172_v31 = vpop.f32.mrb[4].mxu0 }
  0xe9   :  { %v6472_v33 = vpop.f32.mrb[5].mxu0  ;;  %v6474_v34 = vpop.f32.mrb[4].mxu1  ;;  %v6519_v45 = vadd.f32 %v172_v31, %v52_v29 }
  0xea   :  { %v6476_v37 = vpop.f32.mrb[5].mxu1 }
  0xeb   :  { %7962 = vst [vmem:[#allocation33_spill] sm:$0xff] %v6519_v45 }
  0xec   :  { %v178_v39 = vpop.f32.mrb[6].mxu0 }
  0xed   :  { %v6478_v41 = vpop.f32.mrb[7].mxu0  ;;  %v6480_v43 = vpop.f32.mrb[6].mxu1  ;;  %v6521_v40 = vadd.f32 %v178_v39, %v52_v29 }
  0xee   :  { %v6482_v44 = vpop.f32.mrb[7].mxu1 }
  0xef   :  { %7963 = vst [vmem:[#allocation34_spill] sm:$0xff] %v6521_v40 }
  0xf0   :  { %v184_v48 = vpop.f32.mrb[8].mxu0 }
  0xf1   :  { %v6484_v51 = vpop.f32.mrb[9].mxu0  ;;  %v6486_v52 = vpop.f32.mrb[8].mxu1  ;;  %v6523_v2 = vadd.f32 %v184_v48, %v52_v29 }
  0xf2   :  { %v6488_v55 = vpop.f32.mrb[9].mxu1 }
  0xf3   :  { %7964 = vst [vmem:[#allocation35_spill] sm:$0xff] %v6523_v2 }
  0xf4   :  { %v190_v59 = vpop.f32.mrb[10].mxu0 }
  0xf5   :  { %v6490_v61 = vpop.f32.mrb[11].mxu0  ;;  %v6492_v62 = vpop.f32.mrb[10].mxu1  ;;  %v6525_v36 = vadd.f32 %v190_v59, %v52_v29 }
  0xf6   :  { %v6494_v1 = vpop.f32.mrb[11].mxu1 }
  0xf7   :  { %7965 = vst [vmem:[#allocation36_spill] sm:$0xff] %v6525_v36 }
  0xf8   :  { %v196_v8 = vpop.f32.mrb[12].mxu0 }
  0xf9   :  { %v6499_v11 = vpop.f32.mrb[13].mxu0  ;;  %v6501_v12 = vpop.f32.mrb[12].mxu1  ;;  %v6527_v32 = vadd.f32 %v196_v8, %v52_v29 }
  0xfa   :  { %v6503_v46 = vpop.f32.mrb[13].mxu1 }
  0xfb   :  { %7966 = vst [vmem:[#allocation37_spill] sm:$0xff] %v6527_v32 }
  0xfc   :  { %v202_v18 = vpop.f32.mrb[14].mxu0 }
  0xfd   :  { %v6505_v16 = vpop.f32.mrb[15].mxu0  ;;  %v6507_v13 = vpop.f32.mrb[14].mxu1  ;;  %v6529_v15 = vadd.f32 %v202_v18, %v52_v29 }
  0xfe   :  { %v6513_v58 = vpop.f32.mrb[15].mxu1 }
  0xff   :  { %7967 = vst [vmem:[#allocation38_spill] sm:$0xff] %v6529_v15 }
 0x100   :  { %v452_v30 = vpop.f32.mrb[16].mxu0 }
 0x101   :  { %v532_v56 = vrot.slane %v452_v30, 1  ;;  %v536_v27 = vrot.slane %v452_v30, 2  ;;  %v540_v23 = vrot.slane %v452_v30, 3  ;;  %v544_v3 = vrot.slane %v452_v30, 4  ;;  %v6531_v20 = vpop.f32.mrb[16].mxu1  ;;  %v6533_v24 = vpop.f32.mrb[17].mxu0 }
 0x102   :  { %v548_v31 = vrot.slane %v452_v30, 5  ;;  %v552_v39 = vrot.slane %v452_v30, 6  ;;  %v556_v17 = vrot.slane %v452_v30, 7  ;;  %v592_v48 = vadd.f32 %v452_v30, %v6515_v53  ;;  %v6536_v59 = vpop.f32.mrb[17].mxu1 }
 0x103   :  { %v596_v8 = vadd.f32 %v532_v56, %v6517_v49  ;;  %v600_v29 = vadd.f32 %v536_v27, %v6519_v45  ;;  %v604_v18 = vadd.f32 %v540_v23, %v6521_v40  ;;  %v608_v14 = vadd.f32 %v544_v3, %v6523_v2 }
 0x104   :  { %v612_v10 = vadd.f32 %v548_v31, %v6525_v36  ;;  %v616_v7 = vadd.f32 %v552_v39, %v6527_v32  ;;  %v4253_v4 = vmul.f32 -1.442695, %v592_v48  ;;  %v620_v0 = vadd.f32 %v556_v17, %v6529_v15 }
 0x105   :  { %v4254_v60 = vmul.f32 -1.442695, %v596_v8  ;;  %v4255_v57 = vmul.f32 -1.442695, %v600_v29  ;;  %v4256_v30 = vmul.f32 -1.442695, %v604_v18  ;;  %v6547_v53 = vadd.f32 %v6460_v19, %v6509_v9 }
 0x106   :  { %v6549_v56 = vrot.slane %v47_v6, %v63_v63  ;;  %4974 = vpow2.f32 %v4253_v4  ;;  %v4257_v23 = vmul.f32 -1.442695, %v608_v14  ;;  %v6553_v27 = vadd.f32 %v6462_v21, %v6511_v5 }
 0x107   :  { %7968 = vst [vmem:[#allocation39_spill] sm:$0xff] %v6547_v53  ;;  %4976 = vpow2.f32 %v4254_v60  ;;  %v4258_v3 = vmul.f32 -1.442695, %v612_v10  ;;  %v534_v31 = vrot.slane %v6531_v20, 1  ;;  %v6558_v17 = vadd.f32 %v6468_v26, %v6511_v5 }
 0x108   :  { %7969 = vst [vmem:[#allocation40_spill] sm:$0xff] %v6553_v27  ;;  %4978 = vpow2.f32 %v4255_v57  ;;  %v4259_v39 = vmul.f32 -1.442695, %v616_v7  ;;  %v538_v19 = vrot.slane %v6531_v20, 2  ;;  %v6563_v4 = vadd.f32 %v6474_v34, %v6511_v5 }
 0x109   :  { %7970 = vst [vmem:[#allocation41_spill] sm:$0xff] %v6558_v17  ;;  %4980 = vpow2.f32 %v4256_v30  ;;  %v4260_v14 = vmul.f32 -1.442695, %v620_v0  ;;  %v542_v63 = vrot.slane %v6531_v20, 3  ;;  %v6568_v60 = vadd.f32 %v6486_v52, %v6511_v5 }
 0x10a   :  { %7971 = vst [vmem:[#allocation42_spill] sm:$0xff] %v6563_v4  ;;  %4982 = vpow2.f32 %v4257_v23  ;;  %v546_v10 = vrot.slane %v6531_v20, 4  ;;  %v594_v57 = vadd.f32 %v6531_v20, %v6553_v27  ;;  %v6575_v7 = vadd.f32 %v6464_v22, %v6549_v56 }
 0x10b   :  { %7972 = vst [vmem:[#allocation43_spill] sm:$0xff] %v6568_v60  ;;  %v6579_v21 = vadd.f32 %v6480_v43, %v6511_v5  ;;  %4984 = vpow2.f32 %v4258_v3  ;;  %v598_v0 = vadd.f32 %v534_v31, %v6558_v17  ;;  %v6584_v26 = vadd.f32 %v6466_v25, %v6509_v9 }
 0x10c   :  { %7973 = vst [vmem:[#allocation44_spill] sm:$0xff] %v6575_v7  ;;  %v6588_v34 = vadd.f32 %v6470_v28, %v6549_v56  ;;  %4986 = vpow2.f32 %v4259_v39  ;;  %v602_v52 = vadd.f32 %v538_v19, %v6563_v4  ;;  %v6593_v22 = vadd.f32 %v6472_v33, %v6509_v9 }
 0x10d   :  { %7974 = vst [vmem:[#allocation45_spill] sm:$0xff] %v6579_v21  ;;  %7975 = vst [vmem:[#allocation46_spill] sm:$0xff] %v6584_v26  ;;  %v6597_v43 = vadd.f32 %v6476_v37, %v6549_v56  ;;  %4988 = vpow2.f32 %v4260_v14  ;;  %v606_v6 = vadd.f32 %v542_v63, %v6579_v21  ;;  %v6602_v25 = vadd.f32 %v6478_v41, %v6509_v9 }
 0x10e   :  { %7976 = vst [vmem:[#allocation47_spill] sm:$0xff] %v6593_v22  ;;  %v6606_v28 = vadd.f32 %v6482_v44, %v6549_v56  ;;  %v610_v48 = vadd.f32 %v546_v10, %v6568_v60  ;;  %4990 = vtanh.f32 %v594_v57  ;;  %v6611_v33 = vadd.f32 %v6484_v51, %v6509_v9 }
 0x10f   :  { %7977 = vst [vmem:[#allocation48_spill] sm:$0xff] %v6602_v25  ;;  %v6615_v37 = vadd.f32 %v6492_v62, %v6511_v5  ;;  %v550_v8 = vrot.slane %v6531_v20, 5  ;;  %4992 = vtanh.f32 %v598_v0  ;;  %v6620_v29 = vadd.f32 %v6488_v55, %v6549_v56 }
 0x110   :  { %7978 = vst [vmem:[#allocation49_spill] sm:$0xff] %v6611_v33  ;;  %v4975_v41 = vpop.eup %4974  ;;  %v6624_v44 = vadd.f32 %v6501_v12, %v6511_v5  ;;  %v554_v18 = vrot.slane %v6531_v20, 6  ;;  %4994 = vtanh.f32 %v602_v52  ;;  %v6629_v62 = vadd.f32 %v6490_v61, %v6509_v9 }
 0x111   :  { %7979 = vst [vmem:[#allocation50_spill] sm:$0xff] %v6615_v37  ;;  %v4977_v51 = vpop.eup %4976  ;;  %v6633_v30 = vadd.f32 %v6499_v11, %v6509_v9  ;;  %v648_v23 = vadd.f32 1.0, %v4975_v41  ;;  %4996 = vtanh.f32 %v606_v6  ;;  %v6637_v3 = vadd.f32 %v6507_v13, %v6511_v5 }
 0x112   :  { %7980 = vst [vmem:[#allocation51_spill] sm:$0xff] %v6624_v44  ;;  %7981 = vst [vmem:[#allocation52_spill] sm:$0xff] %v6629_v62  ;;  %v4979_v55 = vpop.eup %4978  ;;  %v649_v12 = vadd.f32 1.0, %v4977_v51  ;;  %v558_v31 = vrot.slane %v6531_v20, 7  ;;  %4998 = vtanh.f32 %v610_v48  ;;  %v614_v61 = vadd.f32 %v550_v8, %v6615_v37 }
 0x113   :  { %7982 = vst [vmem:[#allocation53_spill] sm:$0xff] %v6633_v30  ;;  %7983 = vst [vmem:[#allocation54_spill] sm:$0xff] %v6637_v3  ;;  %v4981_v39 = vpop.eup %4980  ;;  %v650_v19 = vadd.f32 1.0, %v4979_v55  ;;  %5000 = vrcp.f32 %v648_v23  ;;  %v533_v14 = vrot.slane %v6533_v24, 1  ;;  %v618_v10 = vadd.f32 %v554_v18, %v6624_v44 }
 0x114   :  { %v4983_v11 = vpop.eup %4982  ;;  %v651_v63 = vadd.f32 1.0, %v4981_v39  ;;  %5002 = vrcp.f32 %v649_v12  ;;  %v537_v57 = vrot.slane %v6533_v24, 2  ;;  %v541_v20 = vrot.slane %v6533_v24, 3 }
 0x115   :  { %v4985_v5 = vpop.eup %4984  ;;  %v652_v13 = vadd.f32 1.0, %v4983_v11  ;;  %5004 = vrcp.f32 %v650_v19  ;;  %v545_v0 = vrot.slane %v6533_v24, 4  ;;  %v549_v48 = vrot.slane %v6533_v24, 5 }
 0x116   :  { %v4987_v52 = vpop.eup %4986  ;;  %v653_v6 = vadd.f32 1.0, %v4985_v5  ;;  %5006 = vrcp.f32 %v651_v63  ;;  %v593_v8 = vadd.f32 %v6533_v24, %v6547_v53  ;;  %v553_v18 = vrot.slane %v6533_v24, 6 }
 0x117   :  { %v4989_v41 = vpop.eup %4988  ;;  %v654_v51 = vadd.f32 1.0, %v4987_v52  ;;  %5008 = vrcp.f32 %v652_v13  ;;  %v597_v23 = vadd.f32 %v533_v14, %v6584_v26  ;;  %v557_v39 = vrot.slane %v6533_v24, 7 }
 0x118   :  { %v4991_v55 = vpop.eup %4990  ;;  %v655_v12 = vadd.f32 1.0, %v4989_v41  ;;  %5010 = vrcp.f32 %v653_v6  ;;  %v601_v19 = vadd.f32 %v537_v57, %v6593_v22  ;;  %v622_v63 = vadd.f32 %v558_v31, %v6637_v3 }
 0x119   :  { %v4993_v11 = vpop.eup %4992  ;;  %5012 = vrcp.f32 %v654_v51  ;;  %v605_v5 = vadd.f32 %v541_v20, %v6602_v25  ;;  %v609_v52 = vadd.f32 %v545_v0, %v6611_v33  ;;  %v6658_v53 = vadd.f32 %v6505_v16, %v6509_v9 }
 0x11a   :  { %v4995_v13 = vpop.eup %4994  ;;  %5014 = vrcp.f32 %v655_v12  ;;  %v613_v14 = vadd.f32 %v549_v48, %v6629_v62  ;;  %v4261_v6 = vmul.f32 -1.442695, %v593_v8  ;;  %v617_v57 = vadd.f32 %v553_v18, %v6633_v30 }
 0x11b   :  { %7984 = vst [vmem:[#allocation55_spill] sm:$0xff] %v6658_v53  ;;  %v4997_v24 = vpop.eup %4996  ;;  %5016 = vtanh.f32 %v614_v61  ;;  %v4262_v41 = vmul.f32 -1.442695, %v597_v23  ;;  %v535_v31 = vrot.slane %v6536_v59, 1  ;;  %v621_v20 = vadd.f32 %v557_v39, %v6658_v53 }
 0x11c   :  { %v4999_v51 = vpop.eup %4998  ;;  %5018 = vtanh.f32 %v618_v10  ;;  %v4263_v0 = vmul.f32 -1.442695, %v601_v19  ;;  %v539_v33 = vrot.slane %v6536_v59, 2  ;;  %v4264_v16 = vmul.f32 -1.442695, %v605_v5 }
 0x11d   :  { %v5001_v9 = vpop.eup %5000  ;;  %5020 = vtanh.f32 %v622_v63  ;;  %v4265_v12 = vmul.f32 -1.442695, %v609_v52  ;;  %v543_v48 = vrot.slane %v6536_v59, 3  ;;  %v547_v18 = vrot.slane %v6536_v59, 4 }
 0x11e   :  { %v5003_v8 = vpop.eup %5002  ;;  %v6666_v61 = vmul.f32 %v5001_v9, %v4991_v55  ;;  %5022 = vpow2.f32 %v4261_v6  ;;  %v595_v10 = vadd.f32 %v6536_v59, %v6575_v7  ;;  %v4266_v19 = vmul.f32 -1.442695, %v613_v14 }
 0x11f   :  { %v5005_v23 = vpop.eup %5004  ;;  %v6671_v39 = vmul.f32 %v5003_v8, %v4993_v11  ;;  %5024 = vpow2.f32 %v4262_v41  ;;  %v599_v63 = vadd.f32 %v535_v31, %v6588_v34  ;;  %v4267_v53 = vmul.f32 -1.442695, %v617_v57 }
 0x120   :  { %v5007_v5 = vpop.eup %5006  ;;  %v6674_v52 = vmul.f32 %v5005_v23, %v4995_v13  ;;  %5026 = vpow2.f32 %v4263_v0  ;;  %v603_v55 = vadd.f32 %v539_v33, %v6597_v43  ;;  %v4268_v9 = vmul.f32 -1.442695, %v621_v20 }
 0x121   :  { %v5009_v6 = vpop.eup %5008  ;;  %5028 = vpow2.f32 %v4264_v16  ;;  %v607_v30 = vadd.f32 %v543_v48, %v6606_v28  ;;  %v6678_v7 = vmul.f32 %v5007_v5, %v4997_v24  ;;  %v611_v14 = vadd.f32 %v547_v18, %v6620_v29 }
 0x122   :  { %v5011_v11 = vpop.eup %5010  ;;  %5030 = vpow2.f32 %v4265_v12  ;;  %v4269_v41 = vmul.f32 -1.442695, %v595_v10  ;;  %v6681_v31 = vmul.f32 %v5009_v6, %v4999_v51  ;;  %v4270_v0 = vmul.f32 -1.442695, %v599_v63 }
 0x123   :  { %v5013_v13 = vpop.eup %5012  ;;  %5032 = vpow2.f32 %v4266_v19  ;;  %v4271_v33 = vmul.f32 -1.442695, %v603_v55  ;;  %v4272_v20 = vmul.f32 -1.442695, %v607_v30  ;;  %v4273_v24 = vmul.f32 -1.442695, %v611_v14 }
 0x124   :  { %v5015_v57 = vpop.eup %5014  ;;  %5034 = vpow2.f32 %v4267_v53  ;;  %v6687_v18 = vadd.f32 %v6494_v1, %v6549_v56  ;;  %v551_v51 = vrot.slane %v6536_v59, 5  ;;  %v6694_v23 = vadd.f32 %v6503_v46, %v6549_v56 }
 0x125   :  { %v5017_v8 = vpop.eup %5016  ;;  %5036 = vpow2.f32 %v4268_v9  ;;  %v555_v30 = vrot.slane %v6536_v59, 6 }
 0x126   :  { %v5019_v16 = vpop.eup %5018  ;;  %5038 = vpow2.f32 %v4269_v41  ;;  %v6683_v48 = vmul.f32 %v5017_v8, %v5011_v11  ;;  %v615_v11 = vadd.f32 %v551_v51, %v6687_v18 }
 0x127   :  { %v5021_v12 = vpop.eup %5020  ;;  %5040 = vpow2.f32 %v4270_v0  ;;  %v6690_v10 = vmul.f32 %v5019_v16, %v5013_v13  ;;  %v619_v46 = vadd.f32 %v555_v30, %v6694_v23 }
 0x128   :  { %v5023_v53 = vpop.eup %5022  ;;  %5042 = vpow2.f32 %v4271_v33  ;;  %v6697_v19 = vmul.f32 %v5021_v12, %v5015_v57  ;;  %v6703_v33 = vadd.f32 %v6513_v58, %v6549_v56  ;;  %v4274_v12 = vmul.f32 -1.442695, %v615_v11 }
 0x129   :  { %v5025_v63 = vpop.eup %5024  ;;  %v696_v5 = vadd.f32 1.0, %v5023_v53  ;;  %5044 = vpow2.f32 %v4272_v20  ;;  %v559_v20 = vrot.slane %v6536_v59, 7  ;;  %v4275_v30 = vmul.f32 -1.442695, %v619_v46  ;;  %v6707_v59 = vld [vmem:[#allocation2] sm:$0xff] }
 0x12a   :  { %v5027_v1 = vpop.eup %5026  ;;  %v697_v55 = vadd.f32 1.0, %v5025_v63  ;;  %5046 = vpow2.f32 %v4273_v24 }
 0x12b   :  { %v5029_v6 = vpop.eup %5028  ;;  %v698_v9 = vadd.f32 1.0, %v5027_v1  ;;  %5048 = vrcp.f32 %v696_v5  ;;  %v623_v58 = vadd.f32 %v559_v20, %v6703_v33 }
 0x12c   :  { %v5031_v14 = vpop.eup %5030  ;;  %v699_v41 = vadd.f32 1.0, %v5029_v6  ;;  %5050 = vrcp.f32 %v697_v55 }
 0x12d   :  { %v5033_v13 = vpop.eup %5032  ;;  %v700_v0 = vadd.f32 1.0, %v5031_v14  ;;  %5052 = vrcp.f32 %v698_v9  ;;  %v777_v9 = vrot.slane %v6707_v59, 1  ;;  %v4276_v20 = vmul.f32 -1.442695, %v623_v58 }
 0x12e   :  { %v5035_v57 = vpop.eup %5034  ;;  %v701_v8 = vadd.f32 1.0, %v5033_v13  ;;  %5054 = vrcp.f32 %v699_v41  ;;  %v778_v41 = vrot.slane %v6707_v59, 2  ;;  %v783_v58 = vrot.slane %v6707_v59, 7 }
 0x12f   :  { %v5037_v16 = vpop.eup %5036  ;;  %v702_v24 = vadd.f32 1.0, %v5035_v57  ;;  %5056 = vrcp.f32 %v700_v0  ;;  %v779_v0 = vrot.slane %v6707_v59, 3 }
 0x130   :  { %v5039_v51 = vpop.eup %5038  ;;  %v703_v53 = vadd.f32 1.0, %v5037_v16  ;;  %5058 = vrcp.f32 %v701_v8  ;;  %v780_v16 = vrot.slane %v6707_v59, 4 }
 0x131   :  { %v5041_v63 = vpop.eup %5040  ;;  %5060 = vrcp.f32 %v702_v24  ;;  %v752_v5 = vadd.f32 1.0, %v5039_v51 }
 0x132   :  { %v5043_v1 = vpop.eup %5042  ;;  %5062 = vrcp.f32 %v703_v53  ;;  %v753_v56 = vadd.f32 1.0, %v5041_v63 }
 0x133   :  { %v5045_v55 = vpop.eup %5044  ;;  %5064 = vpow2.f32 %v4274_v12  ;;  %v754_v6 = vadd.f32 1.0, %v5043_v1  ;;  %v781_v12 = vrot.slane %v6707_v59, 5 }
 0x134   :  { %v5047_v11 = vpop.eup %5046  ;;  %5066 = vpow2.f32 %v4275_v30  ;;  %v755_v14 = vadd.f32 1.0, %v5045_v55  ;;  %v782_v30 = vrot.slane %v6707_v59, 6 }
 0x135   :  { %v5049_v46 = vpop.eup %5048  ;;  %v756_v13 = vadd.f32 1.0, %v5047_v11  ;;  %5068 = vrcp.f32 %v752_v5 }
 0x136   :  { %v5051_v57 = vpop.eup %5050  ;;  %v792_v8 = vmul.f32 %v6707_v59, %v5049_v46  ;;  %5070 = vrcp.f32 %v753_v56 }
 0x137   :  { %v5053_v24 = vpop.eup %5052  ;;  %5072 = vrcp.f32 %v754_v6  ;;  %v793_v51 = vmul.f32 %v5051_v57, %v777_v9 }
 0x138   :  { %v5055_v53 = vpop.eup %5054  ;;  %5074 = vrcp.f32 %v755_v14  ;;  %v794_v63 = vmul.f32 %v5053_v24, %v778_v41  ;;  %v6717_v5 = vadd.f32 %v6666_v61, %v792_v8 }
 0x139   :  { %v5057_v1 = vpop.eup %5056  ;;  %5076 = vrcp.f32 %v756_v13  ;;  %v795_v56 = vmul.f32 %v5055_v53, %v779_v0  ;;  %v6721_v55 = vadd.f32 %v6671_v39, %v793_v51 }
 0x13a   :  { %v5059_v6 = vpop.eup %5058  ;;  %5078 = vpow2.f32 %v4276_v20  ;;  %v796_v11 = vmul.f32 %v5057_v1, %v780_v16  ;;  %v6724_v9 = vadd.f32 %v6674_v52, %v794_v63 }
 0x13b   :  { %v5061_v14 = vpop.eup %5060  ;;  %v797_v46 = vmul.f32 %v5059_v6, %v781_v12  ;;  %v6727_v41 = vadd.f32 %v6678_v7, %v795_v56  ;;  %5080 = vtanh.f32 %v6717_v5 }
 0x13c   :  { %v5063_v61 = vpop.eup %5062  ;;  %v798_v13 = vmul.f32 %v5061_v14, %v782_v30  ;;  %v6731_v0 = vadd.f32 %v6681_v31, %v796_v11  ;;  %5082 = vtanh.f32 %v6721_v55 }
 0x13d   :  { %v5065_v39 = vpop.eup %5064  ;;  %v799_v57 = vmul.f32 %v5063_v61, %v783_v58  ;;  %v6735_v8 = vadd.f32 %v6683_v48, %v797_v46  ;;  %5084 = vtanh.f32 %v6724_v9 }
 0x13e   :  { %v5067_v52 = vpop.eup %5066  ;;  %v757_v20 = vadd.f32 1.0, %v5065_v39  ;;  %v6739_v7 = vadd.f32 %v6690_v10, %v798_v13  ;;  %5086 = vtanh.f32 %v6727_v41 }
 0x13f   :  { %v5069_v16 = vpop.eup %5068  ;;  %v758_v24 = vadd.f32 1.0, %v5067_v52  ;;  %v6743_v31 = vadd.f32 %v6697_v19, %v799_v57  ;;  %5088 = vtanh.f32 %v6731_v0 }
 0x140   :  { %v5071_v12 = vpop.eup %5070  ;;  %5090 = vrcp.f32 %v757_v20 }
 0x141   :  { %v5073_v48 = vpop.eup %5072  ;;  %5092 = vrcp.f32 %v758_v24 }
 0x142   :  { %v5075_v51 = vpop.eup %5074  ;;  %5094 = vtanh.f32 %v6735_v8 }
 0x143   :  { %v5077_v53 = vpop.eup %5076  ;;  %5096 = vtanh.f32 %v6739_v7 }
 0x144   :  { %v5079_v10 = vpop.eup %5078  ;;  %5098 = vtanh.f32 %v6743_v31 }
 0x145   :  { %v5081_v30 = vpop.eup %5080  ;;  %v759_v63 = vadd.f32 1.0, %v5079_v10 }
 0x146   :  { %v5083_v1 = vpop.eup %5082  ;;  %v824_v19 = vmul.f32 %v5081_v30, %v5069_v16 }
 0x147   :  { %v5085_v58 = vpop.eup %5084  ;;  %5100 = vrcp.f32 %v759_v63  ;;  %v825_v56 = vmul.f32 %v5083_v1, %v5071_v12 }
 0x148   :  { %v5087_v6 = vpop.eup %5086  ;;  %v826_v11 = vmul.f32 %v5085_v58, %v5073_v48 }
 0x149   :  { %v5089_v14 = vpop.eup %5088  ;;  %v827_v46 = vmul.f32 %v5087_v6, %v5075_v51  ;;  %v840_v61 = vrot.slane %v825_v56, 7 }
 0x14a   :  { %v5091_v13 = vpop.eup %5090  ;;  %v828_v39 = vmul.f32 %v5089_v14, %v5077_v53  ;;  %v843_v57 = vrot.slane %v826_v11, 6 }
 0x14b   :  { %v5093_v52 = vpop.eup %5092  ;;  %v842_v20 = vsel %vm841_vm1, %v840_v61, %v824_v19  ;;  %v846_v24 = vrot.slane %v827_v46, 5 }
 0x14c   :  { %v5095_v16 = vpop.eup %5094  ;;  %v845_v10 = vsel %vm844_vm2, %v843_v57, %v842_v20  ;;  %v849_v12 = vrot.slane %v828_v39, 4  ;;  %v7986_v39 = vld [vmem:[#allocation8_spill] sm:$0xff]  ;;  %v7987_v57 = vld [vmem:[#allocation9_spill] sm:$0xff]  ;;  %v7989_v20 = vld [vmem:[#allocation11_spill] sm:$0xff] }
 0x14d   :  { %v5097_v30 = vpop.eup %5096  ;;  %v829_v48 = vmul.f32 %v5095_v16, %v5091_v13  ;;  %v848_v63 = vsel %vm847_vm3, %v846_v24, %v845_v10  ;;  %v7985_v13 = vld [vmem:[#allocation7_spill] sm:$0xff]  ;;  %v7990_v24 = vld [vmem:[#allocation12_spill] sm:$0xff]  ;;  %v7991_v16 = vld [vmem:[#allocation13_spill] sm:$0xff] }
 0x14e   :  { %v830_v51 = vmul.f32 %v5097_v30, %v5093_v52  ;;  %v851_v1 = vsel %vm850_vm4, %v849_v12, %v848_v63  ;;  %v5099_v53 = vpop.eup %5098  ;;  %v7988_v52 = vld [vmem:[#allocation10_spill] sm:$0xff]  ;;  %v7993_v12 = vld [vmem:[#allocation15_spill] sm:$0xff]  ;;  %v7994_v30 = vld [vmem:[#allocation16_spill] sm:$0xff] }
 0x14f   :  { %v852_v58 = vrot.slane %v829_v48, 3  ;;  %v7992_v10 = vld [vmem:[#allocation14_spill] sm:$0xff]  ;;  %v7995_v48 = vld [vmem:[#allocation17_spill] sm:$0xff] }
 0x150   :  { %v855_v56 = vrot.slane %v830_v51, 2  ;;  %v7996_v63 = vld [vmem:[#allocation18_spill] sm:$0xff]  ;;  %v7997_v51 = vld [vmem:[#allocation19_spill] sm:$0xff] }
 0x151   :  { %v5101_v6 = vpop.eup %5100  ;;  %v854_v19 = vsel %vm853_vm5, %v852_v58, %v851_v1  ;;  %v7998_v1 = vld [vmem:[#allocation20_spill] sm:$0xff]  ;;  %v8000_v58 = vld [vmem:[#allocation22_spill] sm:$0xff] }
 0x152   :  { %v831_v11 = vmul.f32 %v5101_v6, %v5099_v53  ;;  %v857_v14 = vsel %vm856_vm6, %v855_v56, %v854_v19  ;;  %v7999_v53 = vld [vmem:[#allocation21_spill] sm:$0xff]  ;;  %v8001_v56 = vld [vmem:[#allocation23_spill] sm:$0xff]  ;;  %v8002_v6 = vld [vmem:[#allocation24_spill] sm:$0xff] }
 0x153   :  { %v8003_v19 = vld [vmem:[#allocation25_spill] sm:$0xff] }
 0x154   :  { %v858_v46 = vrot.slane %v831_v11, 1  ;;  %v8004_v11 = vld [vmem:[#allocation26_spill] sm:$0xff] }
 0x156   :  { %v860_v61 = vsel %vm859_vm7, %v858_v46, %v857_v14  ;;  %v8005_v14 = vld [vmem:[#allocation27_spill] sm:$0xff]  ;;  %v8006_v46 = vld [vmem:[#allocation28_spill] sm:$0xff] }
 0x157   :  { %927 = vmatmul.mubr.f32.vlgmr.msra.gmra.mrb[18].mxu0 %v860_v61  ;;  %998 = vmatmul.mubr.f32.vlgmr.msra.gmra.mrb[18].mxu1 %v860_v61  ;;  %v8007_v61 = vld [vmem:[#allocation29_spill] sm:$0xff] }
 0x158   :  { %4592 = vmatpush1.bf16.msra.mxu0 %v6106_v35  ;;  %4624 = vmatpush1.bf16.msra.mxu1 %v6115_v38 }
 0x159   :  { %4594 = vmatprep.subr.bf16.mxu0 %v6127_v42  ;;  %4626 = vmatprep.subr.bf16.mxu1 %v6142_v47 }
 0x15a   :  { %1403 = vmatprep.mubr.f32.mxu0 %v6707_v59  ;;  %1474 = vmatprep.mubr.f32.mxu1 %v6707_v59 }
 0x15c   :  { %4596 = vmatpush1.bf16.msra.mxu0 %v6152_v50  ;;  %4628 = vmatpush1.bf16.msra.mxu1 %v6165_v54 }
 0x15d   :  { %4598 = vmatprep.subr.bf16.mxu0 %v7985_v13  ;;  %4630 = vmatprep.subr.bf16.mxu1 %v7986_v39 }
 0x160   :  { %4600 = vmatpush1.bf16.msra.mxu0 %v7987_v57  ;;  %4632 = vmatpush1.bf16.msra.mxu1 %v7988_v52 }
 0x161   :  { %4602 = vmatprep.subr.bf16.mxu0 %v7989_v20  ;;  %4634 = vmatprep.subr.bf16.mxu1 %v7990_v24 }
 0x164   :  { %4604 = vmatpush1.bf16.msra.mxu0 %v7991_v16  ;;  %4636 = vmatpush1.bf16.msra.mxu1 %v7992_v10 }
 0x165   :  { %4606 = vmatprep.subr.bf16.mxu0 %v7993_v12  ;;  %4638 = vmatprep.subr.bf16.mxu1 %v7994_v30  ;;  %v8011_v12 = vld [vmem:[#allocation31_spill] sm:$0xff] }
 0x168   :  { %4608 = vmatpush1.bf16.msra.mxu0 %v7995_v48  ;;  %4640 = vmatpush1.bf16.msra.mxu1 %v7996_v63 }
 0x169   :  { %4610 = vmatprep.subr.bf16.mxu0 %v7997_v51  ;;  %4642 = vmatprep.subr.bf16.mxu1 %v7998_v1  ;;  %v8008_v51 = vld [vmem:[#allocation30_spill] sm:$0xff]  ;;  %v8009_v1 = vld [vmem:[#allocation4_spill] sm:$0xff] }
 0x16c   :  { %4612 = vmatpush1.bf16.msra.mxu0 %v7999_v53  ;;  %4644 = vmatpush1.bf16.msra.mxu1 %v8000_v58  ;;  %v8010_v53 = vld [vmem:[#allocation5_spill] sm:$0xff] }
 0x16d   :  { %4614 = vmatprep.subr.bf16.mxu0 %v8001_v56  ;;  %4646 = vmatprep.subr.bf16.mxu1 %v8002_v6 }
 0x170   :  { %4616 = vmatpush1.bf16.msra.mxu0 %v8003_v19  ;;  %4648 = vmatpush1.bf16.msra.mxu1 %v8004_v11 }
 0x171   :  { %4618 = vmatprep.subr.bf16.mxu0 %v8005_v14  ;;  %4650 = vmatprep.subr.bf16.mxu1 %v8006_v46 }
 0x174   :  { %4620 = vmatpush1.bf16.msra.mxu0 %v8007_v61  ;;  %4652 = vmatpush1.bf16.msra.mxu1 %v8008_v51 }
 0x175   :  { %4654 = vmatprep.subr.bf16.mxu0 %v8009_v1  ;;  %4686 = vmatprep.subr.bf16.mxu1 %v8010_v53 }
 0x22a   :  { %v928_v58 = vpop.f32.mrb[18].mxu0  ;;  %v6790_v56 = vpop.f32.mrb[18].mxu1 }
 0x22b   :  { %v1008_v6 = vrot.slane %v928_v58, 7  ;;  %v1012_v63 = vrot.slane %v928_v58, 1  ;;  %v1016_v19 = vrot.slane %v928_v58, 2  ;;  %v1020_v48 = vrot.slane %v928_v58, 3  ;;  %v6792_v11 = vpop.f32.mrb[19].mxu0  ;;  %v6794_v14 = vpop.f32.mrb[19].mxu1 }
 0x22c   :  { %v1024_v46 = vrot.slane %v928_v58, 4  ;;  %v1028_v30 = vrot.slane %v928_v58, 5  ;;  %v1032_v61 = vrot.slane %v928_v58, 6  ;;  %v1072_v51 = vadd.f32 %v928_v58, %v6517_v49 }
 0x22d   :  { %v1068_v1 = vadd.f32 %v1008_v6, %v8011_v12  ;;  %v1076_v53 = vadd.f32 %v1012_v63, %v6519_v45  ;;  %v1080_v10 = vadd.f32 %v1016_v19, %v6521_v40  ;;  %v1084_v16 = vadd.f32 %v1020_v48, %v6523_v2 }
 0x22e   :  { %v1088_v24 = vadd.f32 %v1024_v46, %v6525_v36  ;;  %v1092_v20 = vadd.f32 %v1028_v30, %v6527_v32  ;;  %v4278_v52 = vmul.f32 -1.442695, %v1072_v51  ;;  %v1096_v57 = vadd.f32 %v1032_v61, %v6529_v15 }
 0x22f   :  { %v4277_v39 = vmul.f32 -1.442695, %v1068_v1  ;;  %v4279_v13 = vmul.f32 -1.442695, %v1076_v53  ;;  %v4280_v54 = vmul.f32 -1.442695, %v1080_v10 }
 0x230   :  { %5102 = vpow2.f32 %v4278_v52  ;;  %v4281_v58 = vmul.f32 -1.442695, %v1084_v16  ;;  %v4282_v6 = vmul.f32 -1.442695, %v1088_v24  ;;  %v1010_v63 = vrot.slane %v6790_v56, 7 }
 0x231   :  { %5104 = vpow2.f32 %v4277_v39  ;;  %v4283_v19 = vmul.f32 -1.442695, %v1092_v20  ;;  %v1014_v48 = vrot.slane %v6790_v56, 1  ;;  %v4284_v46 = vmul.f32 -1.442695, %v1096_v57 }
 0x232   :  { %5106 = vpow2.f32 %v4279_v13  ;;  %v1018_v30 = vrot.slane %v6790_v56, 2  ;;  %v1022_v51 = vrot.slane %v6790_v56, 3  ;;  %v1070_v1 = vadd.f32 %v1010_v63, %v6553_v27 }
 0x233   :  { %5108 = vpow2.f32 %v4280_v54  ;;  %v1074_v39 = vadd.f32 %v6790_v56, %v6558_v17  ;;  %v1078_v52 = vadd.f32 %v1014_v48, %v6563_v4  ;;  %v1026_v57 = vrot.slane %v6790_v56, 4 }
 0x234   :  { %5110 = vpow2.f32 %v4281_v58  ;;  %v1082_v13 = vadd.f32 %v1018_v30, %v6579_v21  ;;  %v1086_v54 = vadd.f32 %v1022_v51, %v6568_v60  ;;  %v1030_v24 = vrot.slane %v6790_v56, 5 }
 0x235   :  { %5112 = vpow2.f32 %v4282_v6  ;;  %v1009_v58 = vrot.slane %v6792_v11, 7  ;;  %v1090_v48 = vadd.f32 %v1026_v57, %v6615_v37  ;;  %v8012_v57 = vld [vmem:[#allocation39_spill] sm:$0xff] }
 0x236   :  { %5114 = vpow2.f32 %v4283_v19  ;;  %v1034_v19 = vrot.slane %v6790_v56, 6  ;;  %v1094_v51 = vadd.f32 %v1030_v24, %v6624_v44  ;;  %v1025_v56 = vrot.slane %v6792_v11, 4 }
 0x237   :  { %5116 = vpow2.f32 %v4284_v46  ;;  %v1029_v24 = vrot.slane %v6792_v11, 5  ;;  %v1033_v44 = vrot.slane %v6792_v11, 6 }
 0x238   :  { %5118 = vtanh.f32 %v1070_v1  ;;  %v1013_v1 = vrot.slane %v6792_v11, 1  ;;  %v1098_v37 = vadd.f32 %v1034_v19, %v6637_v3 }
 0x239   :  { %5120 = vtanh.f32 %v1074_v39 }
 0x23a   :  { %v5103_v20 = vpop.eup %5102  ;;  %5122 = vtanh.f32 %v1078_v52 }
 0x23b   :  { %v5105_v16 = vpop.eup %5104  ;;  %v1125_v10 = vadd.f32 1.0, %v5103_v20  ;;  %5124 = vtanh.f32 %v1082_v13  ;;  %v1017_v13 = vrot.slane %v6792_v11, 2 }
 0x23c   :  { %v5107_v53 = vpop.eup %5106  ;;  %v1124_v61 = vadd.f32 1.0, %v5105_v16  ;;  %5126 = vtanh.f32 %v1086_v54  ;;  %v1021_v54 = vrot.slane %v6792_v11, 3 }
 0x23d   :  { %v5109_v6 = vpop.eup %5108  ;;  %v1126_v63 = vadd.f32 1.0, %v5107_v53  ;;  %5128 = vrcp.f32 %v1125_v10  ;;  %v1069_v10 = vadd.f32 %v1009_v58, %v8012_v57  ;;  %v1081_v58 = vadd.f32 %v1017_v13, %v6602_v25 }
 0x23e   :  { %v5111_v46 = vpop.eup %5110  ;;  %v1127_v30 = vadd.f32 1.0, %v5109_v6  ;;  %5130 = vrcp.f32 %v1124_v61  ;;  %v1073_v6 = vadd.f32 %v6792_v11, %v6584_v26  ;;  %v1011_v26 = vrot.slane %v6794_v14, 7  ;;  %v8014_v11 = vld [vmem:[#allocation53_spill] sm:$0xff] }
 0x23f   :  { %v5113_v39 = vpop.eup %5112  ;;  %v1128_v52 = vadd.f32 1.0, %v5111_v46  ;;  %5132 = vrcp.f32 %v1126_v63  ;;  %v4285_v60 = vmul.f32 -1.442695, %v1069_v10  ;;  %v1015_v13 = vrot.slane %v6794_v14, 1 }
 0x240   :  { %v5115_v20 = vpop.eup %5114  ;;  %v1129_v16 = vadd.f32 1.0, %v5113_v39  ;;  %5134 = vrcp.f32 %v1127_v30  ;;  %v1077_v39 = vadd.f32 %v1013_v1, %v6593_v22  ;;  %v4286_v1 = vmul.f32 -1.442695, %v1073_v6 }
 0x241   :  { %v5117_v53 = vpop.eup %5116  ;;  %v1130_v61 = vadd.f32 1.0, %v5115_v20  ;;  %5136 = vrcp.f32 %v1128_v52  ;;  %v8013_v20 = vld [vmem:[#allocation49_spill] sm:$0xff] }
 0x242   :  { %v5119_v63 = vpop.eup %5118  ;;  %v1131_v46 = vadd.f32 1.0, %v5117_v53  ;;  %5138 = vrcp.f32 %v1129_v16  ;;  %v1085_v52 = vadd.f32 %v1021_v54, %v8013_v20  ;;  %v1089_v16 = vadd.f32 %v1025_v56, %v6629_v62 }
 0x243   :  { %v5121_v30 = vpop.eup %5120  ;;  %5140 = vrcp.f32 %v1130_v61  ;;  %v1093_v53 = vadd.f32 %v1029_v24, %v8014_v11  ;;  %v8015_v61 = vld [vmem:[#allocation55_spill] sm:$0xff]  ;;  %v4287_v3 = vmul.f32 -1.442695, %v1077_v39  ;;  %v1019_v20 = vrot.slane %v6794_v14, 2  ;;  %v8016_v24 = vld [vmem:[#allocation44_spill] sm:$0xff] }
 0x244   :  { %v5123_v57 = vpop.eup %5122  ;;  %5142 = vrcp.f32 %v1131_v46  ;;  %v1097_v19 = vadd.f32 %v1033_v44, %v8015_v61  ;;  %v4288_v46 = vmul.f32 -1.442695, %v1081_v58  ;;  %v4289_v10 = vmul.f32 -1.442695, %v1085_v52 }
 0x245   :  { %v5125_v21 = vpop.eup %5124  ;;  %5144 = vtanh.f32 %v1090_v48  ;;  %v1023_v56 = vrot.slane %v6794_v14, 3  ;;  %v1071_v6 = vadd.f32 %v1011_v26, %v8016_v24  ;;  %v4290_v44 = vmul.f32 -1.442695, %v1089_v16 }
 0x246   :  { %v5127_v22 = vpop.eup %5126  ;;  %5146 = vtanh.f32 %v1094_v51  ;;  %v4291_v52 = vmul.f32 -1.442695, %v1093_v53  ;;  %v1083_v26 = vadd.f32 %v1019_v20, %v6606_v28 }
 0x247   :  { %v5129_v54 = vpop.eup %5128  ;;  %5148 = vtanh.f32 %v1098_v37  ;;  %v1075_v37 = vadd.f32 %v6794_v14, %v6588_v34  ;;  %v4293_v16 = vmul.f32 -1.442695, %v1071_v6 }
 0x248   :  { %v5131_v25 = vpop.eup %5130  ;;  %v6839_v48 = vmul.f32 %v5129_v54, %v5121_v30  ;;  %5150 = vpow2.f32 %v4285_v60  ;;  %v1079_v30 = vadd.f32 %v1015_v13, %v6597_v43  ;;  %v4292_v54 = vmul.f32 -1.442695, %v1097_v19 }
 0x249   :  { %v5133_v51 = vpop.eup %5132  ;;  %v6843_v11 = vmul.f32 %v5131_v25, %v5119_v63  ;;  %5152 = vpow2.f32 %v4286_v1  ;;  %v1087_v63 = vadd.f32 %v1023_v56, %v6620_v29  ;;  %v4296_v19 = vmul.f32 -1.442695, %v1083_v26 }
 0x24a   :  { %v5135_v39 = vpop.eup %5134  ;;  %v6847_v58 = vmul.f32 %v5133_v51, %v5123_v57  ;;  %5154 = vpow2.f32 %v4287_v3  ;;  %v4294_v3 = vmul.f32 -1.442695, %v1075_v37  ;;  %v4295_v13 = vmul.f32 -1.442695, %v1079_v30 }
 0x24b   :  { %v5137_v60 = vpop.eup %5136  ;;  %5156 = vpow2.f32 %v4288_v46  ;;  %v6851_v24 = vmul.f32 %v5135_v39, %v5125_v21  ;;  %v4297_v21 = vmul.f32 -1.442695, %v1087_v63  ;;  %v1027_v56 = vrot.slane %v6794_v14, 4 }
 0x24c   :  { %v5139_v25 = vpop.eup %5138  ;;  %5158 = vpow2.f32 %v4289_v10  ;;  %v6854_v1 = vmul.f32 %v5137_v60, %v5127_v22 }
 0x24d   :  { %v5141_v57 = vpop.eup %5140  ;;  %5160 = vpow2.f32 %v4290_v44  ;;  %v1031_v44 = vrot.slane %v6794_v14, 5 }
 0x24e   :  { %v5143_v53 = vpop.eup %5142  ;;  %5162 = vpow2.f32 %v4291_v52 }
 0x24f   :  { %v5145_v51 = vpop.eup %5144  ;;  %5164 = vpow2.f32 %v4292_v54 }
 0x250   :  { %v5147_v46 = vpop.eup %5146  ;;  %5166 = vpow2.f32 %v4293_v16  ;;  %v6856_v20 = vmul.f32 %v5145_v51, %v5139_v25  ;;  %v1091_v25 = vadd.f32 %v1027_v56, %v6687_v18 }
 0x251   :  { %v5149_v10 = vpop.eup %5148  ;;  %5168 = vpow2.f32 %v4294_v3  ;;  %v6859_v22 = vmul.f32 %v5147_v46, %v5141_v57  ;;  %v1095_v57 = vadd.f32 %v1031_v44, %v6694_v23 }
 0x252   :  { %v5151_v6 = vpop.eup %5150  ;;  %5170 = vpow2.f32 %v4295_v13  ;;  %v6862_v37 = vmul.f32 %v5149_v10, %v5143_v53  ;;  %v4298_v10 = vmul.f32 -1.442695, %v1091_v25 }
 0x253   :  { %v5153_v39 = vpop.eup %5152  ;;  %v1172_v52 = vadd.f32 1.0, %v5151_v6  ;;  %5172 = vpow2.f32 %v4296_v19  ;;  %v1035_v19 = vrot.slane %v6794_v14, 6  ;;  %v4299_v56 = vmul.f32 -1.442695, %v1095_v57 }
 0x254   :  { %v5155_v30 = vpop.eup %5154  ;;  %v1173_v60 = vadd.f32 1.0, %v5153_v39  ;;  %5174 = vpow2.f32 %v4297_v21 }
 0x255   :  { %v5157_v54 = vpop.eup %5156  ;;  %v1174_v26 = vadd.f32 1.0, %v5155_v30  ;;  %5176 = vrcp.f32 %v1172_v52 }
 0x256   :  { %v5159_v63 = vpop.eup %5158  ;;  %v1175_v16 = vadd.f32 1.0, %v5157_v54  ;;  %5178 = vrcp.f32 %v1173_v60  ;;  %v1099_v60 = vadd.f32 %v1035_v19, %v6703_v33 }
 0x257   :  { %v5161_v3 = vpop.eup %5160  ;;  %v1176_v13 = vadd.f32 1.0, %v5159_v63  ;;  %5180 = vrcp.f32 %v1174_v26 }
 0x258   :  { %v5163_v53 = vpop.eup %5162  ;;  %v1177_v51 = vadd.f32 1.0, %v5161_v3  ;;  %5182 = vrcp.f32 %v1175_v16  ;;  %v1260_v16 = vrot.slane %v6717_v5, 7  ;;  %v1264_v5 = vrot.slane %v6731_v0, 7 }
 0x259   :  { %v5165_v46 = vpop.eup %5164  ;;  %v1178_v21 = vadd.f32 1.0, %v5163_v53  ;;  %5184 = vrcp.f32 %v1176_v13  ;;  %v1261_v13 = vrot.slane %v6721_v55, 7 }
 0x25a   :  { %v5167_v6 = vpop.eup %5166  ;;  %v1179_v39 = vadd.f32 1.0, %v5165_v46  ;;  %5186 = vrcp.f32 %v1177_v51  ;;  %v1262_v51 = vrot.slane %v6724_v9, 7  ;;  %v4300_v46 = vmul.f32 -1.442695, %v1099_v60 }
 0x25b   :  { %v5169_v52 = vpop.eup %5168  ;;  %5188 = vrcp.f32 %v1178_v21  ;;  %v1228_v30 = vadd.f32 1.0, %v5167_v6 }
 0x25c   :  { %v5171_v44 = vpop.eup %5170  ;;  %5190 = vrcp.f32 %v1179_v39  ;;  %v1229_v54 = vadd.f32 1.0, %v5169_v52 }
 0x25d   :  { %v5173_v26 = vpop.eup %5172  ;;  %5192 = vpow2.f32 %v4298_v10  ;;  %v1230_v63 = vadd.f32 1.0, %v5171_v44  ;;  %v1263_v10 = vrot.slane %v6727_v41, 7  ;;  %v1266_v41 = vrot.slane %v6739_v7, 7 }
 0x25e   :  { %v5175_v14 = vpop.eup %5174  ;;  %5194 = vpow2.f32 %v4299_v56  ;;  %v1231_v25 = vadd.f32 1.0, %v5173_v26 }
 0x25f   :  { %v5177_v3 = vpop.eup %5176  ;;  %v1232_v57 = vadd.f32 1.0, %v5175_v14  ;;  %5196 = vrcp.f32 %v1228_v30  ;;  %v1265_v30 = vrot.slane %v6735_v8, 7 }
 0x260   :  { %v5179_v53 = vpop.eup %5178  ;;  %5198 = vrcp.f32 %v1229_v54  ;;  %v1276_v19 = vmul.f32 %v5177_v3, %v1260_v16 }
 0x261   :  { %v5181_v21 = vpop.eup %5180  ;;  %v1277_v6 = vmul.f32 %v5179_v53, %v1261_v13  ;;  %5200 = vrcp.f32 %v1230_v63 }
 0x262   :  { %v5183_v39 = vpop.eup %5182  ;;  %5202 = vrcp.f32 %v1231_v25  ;;  %v1278_v56 = vmul.f32 %v5181_v21, %v1262_v51  ;;  %v6874_v55 = vadd.f32 %v6843_v11, %v1276_v19  ;;  %v1267_v11 = vrot.slane %v6743_v31, 7 }
 0x263   :  { %v5185_v52 = vpop.eup %5184  ;;  %5204 = vrcp.f32 %v1232_v57  ;;  %v1279_v9 = vmul.f32 %v5183_v39, %v1263_v10  ;;  %v6878_v44 = vadd.f32 %v6839_v48, %v1277_v6 }
 0x264   :  { %v5187_v60 = vpop.eup %5186  ;;  %5206 = vpow2.f32 %v4300_v46  ;;  %v1280_v54 = vmul.f32 %v5185_v52, %v1264_v5  ;;  %v6882_v0 = vadd.f32 %v6847_v58, %v1278_v56 }
 0x265   :  { %v5189_v26 = vpop.eup %5188  ;;  %v1281_v63 = vmul.f32 %v5187_v60, %v1265_v30  ;;  %v6886_v14 = vadd.f32 %v6851_v24, %v1279_v9  ;;  %5208 = vtanh.f32 %v6874_v55 }
 0x266   :  { %v5191_v8 = vpop.eup %5190  ;;  %v1282_v48 = vmul.f32 %v5189_v26, %v1266_v41  ;;  %v6890_v16 = vadd.f32 %v6854_v1, %v1280_v54  ;;  %5210 = vtanh.f32 %v6878_v44 }
 0x267   :  { %v5193_v7 = vpop.eup %5192  ;;  %v1283_v25 = vmul.f32 %v5191_v8, %v1267_v11  ;;  %v6894_v58 = vadd.f32 %v6856_v20, %v1281_v63  ;;  %5212 = vtanh.f32 %v6882_v0 }
 0x268   :  { %v5195_v31 = vpop.eup %5194  ;;  %v1233_v3 = vadd.f32 1.0, %v5193_v7  ;;  %v6898_v24 = vadd.f32 %v6859_v22, %v1282_v48  ;;  %5214 = vtanh.f32 %v6886_v14 }
 0x269   :  { %v5197_v13 = vpop.eup %5196  ;;  %v1234_v57 = vadd.f32 1.0, %v5195_v31  ;;  %v6902_v1 = vadd.f32 %v6862_v37, %v1283_v25  ;;  %5216 = vtanh.f32 %v6890_v16 }
 0x26a   :  { %v5199_v53 = vpop.eup %5198  ;;  %5218 = vrcp.f32 %v1233_v3 }
 0x26b   :  { %v5201_v20 = vpop.eup %5200  ;;  %5220 = vrcp.f32 %v1234_v57 }
 0x26c   :  { %v5203_v51 = vpop.eup %5202  ;;  %5222 = vtanh.f32 %v6894_v58 }
 0x26d   :  { %v5205_v46 = vpop.eup %5204  ;;  %5224 = vtanh.f32 %v6898_v24 }
 0x26e   :  { %v5207_v22 = vpop.eup %5206  ;;  %5226 = vtanh.f32 %v6902_v1 }
 0x26f   :  { %v5209_v19 = vpop.eup %5208  ;;  %v1235_v21 = vadd.f32 1.0, %v5207_v22 }
 0x270   :  { %v5211_v10 = vpop.eup %5210  ;;  %v1308_v37 = vmul.f32 %v5209_v19, %v5197_v13 }
 0x271   :  { %v5213_v6 = vpop.eup %5212  ;;  %5228 = vrcp.f32 %v1235_v21  ;;  %v1309_v39 = vmul.f32 %v5211_v10, %v5199_v53 }
 0x272   :  { %v5215_v5 = vpop.eup %5214  ;;  %v1310_v56 = vmul.f32 %v5213_v6, %v5201_v20  ;;  %v1324_v52 = vrot.slane %v1308_v37, 1  ;;  %v8017_v6 = vld [vmem:[#allocation6_spill] sm:$0xff] }
 0x273   :  { %v5217_v30 = vpop.eup %5216  ;;  %v1311_v9 = vmul.f32 %v5215_v5, %v5203_v51  ;;  %v8019_v5 = vld [vmem:[#allocation8_spill] sm:$0xff] }
 0x274   :  { %v5219_v60 = vpop.eup %5218  ;;  %v1312_v41 = vmul.f32 %v5217_v30, %v5205_v46  ;;  %v1325_v54 = vsel %vm841_vm1, %v1309_v39, %v1324_v52  ;;  %v1326_v26 = vrot.slane %v1310_v56, 7  ;;  %v8018_v39 = vld [vmem:[#allocation7_spill] sm:$0xff]  ;;  %v8020_v56 = vld [vmem:[#allocation9_spill] sm:$0xff]  ;;  %v8021_v52 = vld [vmem:[#allocation10_spill] sm:$0xff] }
 0x275   :  { %v5221_v11 = vpop.eup %5220  ;;  %v1328_v63 = vrot.slane %v1311_v9, 6  ;;  %v8022_v30 = vld [vmem:[#allocation11_spill] sm:$0xff]  ;;  %v8023_v9 = vld [vmem:[#allocation12_spill] sm:$0xff] }
 0x276   :  { %v5223_v8 = vpop.eup %5222  ;;  %v1327_v48 = vsel %vm844_vm2, %v1326_v26, %v1325_v54  ;;  %v1330_v7 = vrot.slane %v1312_v41, 5  ;;  %v8025_v41 = vld [vmem:[#allocation14_spill] sm:$0xff]  ;;  %v8027_v54 = vld [vmem:[#allocation16_spill] sm:$0xff]  ;;  %v8028_v26 = vld [vmem:[#allocation17_spill] sm:$0xff] }
 0x277   :  { %v5225_v25 = vpop.eup %5224  ;;  %v1313_v31 = vmul.f32 %v5223_v8, %v5219_v60  ;;  %v1329_v3 = vsel %vm847_vm3, %v1328_v63, %v1327_v48  ;;  %v8024_v60 = vld [vmem:[#allocation13_spill] sm:$0xff]  ;;  %v8030_v63 = vld [vmem:[#allocation19_spill] sm:$0xff]  ;;  %v8031_v8 = vld [vmem:[#allocation20_spill] sm:$0xff] }
 0x278   :  { %v1314_v13 = vmul.f32 %v5225_v25, %v5221_v11  ;;  %v1331_v57 = vsel %vm850_vm4, %v1330_v7, %v1329_v3  ;;  %v5227_v53 = vpop.eup %5226  ;;  %v8029_v11 = vld [vmem:[#allocation18_spill] sm:$0xff]  ;;  %v8032_v48 = vld [vmem:[#allocation21_spill] sm:$0xff]  ;;  %v8034_v25 = vld [vmem:[#allocation23_spill] sm:$0xff] }
 0x279   :  { %v1332_v20 = vrot.slane %v1313_v31, 4  ;;  %v8033_v7 = vld [vmem:[#allocation22_spill] sm:$0xff]  ;;  %v8035_v31 = vld [vmem:[#allocation24_spill] sm:$0xff]  ;;  %v8036_v3 = vld [vmem:[#allocation25_spill] sm:$0xff] }
 0x27a   :  { %v1334_v51 = vrot.slane %v1314_v13, 3  ;;  %v8037_v13 = vld [vmem:[#allocation26_spill] sm:$0xff] }
 0x27b   :  { %v5229_v46 = vpop.eup %5228  ;;  %v1333_v22 = vsel %vm853_vm5, %v1332_v20, %v1331_v57  ;;  %v8038_v57 = vld [vmem:[#allocation27_spill] sm:$0xff]  ;;  %v8040_v20 = vld [vmem:[#allocation29_spill] sm:$0xff] }
 0x27c   :  { %v1315_v19 = vmul.f32 %v5229_v46, %v5227_v53  ;;  %v1335_v21 = vsel %vm856_vm6, %v1334_v51, %v1333_v22  ;;  %v8039_v53 = vld [vmem:[#allocation28_spill] sm:$0xff]  ;;  %v8041_v51 = vld [vmem:[#allocation30_spill] sm:$0xff]  ;;  %v8043_v22 = vld [vmem:[#allocation5_spill] sm:$0xff] }
 0x27d   :  { %v8042_v46 = vld [vmem:[#allocation4_spill] sm:$0xff] }
 0x27e   :  { %v1336_v10 = vrot.slane %v1315_v19, 2 }
 0x280   :  { %v1337_v37 = vsel %vm859_vm7, %v1336_v10, %v1335_v21 }
 0x281   :  { %1404 = vmatmul.mubr.f32.vlgmr.msra.gmra.mrb[20].mxu0 %v1337_v37  ;;  %1475 = vmatmul.mubr.f32.vlgmr.msra.gmra.mrb[20].mxu1 %v1337_v37 }
 0x282   :  { %4656 = vmatpush1.bf16.msra.mxu0 %v6106_v35  ;;  %4688 = vmatpush1.bf16.msra.mxu1 %v6115_v38 }
 0x283   :  { %4658 = vmatprep.subr.bf16.mxu0 %v6127_v42  ;;  %4690 = vmatprep.subr.bf16.mxu1 %v6142_v47 }
 0x284   :  { %1880 = vmatprep.mubr.f32.mxu0 %v6707_v59  ;;  %1951 = vmatprep.mubr.f32.mxu1 %v6707_v59  ;;  %v8026_v59 = vld [vmem:[#allocation15_spill] sm:$0xff] }
 0x286   :  { %4660 = vmatpush1.bf16.msra.mxu0 %v6152_v50  ;;  %4692 = vmatpush1.bf16.msra.mxu1 %v8017_v6 }
 0x287   :  { %4662 = vmatprep.subr.bf16.mxu0 %v8018_v39  ;;  %4694 = vmatprep.subr.bf16.mxu1 %v8019_v5 }
 0x28a   :  { %4664 = vmatpush1.bf16.msra.mxu0 %v8020_v56  ;;  %4696 = vmatpush1.bf16.msra.mxu1 %v8021_v52 }
 0x28b   :  { %4666 = vmatprep.subr.bf16.mxu0 %v8022_v30  ;;  %4698 = vmatprep.subr.bf16.mxu1 %v8023_v9 }
 0x28e   :  { %4668 = vmatpush1.bf16.msra.mxu0 %v8024_v60  ;;  %4700 = vmatpush1.bf16.msra.mxu1 %v8025_v41 }
 0x28f   :  { %4670 = vmatprep.subr.bf16.mxu0 %v8026_v59  ;;  %4702 = vmatprep.subr.bf16.mxu1 %v8027_v54 }
 0x292   :  { %4672 = vmatpush1.bf16.msra.mxu0 %v8028_v26  ;;  %4704 = vmatpush1.bf16.msra.mxu1 %v8029_v11 }
 0x293   :  { %4674 = vmatprep.subr.bf16.mxu0 %v8030_v63  ;;  %4706 = vmatprep.subr.bf16.mxu1 %v8031_v8 }
 0x296   :  { %4676 = vmatpush1.bf16.msra.mxu0 %v8032_v48  ;;  %4708 = vmatpush1.bf16.msra.mxu1 %v8033_v7 }
 0x297   :  { %4678 = vmatprep.subr.bf16.mxu0 %v8034_v25  ;;  %4710 = vmatprep.subr.bf16.mxu1 %v8035_v31 }
 0x29a   :  { %4680 = vmatpush1.bf16.msra.mxu0 %v8036_v3  ;;  %4712 = vmatpush1.bf16.msra.mxu1 %v8037_v13 }
 0x29b   :  { %4682 = vmatprep.subr.bf16.mxu0 %v8038_v57  ;;  %4714 = vmatprep.subr.bf16.mxu1 %v8039_v53 }
 0x29e   :  { %4684 = vmatpush1.bf16.msra.mxu0 %v8040_v20  ;;  %4716 = vmatpush1.bf16.msra.mxu1 %v8041_v51 }
 0x29f   :  { %4718 = vmatprep.subr.bf16.mxu0 %v8042_v46  ;;  %4750 = vmatprep.subr.bf16.mxu1 %v8043_v22 }
 0x354   :  { %v1405_v19 = vpop.f32.mrb[20].mxu0  ;;  %v6949_v21 = vpop.f32.mrb[20].mxu1 }
 0x355   :  { %v1485_v10 = vrot.slane %v1405_v19, 6  ;;  %v1489_v37 = vrot.slane %v1405_v19, 7  ;;  %v1493_v3 = vrot.slane %v1405_v19, 1  ;;  %v1497_v31 = vrot.slane %v1405_v19, 2  ;;  %v6951_v13 = vpop.f32.mrb[21].mxu0  ;;  %v6953_v57 = vpop.f32.mrb[21].mxu1 }
 0x356   :  { %v1501_v53 = vrot.slane %v1405_v19, 3  ;;  %v1505_v25 = vrot.slane %v1405_v19, 4  ;;  %v1509_v20 = vrot.slane %v1405_v19, 5  ;;  %v1553_v51 = vadd.f32 %v1405_v19, %v6519_v45 }
 0x357   :  { %v1545_v46 = vadd.f32 %v1485_v10, %v8011_v12  ;;  %v1549_v22 = vadd.f32 %v1489_v37, %v6517_v49  ;;  %v1557_v7 = vadd.f32 %v1493_v3, %v6521_v40  ;;  %v1561_v48 = vadd.f32 %v1497_v31, %v6523_v2 }
 0x358   :  { %v1565_v8 = vadd.f32 %v1501_v53, %v6525_v36  ;;  %v1569_v63 = vadd.f32 %v1505_v25, %v6527_v32  ;;  %v4303_v11 = vmul.f32 -1.442695, %v1553_v51  ;;  %v1573_v26 = vadd.f32 %v1509_v20, %v6529_v15  ;;  %v8051_v15 = vld [vmem:[#allocation54_spill] sm:$0xff] }
 0x359   :  { %v4301_v54 = vmul.f32 -1.442695, %v1545_v46  ;;  %v4302_v59 = vmul.f32 -1.442695, %v1549_v22  ;;  %v4304_v41 = vmul.f32 -1.442695, %v1557_v7 }
 0x35a   :  { %5230 = vpow2.f32 %v4303_v11  ;;  %v4305_v19 = vmul.f32 -1.442695, %v1561_v48  ;;  %v4306_v10 = vmul.f32 -1.442695, %v1565_v8  ;;  %v1487_v37 = vrot.slane %v6949_v21, 6  ;;  %v8044_v8 = vld [vmem:[#allocation45_spill] sm:$0xff] }
 0x35b   :  { %5232 = vpow2.f32 %v4301_v54  ;;  %v1491_v3 = vrot.slane %v6949_v21, 7  ;;  %v4307_v31 = vmul.f32 -1.442695, %v1569_v63  ;;  %v4308_v53 = vmul.f32 -1.442695, %v1573_v26  ;;  %v8045_v63 = vld [vmem:[#allocation43_spill] sm:$0xff] }
 0x35c   :  { %5234 = vpow2.f32 %v4302_v59  ;;  %v1495_v25 = vrot.slane %v6949_v21, 1  ;;  %v1499_v20 = vrot.slane %v6949_v21, 2  ;;  %v1547_v51 = vadd.f32 %v1487_v37, %v6553_v27  ;;  %v8050_v27 = vld [vmem:[#allocation47_spill] sm:$0xff] }
 0x35d   :  { %5236 = vpow2.f32 %v4304_v41  ;;  %v1551_v11 = vadd.f32 %v1491_v3, %v6558_v17  ;;  %v1555_v54 = vadd.f32 %v6949_v21, %v6563_v4  ;;  %v1503_v48 = vrot.slane %v6949_v21, 3  ;;  %v8048_v4 = vld [vmem:[#allocation39_spill] sm:$0xff] }
 0x35e   :  { %5238 = vpow2.f32 %v4305_v19  ;;  %v1559_v59 = vadd.f32 %v1495_v25, %v8044_v8  ;;  %v1563_v41 = vadd.f32 %v1499_v20, %v8045_v63  ;;  %v1507_v7 = vrot.slane %v6949_v21, 4  ;;  %v8047_v63 = vld [vmem:[#allocation51_spill] sm:$0xff] }
 0x35f   :  { %5240 = vpow2.f32 %v4306_v10  ;;  %v1486_v37 = vrot.slane %v6951_v13, 6  ;;  %v1490_v25 = vrot.slane %v6951_v13, 7 }
 0x360   :  { %5242 = vpow2.f32 %v4307_v31 }
 0x361   :  { %5244 = vpow2.f32 %v4308_v53  ;;  %v1511_v53 = vrot.slane %v6949_v21, 5  ;;  %v1502_v21 = vrot.slane %v6951_v13, 3  ;;  %v1546_v17 = vadd.f32 %v1486_v37, %v8048_v4  ;;  %v8052_v37 = vld [vmem:[#allocation48_spill] sm:$0xff] }
 0x362   :  { %5246 = vtanh.f32 %v1547_v51 }
 0x363   :  { %5248 = vtanh.f32 %v1551_v11  ;;  %v8046_v11 = vld [vmem:[#allocation50_spill] sm:$0xff]  ;;  %v1575_v32 = vadd.f32 %v1511_v53, %v8051_v15  ;;  %v4309_v2 = vmul.f32 -1.442695, %v1546_v17 }
 0x364   :  { %v5231_v26 = vpop.eup %5230  ;;  %5250 = vtanh.f32 %v1555_v54  ;;  %v1567_v54 = vadd.f32 %v1503_v48, %v8046_v11  ;;  %v1506_v48 = vrot.slane %v6951_v13, 4  ;;  %v1510_v11 = vrot.slane %v6951_v13, 5 }
 0x365   :  { %v5233_v46 = vpop.eup %5232  ;;  %v1603_v22 = vadd.f32 1.0, %v5231_v26  ;;  %5252 = vtanh.f32 %v1559_v59  ;;  %v1571_v26 = vadd.f32 %v1507_v7, %v8047_v63  ;;  %v8049_v7 = vld [vmem:[#allocation46_spill] sm:$0xff] }
 0x366   :  { %v5235_v19 = vpop.eup %5234  ;;  %v1601_v10 = vadd.f32 1.0, %v5233_v46  ;;  %5254 = vtanh.f32 %v1563_v41  ;;  %v1494_v41 = vrot.slane %v6951_v13, 1  ;;  %v1498_v46 = vrot.slane %v6951_v13, 2 }
 0x367   :  { %v5237_v3 = vpop.eup %5236  ;;  %v1602_v31 = vadd.f32 1.0, %v5235_v19  ;;  %5256 = vrcp.f32 %v1603_v22  ;;  %v1550_v63 = vadd.f32 %v1490_v25, %v8049_v7  ;;  %v1488_v25 = vrot.slane %v6953_v57, 6 }
 0x368   :  { %v5239_v20 = vpop.eup %5238  ;;  %v1604_v51 = vadd.f32 1.0, %v5237_v3  ;;  %5258 = vrcp.f32 %v1601_v10  ;;  %v1558_v4 = vadd.f32 %v1494_v41, %v8052_v37  ;;  %v1574_v41 = vadd.f32 %v1510_v11, %v8015_v61 }
 0x369   :  { %v5241_v59 = vpop.eup %5240  ;;  %v1605_v8 = vadd.f32 1.0, %v5239_v20  ;;  %5260 = vrcp.f32 %v1602_v31  ;;  %v4310_v7 = vmul.f32 -1.442695, %v1550_v63  ;;  %v1500_v63 = vrot.slane %v6953_v57, 2 }
 0x36a   :  { %v5243_v19 = vpop.eup %5242  ;;  %v1606_v22 = vadd.f32 1.0, %v5241_v59  ;;  %5262 = vrcp.f32 %v1604_v51  ;;  %v1554_v59 = vadd.f32 %v6951_v13, %v8050_v27  ;;  %v1492_v13 = vrot.slane %v6953_v57, 7 }
 0x36b   :  { %v5245_v3 = vpop.eup %5244  ;;  %v1607_v10 = vadd.f32 1.0, %v5243_v19  ;;  %5264 = vrcp.f32 %v1605_v8  ;;  %v8053_v19 = vld [vmem:[#allocation49_spill] sm:$0xff] }
 0x36c   :  { %v5247_v20 = vpop.eup %5246  ;;  %v1608_v31 = vadd.f32 1.0, %v5245_v3  ;;  %5266 = vrcp.f32 %v1606_v22  ;;  %v1562_v8 = vadd.f32 %v1498_v46, %v8053_v19  ;;  %v1566_v22 = vadd.f32 %v1502_v21, %v6629_v62  ;;  %v8055_v21 = vld [vmem:[#allocation44_spill] sm:$0xff] }
 0x36d   :  { %v5249_v51 = vpop.eup %5248  ;;  %5268 = vrcp.f32 %v1607_v10  ;;  %v8054_v10 = vld [vmem:[#allocation53_spill] sm:$0xff]  ;;  %v4311_v37 = vmul.f32 -1.442695, %v1554_v59  ;;  %v1496_v19 = vrot.slane %v6953_v57, 1  ;;  %v1548_v62 = vadd.f32 %v1488_v25, %v8055_v21 }
 0x36e   :  { %v5251_v36 = vpop.eup %5250  ;;  %5270 = vrcp.f32 %v1608_v31  ;;  %v1570_v53 = vadd.f32 %v1506_v48, %v8054_v10  ;;  %v4312_v31 = vmul.f32 -1.442695, %v1558_v4  ;;  %v4313_v17 = vmul.f32 -1.442695, %v1562_v8 }
 0x36f   :  { %v5253_v3 = vpop.eup %5252  ;;  %5272 = vtanh.f32 %v1567_v54  ;;  %v4314_v11 = vmul.f32 -1.442695, %v1566_v22  ;;  %v1552_v48 = vadd.f32 %v1492_v13, %v6588_v34  ;;  %v4316_v8 = vmul.f32 -1.442695, %v1574_v41 }
 0x370   :  { %v5255_v27 = vpop.eup %5254  ;;  %5274 = vtanh.f32 %v1571_v26  ;;  %v4315_v59 = vmul.f32 -1.442695, %v1570_v53  ;;  %v1560_v25 = vadd.f32 %v1496_v19, %v6606_v28 }
 0x371   :  { %v5257_v46 = vpop.eup %5256  ;;  %5276 = vtanh.f32 %v1575_v32 }
 0x372   :  { %v5259_v15 = vpop.eup %5258  ;;  %v6998_v54 = vmul.f32 %v5257_v46, %v5251_v36  ;;  %5278 = vpow2.f32 %v4309_v2  ;;  %v1556_v36 = vadd.f32 %v6953_v57, %v6597_v43  ;;  %v4320_v41 = vmul.f32 -1.442695, %v1560_v25 }
 0x373   :  { %v5261_v26 = vpop.eup %5260  ;;  %v7002_v45 = vmul.f32 %v5259_v15, %v5247_v20  ;;  %5280 = vpow2.f32 %v4310_v7  ;;  %v1564_v7 = vadd.f32 %v1500_v63, %v6620_v29  ;;  %v4317_v20 = vmul.f32 -1.442695, %v1548_v62 }
 0x374   :  { %v5263_v32 = vpop.eup %5262  ;;  %v7005_v4 = vmul.f32 %v5261_v26, %v5249_v51  ;;  %5282 = vpow2.f32 %v4311_v37  ;;  %v4318_v37 = vmul.f32 -1.442695, %v1552_v48  ;;  %v4319_v53 = vmul.f32 -1.442695, %v1556_v36 }
 0x375   :  { %v5265_v2 = vpop.eup %5264  ;;  %5284 = vpow2.f32 %v4312_v31  ;;  %v7010_v46 = vmul.f32 %v5263_v32, %v5253_v3  ;;  %v4321_v19 = vmul.f32 -1.442695, %v1564_v7  ;;  %v1504_v63 = vrot.slane %v6953_v57, 3 }
 0x376   :  { %v5267_v15 = vpop.eup %5266  ;;  %5286 = vpow2.f32 %v4313_v17  ;;  %v7013_v22 = vmul.f32 %v5265_v2, %v5255_v27 }
 0x377   :  { %v5269_v51 = vpop.eup %5268  ;;  %5288 = vpow2.f32 %v4314_v11  ;;  %v1508_v11 = vrot.slane %v6953_v57, 4 }
 0x378   :  { %v5271_v13 = vpop.eup %5270  ;;  %5290 = vpow2.f32 %v4315_v59 }
 0x379   :  { %v5273_v26 = vpop.eup %5272  ;;  %5292 = vpow2.f32 %v4316_v8 }
 0x37a   :  { %v5275_v31 = vpop.eup %5274  ;;  %5294 = vpow2.f32 %v4317_v20  ;;  %v7015_v3 = vmul.f32 %v5273_v26, %v5267_v15  ;;  %v1568_v15 = vadd.f32 %v1504_v63, %v6687_v18 }
 0x37b   :  { %v5277_v17 = vpop.eup %5276  ;;  %5296 = vpow2.f32 %v4318_v37  ;;  %v7018_v27 = vmul.f32 %v5275_v31, %v5269_v51  ;;  %v1572_v51 = vadd.f32 %v1508_v11, %v6694_v23 }
 0x37c   :  { %v5279_v62 = vpop.eup %5278  ;;  %5298 = vpow2.f32 %v4319_v53  ;;  %v7021_v48 = vmul.f32 %v5277_v17, %v5271_v13  ;;  %v4322_v17 = vmul.f32 -1.442695, %v1568_v15 }
 0x37d   :  { %v5281_v32 = vpop.eup %5280  ;;  %v1649_v59 = vadd.f32 1.0, %v5279_v62  ;;  %5300 = vpow2.f32 %v4320_v41  ;;  %v1512_v41 = vrot.slane %v6953_v57, 5  ;;  %v4323_v63 = vmul.f32 -1.442695, %v1572_v51 }
 0x37e   :  { %v5283_v36 = vpop.eup %5282  ;;  %v1650_v2 = vadd.f32 1.0, %v5281_v32  ;;  %5302 = vpow2.f32 %v4321_v19 }
 0x37f   :  { %v5285_v8 = vpop.eup %5284  ;;  %v1651_v25 = vadd.f32 1.0, %v5283_v36  ;;  %5304 = vrcp.f32 %v1649_v59 }
 0x380   :  { %v5287_v7 = vpop.eup %5286  ;;  %v1652_v20 = vadd.f32 1.0, %v5285_v8  ;;  %5306 = vrcp.f32 %v1650_v2  ;;  %v1576_v2 = vadd.f32 %v1512_v41, %v6703_v33 }
 0x381   :  { %v5289_v37 = vpop.eup %5288  ;;  %v1653_v53 = vadd.f32 1.0, %v5287_v7  ;;  %5308 = vrcp.f32 %v1651_v25 }
 0x382   :  { %v5291_v13 = vpop.eup %5290  ;;  %v1654_v26 = vadd.f32 1.0, %v5289_v37  ;;  %5310 = vrcp.f32 %v1652_v20  ;;  %v1737_v20 = vrot.slane %v6874_v55, 7  ;;  %v1741_v55 = vrot.slane %v6890_v16, 7 }
 0x383   :  { %v5293_v31 = vpop.eup %5292  ;;  %v1655_v19 = vadd.f32 1.0, %v5291_v13  ;;  %5312 = vrcp.f32 %v1653_v53  ;;  %v1738_v53 = vrot.slane %v6878_v44, 7 }
 0x384   :  { %v5295_v62 = vpop.eup %5294  ;;  %v1656_v32 = vadd.f32 1.0, %v5293_v31  ;;  %5314 = vrcp.f32 %v1654_v26  ;;  %v1739_v26 = vrot.slane %v6882_v0, 7  ;;  %v4324_v31 = vmul.f32 -1.442695, %v1576_v2 }
 0x385   :  { %v5297_v59 = vpop.eup %5296  ;;  %5316 = vrcp.f32 %v1655_v19  ;;  %v1705_v36 = vadd.f32 1.0, %v5295_v62 }
 0x386   :  { %v5299_v11 = vpop.eup %5298  ;;  %5318 = vrcp.f32 %v1656_v32  ;;  %v1706_v8 = vadd.f32 1.0, %v5297_v59 }
 0x387   :  { %v5301_v25 = vpop.eup %5300  ;;  %5320 = vpow2.f32 %v4322_v17  ;;  %v1707_v7 = vadd.f32 1.0, %v5299_v11  ;;  %v1740_v17 = vrot.slane %v6886_v14, 7  ;;  %v1743_v14 = vrot.slane %v6898_v24, 7 }
 0x388   :  { %v5303_v57 = vpop.eup %5302  ;;  %5322 = vpow2.f32 %v4323_v63  ;;  %v1708_v15 = vadd.f32 1.0, %v5301_v25 }
 0x389   :  { %v5305_v37 = vpop.eup %5304  ;;  %v1709_v51 = vadd.f32 1.0, %v5303_v57  ;;  %5324 = vrcp.f32 %v1705_v36  ;;  %v1742_v36 = vrot.slane %v6894_v58, 7 }
 0x38a   :  { %v5307_v13 = vpop.eup %5306  ;;  %5326 = vrcp.f32 %v1706_v8  ;;  %v1753_v41 = vmul.f32 %v5305_v37, %v1737_v20 }
 0x38b   :  { %v5309_v19 = vpop.eup %5308  ;;  %5328 = vrcp.f32 %v1707_v7  ;;  %v1754_v62 = vmul.f32 %v5307_v13, %v1738_v53 }
 0x38c   :  { %v5311_v32 = vpop.eup %5310  ;;  %5330 = vrcp.f32 %v1708_v15  ;;  %v1755_v63 = vmul.f32 %v5309_v19, %v1739_v26  ;;  %v7033_v44 = vadd.f32 %v7002_v45, %v1753_v41  ;;  %v1744_v45 = vrot.slane %v6902_v1, 7 }
 0x38d   :  { %v5313_v59 = vpop.eup %5312  ;;  %5332 = vrcp.f32 %v1709_v51  ;;  %v1756_v0 = vmul.f32 %v5311_v32, %v1740_v17  ;;  %v7037_v11 = vadd.f32 %v7005_v4, %v1754_v62 }
 0x38e   :  { %v5315_v2 = vpop.eup %5314  ;;  %5334 = vpow2.f32 %v4324_v31  ;;  %v1757_v8 = vmul.f32 %v5313_v59, %v1741_v55  ;;  %v7041_v16 = vadd.f32 %v6998_v54, %v1755_v63 }
 0x38f   :  { %v5317_v25 = vpop.eup %5316  ;;  %v1758_v7 = vmul.f32 %v5315_v2, %v1742_v36  ;;  %v7045_v57 = vadd.f32 %v7010_v46, %v1756_v0  ;;  %5336 = vtanh.f32 %v7033_v44 }
 0x390   :  { %v5319_v58 = vpop.eup %5318  ;;  %v1759_v4 = vmul.f32 %v5317_v25, %v1743_v14  ;;  %v7049_v20 = vadd.f32 %v7013_v22, %v1757_v8  ;;  %5338 = vtanh.f32 %v7037_v11 }
 0x391   :  { %v5321_v24 = vpop.eup %5320  ;;  %v1760_v15 = vmul.f32 %v5319_v58, %v1744_v45  ;;  %v7053_v54 = vadd.f32 %v7015_v3, %v1758_v7  ;;  %5340 = vtanh.f32 %v7041_v16 }
 0x392   :  { %v5323_v1 = vpop.eup %5322  ;;  %v1710_v37 = vadd.f32 1.0, %v5321_v24  ;;  %v7057_v46 = vadd.f32 %v7018_v27, %v1759_v4  ;;  %5342 = vtanh.f32 %v7045_v57 }
 0x393   :  { %v5325_v53 = vpop.eup %5324  ;;  %v1711_v51 = vadd.f32 1.0, %v5323_v1  ;;  %v7061_v22 = vadd.f32 %v7021_v48, %v1760_v15  ;;  %5344 = vtanh.f32 %v7049_v20 }
 0x394   :  { %v5327_v13 = vpop.eup %5326  ;;  %5346 = vrcp.f32 %v1710_v37 }
 0x395   :  { %v5329_v3 = vpop.eup %5328  ;;  %5348 = vrcp.f32 %v1711_v51 }
 0x396   :  { %v5331_v26 = vpop.eup %5330  ;;  %5350 = vtanh.f32 %v7053_v54 }
 0x397   :  { %v5333_v31 = vpop.eup %5332  ;;  %5352 = vtanh.f32 %v7057_v46 }
 0x398   :  { %v5335_v27 = vpop.eup %5334  ;;  %5354 = vtanh.f32 %v7061_v22 }
 0x399   :  { %v5337_v41 = vpop.eup %5336  ;;  %v1712_v19 = vadd.f32 1.0, %v5335_v27 }
 0x39a   :  { %v5339_v17 = vpop.eup %5338  ;;  %v1785_v48 = vmul.f32 %v5337_v41, %v5325_v53 }
 0x39b   :  { %v5341_v62 = vpop.eup %5340  ;;  %5356 = vrcp.f32 %v1712_v19  ;;  %v1786_v32 = vmul.f32 %v5339_v17, %v5327_v13 }
 0x39c   :  { %v5343_v55 = vpop.eup %5342  ;;  %v1787_v63 = vmul.f32 %v5341_v62, %v5329_v3  ;;  %v1801_v59 = vrot.slane %v1785_v48, 2  ;;  %v7078_v62 = vld [vmem:[#allocation2] sm:$0xff] }
 0x39d   :  { %v5345_v36 = vpop.eup %5344  ;;  %v1788_v0 = vmul.f32 %v5343_v55, %v5331_v26  ;;  %v1802_v2 = vrot.slane %v1786_v32, 1  ;;  %v8056_v32 = vld [vmem:[#allocation14_spill] sm:$0xff]  ;;  %v8057_v55 = vld [vmem:[#allocation15_spill] sm:$0xff] }
 0x39e   :  { %v5347_v14 = vpop.eup %5346  ;;  %v1789_v8 = vmul.f32 %v5345_v36, %v5333_v31  ;;  %v8060_v36 = vld [vmem:[#allocation18_spill] sm:$0xff] }
 0x39f   :  { %v5349_v25 = vpop.eup %5348  ;;  %v1803_v45 = vsel %vm841_vm1, %v1802_v2, %v1801_v59  ;;  %v1805_v7 = vrot.slane %v1788_v0, 7  ;;  %v8059_v59 = vld [vmem:[#allocation17_spill] sm:$0xff]  ;;  %v8061_v0 = vld [vmem:[#allocation19_spill] sm:$0xff]  ;;  %v8062_v2 = vld [vmem:[#allocation20_spill] sm:$0xff] }
 0x3a0   :  { %v5351_v58 = vpop.eup %5350  ;;  %v1804_v4 = vsel %vm844_vm2, %v1787_v63, %v1803_v45  ;;  %v1807_v24 = vrot.slane %v1789_v8, 6  ;;  %v8058_v63 = vld [vmem:[#allocation16_spill] sm:$0xff]  ;;  %v8064_v8 = vld [vmem:[#allocation22_spill] sm:$0xff] }
 0x3a1   :  { %v5353_v15 = vpop.eup %5352  ;;  %v1790_v1 = vmul.f32 %v5351_v58, %v5347_v14  ;;  %v1806_v37 = vsel %vm847_vm3, %v1805_v7, %v1804_v4  ;;  %v8063_v14 = vld [vmem:[#allocation21_spill] sm:$0xff]  ;;  %v8066_v45 = vld [vmem:[#allocation24_spill] sm:$0xff]  ;;  %v8068_v58 = vld [vmem:[#allocation26_spill] sm:$0xff] }
 0x3a2   :  { %v1791_v53 = vmul.f32 %v5353_v15, %v5349_v25  ;;  %v1808_v51 = vsel %vm850_vm4, %v1807_v24, %v1806_v37  ;;  %v5355_v13 = vpop.eup %5354  ;;  %v8065_v25 = vld [vmem:[#allocation23_spill] sm:$0xff]  ;;  %v8067_v7 = vld [vmem:[#allocation25_spill] sm:$0xff]  ;;  %v8070_v24 = vld [vmem:[#allocation28_spill] sm:$0xff] }
 0x3a3   :  { %v1809_v3 = vrot.slane %v1790_v1, 5  ;;  %v8069_v4 = vld [vmem:[#allocation27_spill] sm:$0xff]  ;;  %v8071_v15 = vld [vmem:[#allocation29_spill] sm:$0xff]  ;;  %v8072_v1 = vld [vmem:[#allocation30_spill] sm:$0xff] }
 0x3a4   :  { %v1811_v26 = vrot.slane %v1791_v53, 4  ;;  %v8073_v37 = vld [vmem:[#allocation4_spill] sm:$0xff]  ;;  %v8074_v53 = vld [vmem:[#allocation5_spill] sm:$0xff] }
 0x3a5   :  { %v5357_v27 = vpop.eup %5356  ;;  %v1810_v31 = vsel %vm853_vm5, %v1809_v3, %v1808_v51 }
 0x3a6   :  { %v1792_v41 = vmul.f32 %v5357_v27, %v5355_v13  ;;  %v1812_v19 = vsel %vm856_vm6, %v1811_v26, %v1810_v31 }
 0x3a8   :  { %v1813_v17 = vrot.slane %v1792_v41, 3 }
 0x3aa   :  { %v1814_v48 = vsel %vm859_vm7, %v1813_v17, %v1812_v19 }
 0x3ab   :  { %1881 = vmatmul.mubr.f32.vlgmr.msra.gmra.mrb[22].mxu0 %v1814_v48  ;;  %1952 = vmatmul.mubr.f32.vlgmr.msra.gmra.mrb[22].mxu1 %v1814_v48 }
 0x3ac   :  { %4720 = vmatpush1.bf16.msra.mxu0 %v6106_v35  ;;  %4752 = vmatpush1.bf16.msra.mxu1 %v6115_v38 }
 0x3ad   :  { %4722 = vmatprep.subr.bf16.mxu0 %v6127_v42  ;;  %4754 = vmatprep.subr.bf16.mxu1 %v6142_v47 }
 0x3ae   :  { %2357 = vmatprep.mubr.f32.mxu0 %v7078_v62  ;;  %2428 = vmatprep.mubr.f32.mxu1 %v7078_v62 }
 0x3b0   :  { %4724 = vmatpush1.bf16.msra.mxu0 %v6152_v50  ;;  %4756 = vmatpush1.bf16.msra.mxu1 %v8017_v6 }
 0x3b1   :  { %4726 = vmatprep.subr.bf16.mxu0 %v8018_v39  ;;  %4758 = vmatprep.subr.bf16.mxu1 %v8019_v5 }
 0x3b4   :  { %4728 = vmatpush1.bf16.msra.mxu0 %v8020_v56  ;;  %4760 = vmatpush1.bf16.msra.mxu1 %v8021_v52 }
 0x3b5   :  { %4730 = vmatprep.subr.bf16.mxu0 %v8022_v30  ;;  %4762 = vmatprep.subr.bf16.mxu1 %v8023_v9 }
 0x3b8   :  { %4732 = vmatpush1.bf16.msra.mxu0 %v8024_v60  ;;  %4764 = vmatpush1.bf16.msra.mxu1 %v8056_v32 }
 0x3b9   :  { %4734 = vmatprep.subr.bf16.mxu0 %v8057_v55  ;;  %4766 = vmatprep.subr.bf16.mxu1 %v8058_v63 }
 0x3bc   :  { %4736 = vmatpush1.bf16.msra.mxu0 %v8059_v59  ;;  %4768 = vmatpush1.bf16.msra.mxu1 %v8060_v36 }
 0x3bd   :  { %4738 = vmatprep.subr.bf16.mxu0 %v8061_v0  ;;  %4770 = vmatprep.subr.bf16.mxu1 %v8062_v2  ;;  %v8079_v0 = vld [vmem:[#allocation38_spill] sm:$0xff] }
 0x3c0   :  { %4740 = vmatpush1.bf16.msra.mxu0 %v8063_v14  ;;  %4772 = vmatpush1.bf16.msra.mxu1 %v8064_v8  ;;  %v8078_v8 = vld [vmem:[#allocation37_spill] sm:$0xff] }
 0x3c1   :  { %4742 = vmatprep.subr.bf16.mxu0 %v8065_v25  ;;  %4774 = vmatprep.subr.bf16.mxu1 %v8066_v45  ;;  %v8077_v45 = vld [vmem:[#allocation36_spill] sm:$0xff] }
 0x3c4   :  { %4744 = vmatpush1.bf16.msra.mxu0 %v8067_v7  ;;  %4776 = vmatpush1.bf16.msra.mxu1 %v8068_v58  ;;  %v8076_v58 = vld [vmem:[#allocation35_spill] sm:$0xff] }
 0x3c5   :  { %4746 = vmatprep.subr.bf16.mxu0 %v8069_v4  ;;  %4778 = vmatprep.subr.bf16.mxu1 %v8070_v24  ;;  %v8075_v24 = vld [vmem:[#allocation33_spill] sm:$0xff] }
 0x3c8   :  { %4748 = vmatpush1.bf16.msra.mxu0 %v8071_v15  ;;  %4780 = vmatpush1.bf16.msra.mxu1 %v8072_v1 }
 0x3c9   :  { %4782 = vmatprep.subr.bf16.mxu0 %v8073_v37  ;;  %4814 = vmatprep.subr.bf16.mxu1 %v8074_v53 }
 0x47e   :  { %v1882_v51 = vpop.f32.mrb[22].mxu0  ;;  %v7110_v13 = vpop.f32.mrb[22].mxu1 }
 0x47f   :  { %v1962_v3 = vrot.slane %v1882_v51, 5  ;;  %v1966_v26 = vrot.slane %v1882_v51, 6  ;;  %v1970_v27 = vrot.slane %v1882_v51, 7  ;;  %v1974_v31 = vrot.slane %v1882_v51, 1  ;;  %v7112_v41 = vpop.f32.mrb[23].mxu0  ;;  %v7114_v19 = vpop.f32.mrb[23].mxu1 }
 0x480   :  { %v1978_v17 = vrot.slane %v1882_v51, 2  ;;  %v1982_v48 = vrot.slane %v1882_v51, 3  ;;  %v1986_v15 = vrot.slane %v1882_v51, 4  ;;  %v2034_v1 = vadd.f32 %v1882_v51, %v6521_v40 }
 0x481   :  { %v2022_v37 = vadd.f32 %v1962_v3, %v8011_v12  ;;  %v2026_v53 = vadd.f32 %v1966_v26, %v6517_v49  ;;  %v2030_v4 = vadd.f32 %v1970_v27, %v8075_v24  ;;  %v2038_v7 = vadd.f32 %v1974_v31, %v8076_v58 }
 0x482   :  { %v2042_v25 = vadd.f32 %v1978_v17, %v8077_v45  ;;  %v2046_v14 = vadd.f32 %v1982_v48, %v8078_v8  ;;  %v4328_v2 = vmul.f32 -1.442695, %v2034_v1  ;;  %v2050_v36 = vadd.f32 %v1986_v15, %v8079_v0  ;;  %v8080_v1 = vld [vmem:[#allocation40_spill] sm:$0xff]  ;;  %v8088_v8 = vld [vmem:[#allocation39_spill] sm:$0xff] }
 0x483   :  { %v4325_v59 = vmul.f32 -1.442695, %v2022_v37  ;;  %v4326_v63 = vmul.f32 -1.442695, %v2026_v53  ;;  %v4327_v55 = vmul.f32 -1.442695, %v2030_v4 }
 0x484   :  { %5358 = vpow2.f32 %v4328_v2  ;;  %v4329_v51 = vmul.f32 -1.442695, %v2038_v7  ;;  %v4330_v3 = vmul.f32 -1.442695, %v2042_v25  ;;  %v1964_v26 = vrot.slane %v7110_v13, 5  ;;  %v8081_v2 = vld [vmem:[#allocation41_spill] sm:$0xff] }
 0x485   :  { %5360 = vpow2.f32 %v4325_v59  ;;  %v1968_v27 = vrot.slane %v7110_v13, 6  ;;  %v4331_v31 = vmul.f32 -1.442695, %v2046_v14  ;;  %v1972_v17 = vrot.slane %v7110_v13, 7  ;;  %v8082_v59 = vld [vmem:[#allocation42_spill] sm:$0xff]  ;;  %v8083_v4 = vld [vmem:[#allocation45_spill] sm:$0xff] }
 0x486   :  { %5362 = vpow2.f32 %v4326_v63  ;;  %v4332_v48 = vmul.f32 -1.442695, %v2050_v36  ;;  %v1976_v15 = vrot.slane %v7110_v13, 1  ;;  %v2024_v37 = vadd.f32 %v1964_v26, %v8080_v1  ;;  %v8084_v14 = vld [vmem:[#allocation43_spill] sm:$0xff] }
 0x487   :  { %5364 = vpow2.f32 %v4327_v55  ;;  %v2028_v7 = vadd.f32 %v1968_v27, %v8081_v2  ;;  %v2032_v25 = vadd.f32 %v1972_v17, %v8082_v59  ;;  %v2036_v63 = vadd.f32 %v7110_v13, %v8083_v4 }
 0x488   :  { %5366 = vpow2.f32 %v4329_v51  ;;  %v2040_v53 = vadd.f32 %v1976_v15, %v8084_v14  ;;  %v1980_v36 = vrot.slane %v7110_v13, 2  ;;  %v1988_v17 = vrot.slane %v7110_v13, 4 }
 0x489   :  { %5368 = vpow2.f32 %v4330_v3  ;;  %v1984_v3 = vrot.slane %v7110_v13, 3  ;;  %v1971_v59 = vrot.slane %v7112_v41, 7 }
 0x48a   :  { %5370 = vpow2.f32 %v4331_v31 }
 0x48b   :  { %5372 = vpow2.f32 %v4332_v48  ;;  %v1963_v48 = vrot.slane %v7112_v41, 5 }
 0x48c   :  { %5374 = vtanh.f32 %v2024_v37  ;;  %v1967_v37 = vrot.slane %v7112_v41, 6 }
 0x48d   :  { %5376 = vtanh.f32 %v2028_v7  ;;  %v2023_v45 = vadd.f32 %v1963_v48, %v8088_v8 }
 0x48e   :  { %v5359_v55 = vpop.eup %5358  ;;  %5378 = vtanh.f32 %v2032_v25  ;;  %v8085_v25 = vld [vmem:[#allocation50_spill] sm:$0xff] }
 0x48f   :  { %v5361_v51 = vpop.eup %5360  ;;  %v2081_v26 = vadd.f32 1.0, %v5359_v55  ;;  %5380 = vtanh.f32 %v2036_v63  ;;  %v2044_v55 = vadd.f32 %v1980_v36, %v8085_v25  ;;  %v1979_v36 = vrot.slane %v7112_v41, 2  ;;  %v8089_v25 = vld [vmem:[#allocation46_spill] sm:$0xff] }
 0x490   :  { %v5363_v27 = vpop.eup %5362  ;;  %v2078_v31 = vadd.f32 1.0, %v5361_v51  ;;  %5382 = vtanh.f32 %v2040_v53  ;;  %v8086_v51 = vld [vmem:[#allocation51_spill] sm:$0xff]  ;;  %v1975_v53 = vrot.slane %v7112_v41, 1  ;;  %v2027_v40 = vadd.f32 %v1967_v37, %v8089_v25 }
 0x491   :  { %v5365_v4 = vpop.eup %5364  ;;  %v2079_v15 = vadd.f32 1.0, %v5363_v27  ;;  %5384 = vrcp.f32 %v2081_v26  ;;  %v2048_v13 = vadd.f32 %v1984_v3, %v8086_v51  ;;  %v8087_v26 = vld [vmem:[#allocation54_spill] sm:$0xff]  ;;  %v1983_v3 = vrot.slane %v7112_v41, 3  ;;  %v8090_v51 = vld [vmem:[#allocation47_spill] sm:$0xff] }
 0x492   :  { %v5367_v7 = vpop.eup %5366  ;;  %v2080_v14 = vadd.f32 1.0, %v5365_v4  ;;  %5386 = vrcp.f32 %v2078_v31  ;;  %v2052_v27 = vadd.f32 %v1988_v17, %v8087_v26  ;;  %v2031_v24 = vadd.f32 %v1971_v59, %v8090_v51  ;;  %v8091_v17 = vld [vmem:[#allocation48_spill] sm:$0xff] }
 0x493   :  { %v5369_v63 = vpop.eup %5368  ;;  %v2082_v2 = vadd.f32 1.0, %v5367_v7  ;;  %5388 = vrcp.f32 %v2079_v15  ;;  %v2035_v48 = vadd.f32 %v7112_v41, %v8091_v17  ;;  %v4333_v8 = vmul.f32 -1.442695, %v2023_v45 }
 0x494   :  { %v5371_v1 = vpop.eup %5370  ;;  %v2083_v0 = vadd.f32 1.0, %v5369_v63  ;;  %5390 = vrcp.f32 %v2080_v14  ;;  %v1987_v14 = vrot.slane %v7112_v41, 4  ;;  %v1965_v37 = vrot.slane %v7114_v19, 5 }
 0x495   :  { %v5373_v4 = vpop.eup %5372  ;;  %v2084_v31 = vadd.f32 1.0, %v5371_v1  ;;  %5392 = vrcp.f32 %v2082_v2  ;;  %v8092_v1 = vld [vmem:[#allocation49_spill] sm:$0xff]  ;;  %v4334_v49 = vmul.f32 -1.442695, %v2027_v40  ;;  %v1969_v59 = vrot.slane %v7114_v19, 6 }
 0x496   :  { %v5375_v7 = vpop.eup %5374  ;;  %v2085_v15 = vadd.f32 1.0, %v5373_v4  ;;  %5394 = vrcp.f32 %v2083_v0  ;;  %v2039_v2 = vadd.f32 %v1975_v53, %v8092_v1  ;;  %v8093_v0 = vld [vmem:[#allocation52_spill] sm:$0xff]  ;;  %v2047_v51 = vadd.f32 %v1983_v3, %v8054_v10 }
 0x497   :  { %v5377_v63 = vpop.eup %5376  ;;  %5396 = vrcp.f32 %v2084_v31  ;;  %v2043_v25 = vadd.f32 %v1979_v36, %v8093_v0  ;;  %v4335_v12 = vmul.f32 -1.442695, %v2031_v24  ;;  %v1973_v41 = vrot.slane %v7114_v19, 7 }
 0x498   :  { %v5379_v26 = vpop.eup %5378  ;;  %5398 = vrcp.f32 %v2085_v15  ;;  %v2051_v45 = vadd.f32 %v1987_v14, %v8015_v61  ;;  %v4336_v15 = vmul.f32 -1.442695, %v2035_v48  ;;  %v4337_v1 = vmul.f32 -1.442695, %v2039_v2 }
 0x499   :  { %v5381_v4 = vpop.eup %5380  ;;  %5400 = vtanh.f32 %v2044_v55  ;;  %v1977_v40 = vrot.slane %v7114_v19, 1  ;;  %v2025_v36 = vadd.f32 %v1965_v37, %v8055_v21  ;;  %v4338_v24 = vmul.f32 -1.442695, %v2043_v25 }
 0x49a   :  { %v5383_v31 = vpop.eup %5382  ;;  %5402 = vtanh.f32 %v2048_v13  ;;  %v2029_v3 = vadd.f32 %v1969_v59, %v6588_v34  ;;  %v4339_v14 = vmul.f32 -1.442695, %v2047_v51  ;;  %v2033_v48 = vadd.f32 %v1973_v41, %v6597_v43 }
 0x49b   :  { %v5385_v53 = vpop.eup %5384  ;;  %5404 = vtanh.f32 %v2052_v27  ;;  %v4341_v25 = vmul.f32 -1.442695, %v2025_v36 }
 0x49c   :  { %v5387_v17 = vpop.eup %5386  ;;  %v7159_v55 = vmul.f32 %v5385_v53, %v5381_v4  ;;  %5406 = vpow2.f32 %v4333_v8  ;;  %v4340_v4 = vmul.f32 -1.442695, %v2051_v45  ;;  %v4343_v59 = vmul.f32 -1.442695, %v2033_v48 }
 0x49d   :  { %v5389_v13 = vpop.eup %5388  ;;  %v7163_v0 = vmul.f32 %v5387_v17, %v5375_v7  ;;  %5408 = vpow2.f32 %v4334_v49  ;;  %v2037_v7 = vadd.f32 %v7114_v19, %v6606_v28  ;;  %v2041_v49 = vadd.f32 %v1977_v40, %v6620_v29 }
 0x49e   :  { %v5391_v27 = vpop.eup %5390  ;;  %v7166_v10 = vmul.f32 %v5389_v13, %v5377_v63  ;;  %5410 = vpow2.f32 %v4335_v12  ;;  %v4342_v12 = vmul.f32 -1.442695, %v2029_v3  ;;  %v1981_v40 = vrot.slane %v7114_v19, 2 }
 0x49f   :  { %v5393_v2 = vpop.eup %5392  ;;  %v7169_v8 = vmul.f32 %v5391_v27, %v5379_v26  ;;  %5412 = vpow2.f32 %v4336_v15  ;;  %v4344_v41 = vmul.f32 -1.442695, %v2037_v7  ;;  %v4345_v45 = vmul.f32 -1.442695, %v2041_v49 }
 0x4a0   :  { %v5395_v17 = vpop.eup %5394  ;;  %5414 = vpow2.f32 %v4337_v1  ;;  %v7174_v37 = vmul.f32 %v5393_v2, %v5383_v31  ;;  %v1985_v13 = vrot.slane %v7114_v19, 3  ;;  %v2045_v7 = vadd.f32 %v1981_v40, %v6687_v18 }
 0x4a1   :  { %v5397_v63 = vpop.eup %5396  ;;  %5416 = vpow2.f32 %v4338_v24 }
 0x4a2   :  { %v5399_v51 = vpop.eup %5398  ;;  %5418 = vpow2.f32 %v4339_v14 }
 0x4a3   :  { %v5401_v26 = vpop.eup %5400  ;;  %5420 = vpow2.f32 %v4340_v4 }
 0x4a4   :  { %v5403_v53 = vpop.eup %5402  ;;  %5422 = vpow2.f32 %v4341_v25  ;;  %v7176_v15 = vmul.f32 %v5401_v26, %v5395_v17  ;;  %v2049_v25 = vadd.f32 %v1985_v13, %v6694_v23  ;;  %v1989_v26 = vrot.slane %v7114_v19, 4 }
 0x4a5   :  { %v5405_v1 = vpop.eup %5404  ;;  %5424 = vpow2.f32 %v4342_v12  ;;  %v7179_v31 = vmul.f32 %v5403_v53, %v5397_v63 }
 0x4a6   :  { %v5407_v36 = vpop.eup %5406  ;;  %5426 = vpow2.f32 %v4343_v59  ;;  %v7182_v24 = vmul.f32 %v5405_v1, %v5399_v51  ;;  %v4347_v40 = vmul.f32 -1.442695, %v2049_v25 }
 0x4a7   :  { %v5409_v3 = vpop.eup %5408  ;;  %v2126_v27 = vadd.f32 1.0, %v5407_v36  ;;  %5428 = vpow2.f32 %v4344_v41 }
 0x4a8   :  { %v5411_v14 = vpop.eup %5410  ;;  %v2127_v48 = vadd.f32 1.0, %v5409_v3  ;;  %5430 = vpow2.f32 %v4345_v45  ;;  %v4346_v45 = vmul.f32 -1.442695, %v2045_v7 }
 0x4a9   :  { %v5413_v2 = vpop.eup %5412  ;;  %v2128_v4 = vadd.f32 1.0, %v5411_v14  ;;  %5432 = vrcp.f32 %v2126_v27  ;;  %v2053_v14 = vadd.f32 %v1989_v26, %v6703_v33 }
 0x4aa   :  { %v5415_v17 = vpop.eup %5414  ;;  %v2129_v49 = vadd.f32 1.0, %v5413_v2  ;;  %5434 = vrcp.f32 %v2127_v48 }
 0x4ab   :  { %v5417_v63 = vpop.eup %5416  ;;  %v2130_v12 = vadd.f32 1.0, %v5415_v17  ;;  %5436 = vrcp.f32 %v2128_v4  ;;  %v2214_v17 = vrot.slane %v7033_v44, 7  ;;  %v2218_v44 = vrot.slane %v7049_v20, 7 }
 0x4ac   :  { %v5419_v51 = vpop.eup %5418  ;;  %v2131_v59 = vadd.f32 1.0, %v5417_v63  ;;  %5438 = vrcp.f32 %v2129_v49  ;;  %v2215_v63 = vrot.slane %v7037_v11, 7 }
 0x4ad   :  { %v5421_v41 = vpop.eup %5420  ;;  %v2132_v53 = vadd.f32 1.0, %v5419_v51  ;;  %5440 = vrcp.f32 %v2130_v12  ;;  %v2216_v51 = vrot.slane %v7041_v16, 7 }
 0x4ae   :  { %v5423_v1 = vpop.eup %5422  ;;  %v2133_v36 = vadd.f32 1.0, %v5421_v41  ;;  %5442 = vrcp.f32 %v2131_v59  ;;  %v4348_v59 = vmul.f32 -1.442695, %v2053_v14 }
 0x4af   :  { %v5425_v3 = vpop.eup %5424  ;;  %5444 = vrcp.f32 %v2132_v53  ;;  %v2182_v27 = vadd.f32 1.0, %v5423_v1  ;;  %v2217_v53 = vrot.slane %v7045_v57, 7  ;;  %v2220_v57 = vrot.slane %v7057_v46, 7 }
 0x4b0   :  { %v5427_v13 = vpop.eup %5426  ;;  %5446 = vrcp.f32 %v2133_v36  ;;  %v2183_v48 = vadd.f32 1.0, %v5425_v3  ;;  %v2219_v3 = vrot.slane %v7053_v54, 7 }
 0x4b1   :  { %v5429_v2 = vpop.eup %5428  ;;  %5448 = vpow2.f32 %v4346_v45  ;;  %v2184_v4 = vadd.f32 1.0, %v5427_v13 }
 0x4b2   :  { %v5431_v19 = vpop.eup %5430  ;;  %5450 = vpow2.f32 %v4347_v40  ;;  %v2185_v7 = vadd.f32 1.0, %v5429_v2 }
 0x4b3   :  { %v5433_v49 = vpop.eup %5432  ;;  %v2186_v25 = vadd.f32 1.0, %v5431_v19  ;;  %5452 = vrcp.f32 %v2182_v27 }
 0x4b4   :  { %v5435_v12 = vpop.eup %5434  ;;  %5454 = vrcp.f32 %v2183_v48  ;;  %v2230_v26 = vmul.f32 %v5433_v49, %v2214_v17 }
 0x4b5   :  { %v5437_v41 = vpop.eup %5436  ;;  %5456 = vrcp.f32 %v2184_v4  ;;  %v2231_v45 = vmul.f32 %v5435_v12, %v2215_v63 }
 0x4b6   :  { %v5439_v1 = vpop.eup %5438  ;;  %5458 = vrcp.f32 %v2185_v7  ;;  %v2232_v36 = vmul.f32 %v5437_v41, %v2216_v51  ;;  %v7194_v11 = vadd.f32 %v7163_v0, %v2230_v26  ;;  %v2221_v0 = vrot.slane %v7061_v22, 7 }
 0x4b7   :  { %v5441_v40 = vpop.eup %5440  ;;  %5460 = vrcp.f32 %v2186_v25  ;;  %v2233_v16 = vmul.f32 %v5439_v1, %v2217_v53  ;;  %v7198_v27 = vadd.f32 %v7166_v10, %v2231_v45 }
 0x4b8   :  { %v5443_v13 = vpop.eup %5442  ;;  %5462 = vpow2.f32 %v4348_v59  ;;  %v2234_v14 = vmul.f32 %v5441_v40, %v2218_v44  ;;  %v7202_v20 = vadd.f32 %v7169_v8, %v2232_v36 }
 0x4b9   :  { %v5445_v48 = vpop.eup %5444  ;;  %v2235_v2 = vmul.f32 %v5443_v13, %v2219_v3  ;;  %v7206_v4 = vadd.f32 %v7159_v55, %v2233_v16  ;;  %5464 = vtanh.f32 %v7194_v11 }
 0x4ba   :  { %v5447_v54 = vpop.eup %5446  ;;  %v2236_v10 = vmul.f32 %v5445_v48, %v2220_v57  ;;  %v7210_v19 = vadd.f32 %v7174_v37, %v2234_v14  ;;  %5466 = vtanh.f32 %v7198_v27 }
 0x4bb   :  { %v5449_v46 = vpop.eup %5448  ;;  %v2237_v17 = vmul.f32 %v5447_v54, %v2221_v0  ;;  %v7214_v8 = vadd.f32 %v7176_v15, %v2235_v2  ;;  %5468 = vtanh.f32 %v7202_v20 }
 0x4bc   :  { %v5451_v22 = vpop.eup %5450  ;;  %v2187_v7 = vadd.f32 1.0, %v5449_v46  ;;  %v7218_v55 = vadd.f32 %v7179_v31, %v2236_v10  ;;  %5470 = vtanh.f32 %v7206_v4 }
 0x4bd   :  { %v5453_v49 = vpop.eup %5452  ;;  %v2188_v63 = vadd.f32 1.0, %v5451_v22  ;;  %v7222_v37 = vadd.f32 %v7182_v24, %v2237_v17  ;;  %5472 = vtanh.f32 %v7210_v19 }
 0x4be   :  { %v5455_v25 = vpop.eup %5454  ;;  %5474 = vrcp.f32 %v2187_v7 }
 0x4bf   :  { %v5457_v15 = vpop.eup %5456  ;;  %5476 = vrcp.f32 %v2188_v63 }
 0x4c0   :  { %v5459_v12 = vpop.eup %5458  ;;  %5478 = vtanh.f32 %v7214_v8 }
 0x4c1   :  { %v5461_v51 = vpop.eup %5460  ;;  %5480 = vtanh.f32 %v7218_v55 }
 0x4c2   :  { %v5463_v31 = vpop.eup %5462  ;;  %5482 = vtanh.f32 %v7222_v37 }
 0x4c3   :  { %v5465_v59 = vpop.eup %5464  ;;  %v2189_v26 = vadd.f32 1.0, %v5463_v31 }
 0x4c4   :  { %v5467_v41 = vpop.eup %5466  ;;  %v2262_v24 = vmul.f32 %v5465_v59, %v5453_v49 }
 0x4c5   :  { %v5469_v53 = vpop.eup %5468  ;;  %5484 = vrcp.f32 %v2189_v26  ;;  %v2263_v45 = vmul.f32 %v5467_v41, %v5455_v25 }
 0x4c6   :  { %v5471_v1 = vpop.eup %5470  ;;  %v2264_v44 = vmul.f32 %v5469_v53, %v5457_v15  ;;  %v2278_v36 = vrot.slane %v2262_v24, 3  ;;  %v8095_v24 = vld [vmem:[#allocation16_spill] sm:$0xff]  ;;  %v8096_v53 = vld [vmem:[#allocation17_spill] sm:$0xff] }
 0x4c7   :  { %v5473_v40 = vpop.eup %5472  ;;  %v2265_v3 = vmul.f32 %v5471_v1, %v5459_v12  ;;  %v2279_v16 = vrot.slane %v2263_v45, 2  ;;  %v8097_v45 = vld [vmem:[#allocation18_spill] sm:$0xff]  ;;  %v8098_v1 = vld [vmem:[#allocation19_spill] sm:$0xff] }
 0x4c8   :  { %v5475_v13 = vpop.eup %5474  ;;  %v2266_v57 = vmul.f32 %v5473_v40, %v5461_v51  ;;  %v2281_v14 = vrot.slane %v2264_v44, 1  ;;  %v8099_v44 = vld [vmem:[#allocation20_spill] sm:$0xff]  ;;  %v8101_v40 = vld [vmem:[#allocation22_spill] sm:$0xff] }
 0x4c9   :  { %v5477_v48 = vpop.eup %5476  ;;  %v2280_v0 = vsel %vm841_vm1, %v2279_v16, %v2278_v36  ;;  %v8100_v36 = vld [vmem:[#allocation21_spill] sm:$0xff]  ;;  %v8103_v16 = vld [vmem:[#allocation24_spill] sm:$0xff] }
 0x4ca   :  { %v5479_v2 = vpop.eup %5478  ;;  %v2282_v54 = vsel %vm844_vm2, %v2281_v14, %v2280_v0  ;;  %v2284_v10 = vrot.slane %v2266_v57, 7  ;;  %v8105_v57 = vld [vmem:[#allocation26_spill] sm:$0xff]  ;;  %v8106_v14 = vld [vmem:[#allocation27_spill] sm:$0xff]  ;;  %v8108_v0 = vld [vmem:[#allocation29_spill] sm:$0xff] }
 0x4cb   :  { %v5481_v46 = vpop.eup %5480  ;;  %v2267_v17 = vmul.f32 %v5479_v2, %v5475_v13  ;;  %v2283_v22 = vsel %vm847_vm3, %v2265_v3, %v2282_v54  ;;  %v8102_v3 = vld [vmem:[#allocation23_spill] sm:$0xff]  ;;  %v8104_v13 = vld [vmem:[#allocation25_spill] sm:$0xff]  ;;  %v8109_v2 = vld [vmem:[#allocation30_spill] sm:$0xff] }
 0x4cc   :  { %v2268_v7 = vmul.f32 %v5481_v46, %v5477_v48  ;;  %v2285_v49 = vsel %vm850_vm4, %v2284_v10, %v2283_v22  ;;  %v5483_v63 = vpop.eup %5482  ;;  %v8107_v48 = vld [vmem:[#allocation28_spill] sm:$0xff]  ;;  %v8111_v10 = vld [vmem:[#allocation5_spill] sm:$0xff] }
 0x4cd   :  { %v2286_v25 = vrot.slane %v2267_v17, 6  ;;  %v8110_v54 = vld [vmem:[#allocation4_spill] sm:$0xff] }
 0x4ce   :  { %v2288_v15 = vrot.slane %v2268_v7, 5 }
 0x4cf   :  { %v5485_v12 = vpop.eup %5484  ;;  %v2287_v51 = vsel %vm853_vm5, %v2286_v25, %v2285_v49 }
 0x4d0   :  { %v2269_v31 = vmul.f32 %v5485_v12, %v5483_v63  ;;  %v2289_v59 = vsel %vm856_vm6, %v2288_v15, %v2287_v51 }
 0x4d2   :  { %v2290_v26 = vrot.slane %v2269_v31, 4 }
 0x4d4   :  { %v2291_v41 = vsel %vm859_vm7, %v2290_v26, %v2289_v59  ;;  %v8112_v26 = vld [vmem:[#allocation31_spill] sm:$0xff] }
 0x4d5   :  { %2358 = vmatmul.mubr.f32.vlgmr.msra.gmra.mrb[24].mxu0 %v2291_v41  ;;  %2429 = vmatmul.mubr.f32.vlgmr.msra.gmra.mrb[24].mxu1 %v2291_v41 }
 0x4d6   :  { %4784 = vmatpush1.bf16.msra.mxu0 %v6106_v35  ;;  %4816 = vmatpush1.bf16.msra.mxu1 %v6115_v38 }
 0x4d7   :  { %4786 = vmatprep.subr.bf16.mxu0 %v6127_v42  ;;  %4818 = vmatprep.subr.bf16.mxu1 %v6142_v47 }
 0x4d8   :  { %2834 = vmatprep.mubr.f32.mxu0 %v7078_v62  ;;  %2905 = vmatprep.mubr.f32.mxu1 %v7078_v62  ;;  %v8094_v62 = vld [vmem:[#allocation15_spill] sm:$0xff] }
 0x4da   :  { %4788 = vmatpush1.bf16.msra.mxu0 %v6152_v50  ;;  %4820 = vmatpush1.bf16.msra.mxu1 %v8017_v6 }
 0x4db   :  { %4790 = vmatprep.subr.bf16.mxu0 %v8018_v39  ;;  %4822 = vmatprep.subr.bf16.mxu1 %v8019_v5 }
 0x4de   :  { %4792 = vmatpush1.bf16.msra.mxu0 %v8020_v56  ;;  %4824 = vmatpush1.bf16.msra.mxu1 %v8021_v52 }
 0x4df   :  { %4794 = vmatprep.subr.bf16.mxu0 %v8022_v30  ;;  %4826 = vmatprep.subr.bf16.mxu1 %v8023_v9 }
 0x4e2   :  { %4796 = vmatpush1.bf16.msra.mxu0 %v8024_v60  ;;  %4828 = vmatpush1.bf16.msra.mxu1 %v8056_v32 }
 0x4e3   :  { %4798 = vmatprep.subr.bf16.mxu0 %v8094_v62  ;;  %4830 = vmatprep.subr.bf16.mxu1 %v8095_v24 }
 0x4e6   :  { %4800 = vmatpush1.bf16.msra.mxu0 %v8096_v53  ;;  %4832 = vmatpush1.bf16.msra.mxu1 %v8097_v45 }
 0x4e7   :  { %4802 = vmatprep.subr.bf16.mxu0 %v8098_v1  ;;  %4834 = vmatprep.subr.bf16.mxu1 %v8099_v44 }
 0x4ea   :  { %4804 = vmatpush1.bf16.msra.mxu0 %v8100_v36  ;;  %4836 = vmatpush1.bf16.msra.mxu1 %v8101_v40  ;;  %v8118_v36 = vld [vmem:[#allocation38_spill] sm:$0xff] }
 0x4eb   :  { %4806 = vmatprep.subr.bf16.mxu0 %v8102_v3  ;;  %4838 = vmatprep.subr.bf16.mxu1 %v8103_v16  ;;  %v8117_v16 = vld [vmem:[#allocation37_spill] sm:$0xff] }
 0x4ee   :  { %4808 = vmatpush1.bf16.msra.mxu0 %v8104_v13  ;;  %4840 = vmatpush1.bf16.msra.mxu1 %v8105_v57  ;;  %v8116_v57 = vld [vmem:[#allocation36_spill] sm:$0xff] }
 0x4ef   :  { %4810 = vmatprep.subr.bf16.mxu0 %v8106_v14  ;;  %4842 = vmatprep.subr.bf16.mxu1 %v8107_v48  ;;  %v8115_v48 = vld [vmem:[#allocation34_spill] sm:$0xff] }
 0x4f2   :  { %4812 = vmatpush1.bf16.msra.mxu0 %v8108_v0  ;;  %4844 = vmatpush1.bf16.msra.mxu1 %v8109_v2  ;;  %v8114_v2 = vld [vmem:[#allocation33_spill] sm:$0xff] }
 0x4f3   :  { %4846 = vmatprep.subr.bf16.mxu0 %v8110_v54  ;;  %4878 = vmatprep.subr.bf16.mxu1 %v8111_v10  ;;  %v8113_v54 = vld [vmem:[#allocation32_spill] sm:$0xff] }
 0x5a8   :  { %v2359_v46 = vpop.f32.mrb[24].mxu0  ;;  %v7269_v17 = vpop.f32.mrb[24].mxu1 }
 0x5a9   :  { %v2439_v22 = vrot.slane %v2359_v46, 4  ;;  %v2443_v7 = vrot.slane %v2359_v46, 5  ;;  %v2447_v49 = vrot.slane %v2359_v46, 6  ;;  %v2451_v63 = vrot.slane %v2359_v46, 7  ;;  %v7271_v25 = vpop.f32.mrb[25].mxu0  ;;  %v7273_v15 = vpop.f32.mrb[25].mxu1 }
 0x5aa   :  { %v2455_v12 = vrot.slane %v2359_v46, 1  ;;  %v2459_v51 = vrot.slane %v2359_v46, 2  ;;  %v2463_v31 = vrot.slane %v2359_v46, 3  ;;  %v2515_v59 = vadd.f32 %v2359_v46, %v8076_v58 }
 0x5ab   :  { %v2499_v41 = vadd.f32 %v2439_v22, %v8112_v26  ;;  %v2503_v10 = vadd.f32 %v2443_v7, %v8113_v54  ;;  %v2507_v0 = vadd.f32 %v2447_v49, %v8114_v2  ;;  %v2511_v14 = vadd.f32 %v2451_v63, %v8115_v48  ;;  %v8132_v2 = vld [vmem:[#allocation52_spill] sm:$0xff] }
 0x5ac   :  { %v2519_v13 = vadd.f32 %v2455_v12, %v8116_v57  ;;  %v2523_v3 = vadd.f32 %v2459_v51, %v8117_v16  ;;  %v4353_v40 = vmul.f32 -1.442695, %v2515_v59  ;;  %v2527_v44 = vadd.f32 %v2463_v31, %v8118_v36  ;;  %v8119_v31 = vld [vmem:[#allocation40_spill] sm:$0xff]  ;;  %v8127_v16 = vld [vmem:[#allocation46_spill] sm:$0xff] }
 0x5ad   :  { %v4349_v1 = vmul.f32 -1.442695, %v2499_v41  ;;  %v4350_v45 = vmul.f32 -1.442695, %v2503_v10  ;;  %v4351_v53 = vmul.f32 -1.442695, %v2507_v0 }
 0x5ae   :  { %v4352_v24 = vmul.f32 -1.442695, %v2511_v14  ;;  %5486 = vpow2.f32 %v4353_v40  ;;  %v4354_v46 = vmul.f32 -1.442695, %v2519_v13  ;;  %v2441_v22 = vrot.slane %v7269_v17, 4  ;;  %v8120_v14 = vld [vmem:[#allocation41_spill] sm:$0xff] }
 0x5af   :  { %5488 = vpow2.f32 %v4349_v1  ;;  %v2445_v7 = vrot.slane %v7269_v17, 5  ;;  %v4355_v49 = vmul.f32 -1.442695, %v2523_v3  ;;  %v2449_v63 = vrot.slane %v7269_v17, 6  ;;  %v8121_v1 = vld [vmem:[#allocation42_spill] sm:$0xff]  ;;  %v8122_v0 = vld [vmem:[#allocation45_spill] sm:$0xff] }
 0x5b0   :  { %5490 = vpow2.f32 %v4350_v45  ;;  %v4356_v12 = vmul.f32 -1.442695, %v2527_v44  ;;  %v2453_v51 = vrot.slane %v7269_v17, 7  ;;  %v2501_v10 = vadd.f32 %v2441_v22, %v8119_v31  ;;  %v8123_v45 = vld [vmem:[#allocation43_spill] sm:$0xff] }
 0x5b1   :  { %5492 = vpow2.f32 %v4351_v53  ;;  %v2505_v40 = vadd.f32 %v2445_v7, %v8120_v14  ;;  %v2509_v13 = vadd.f32 %v2449_v63, %v8121_v1  ;;  %v2517_v3 = vadd.f32 %v7269_v17, %v8123_v45  ;;  %v8126_v31 = vld [vmem:[#allocation39_spill] sm:$0xff] }
 0x5b2   :  { %5494 = vpow2.f32 %v4352_v24  ;;  %v2513_v59 = vadd.f32 %v2453_v51, %v8122_v0  ;;  %v2457_v41 = vrot.slane %v7269_v17, 1  ;;  %v2461_v7 = vrot.slane %v7269_v17, 2 }
 0x5b3   :  { %5496 = vpow2.f32 %v4354_v46  ;;  %v2444_v51 = vrot.slane %v7271_v25, 5 }
 0x5b4   :  { %5498 = vpow2.f32 %v4355_v49  ;;  %v2440_v49 = vrot.slane %v7271_v25, 4 }
 0x5b5   :  { %5500 = vpow2.f32 %v4356_v12  ;;  %v2504_v58 = vadd.f32 %v2444_v51, %v8127_v16 }
 0x5b6   :  { %5502 = vtanh.f32 %v2501_v10  ;;  %v2500_v36 = vadd.f32 %v2440_v49, %v8126_v31  ;;  %v2464_v49 = vrot.slane %v7271_v25, 3  ;;  %v8131_v31 = vld [vmem:[#allocation49_spill] sm:$0xff] }
 0x5b7   :  { %5504 = vtanh.f32 %v2505_v40  ;;  %v2516_v51 = vadd.f32 %v7271_v25, %v8131_v31  ;;  %v2454_v31 = vrot.slane %v7273_v15, 7 }
 0x5b8   :  { %v5487_v53 = vpop.eup %5486  ;;  %5506 = vtanh.f32 %v2509_v13  ;;  %v2465_v13 = vrot.slane %v7269_v17, 3  ;;  %v2456_v17 = vrot.slane %v7271_v25, 1  ;;  %v4357_v16 = vmul.f32 -1.442695, %v2500_v36 }
 0x5b9   :  { %v5489_v44 = vpop.eup %5488  ;;  %v2559_v24 = vadd.f32 1.0, %v5487_v53  ;;  %5508 = vtanh.f32 %v2513_v59  ;;  %v2448_v53 = vrot.slane %v7271_v25, 6  ;;  %v2528_v36 = vadd.f32 %v2464_v49, %v8015_v61 }
 0x5ba   :  { %v5491_v46 = vpop.eup %5490  ;;  %v2555_v22 = vadd.f32 1.0, %v5489_v44  ;;  %5510 = vtanh.f32 %v2517_v3  ;;  %v8124_v44 = vld [vmem:[#allocation50_spill] sm:$0xff]  ;;  %v2452_v3 = vrot.slane %v7271_v25, 7 }
 0x5bb   :  { %v5493_v63 = vpop.eup %5492  ;;  %v2556_v12 = vadd.f32 1.0, %v5491_v46  ;;  %5512 = vrcp.f32 %v2559_v24  ;;  %v2521_v0 = vadd.f32 %v2457_v41, %v8124_v44  ;;  %v8125_v24 = vld [vmem:[#allocation51_spill] sm:$0xff]  ;;  %v2460_v41 = vrot.slane %v7271_v25, 2 }
 0x5bc   :  { %v5495_v10 = vpop.eup %5494  ;;  %v2557_v40 = vadd.f32 1.0, %v5493_v63  ;;  %5514 = vrcp.f32 %v2555_v22  ;;  %v2525_v46 = vadd.f32 %v2461_v7, %v8125_v24  ;;  %v8128_v44 = vld [vmem:[#allocation47_spill] sm:$0xff]  ;;  %v8130_v24 = vld [vmem:[#allocation48_spill] sm:$0xff] }
 0x5bd   :  { %v5497_v59 = vpop.eup %5496  ;;  %v2558_v45 = vadd.f32 1.0, %v5495_v10  ;;  %5516 = vrcp.f32 %v2556_v12  ;;  %v2508_v48 = vadd.f32 %v2448_v53, %v8128_v44  ;;  %v2520_v53 = vadd.f32 %v2456_v17, %v8132_v2 }
 0x5be   :  { %v5499_v1 = vpop.eup %5498  ;;  %v2560_v14 = vadd.f32 1.0, %v5497_v59  ;;  %5518 = vrcp.f32 %v2557_v40  ;;  %v8129_v40 = vld [vmem:[#allocation54_spill] sm:$0xff]  ;;  %v4358_v44 = vmul.f32 -1.442695, %v2504_v58  ;;  %v4361_v17 = vmul.f32 -1.442695, %v2516_v51 }
 0x5bf   :  { %v5501_v63 = vpop.eup %5500  ;;  %v2561_v22 = vadd.f32 1.0, %v5499_v1  ;;  %5520 = vrcp.f32 %v2558_v45  ;;  %v2529_v7 = vadd.f32 %v2465_v13, %v8129_v40  ;;  %v2512_v1 = vadd.f32 %v2452_v3, %v8130_v24  ;;  %v8133_v40 = vld [vmem:[#allocation53_spill] sm:$0xff] }
 0x5c0   :  { %v5503_v10 = vpop.eup %5502  ;;  %v2562_v12 = vadd.f32 1.0, %v5501_v63  ;;  %5522 = vrcp.f32 %v2560_v14  ;;  %v2442_v14 = vrot.slane %v7273_v15, 4  ;;  %v2524_v54 = vadd.f32 %v2460_v41, %v8133_v40 }
 0x5c1   :  { %v5505_v59 = vpop.eup %5504  ;;  %5524 = vrcp.f32 %v2561_v22  ;;  %v2446_v22 = vrot.slane %v7273_v15, 5  ;;  %v4359_v3 = vmul.f32 -1.442695, %v2508_v48  ;;  %v4360_v25 = vmul.f32 -1.442695, %v2512_v1 }
 0x5c2   :  { %v5507_v45 = vpop.eup %5506  ;;  %5526 = vrcp.f32 %v2562_v12  ;;  %v2450_v12 = vrot.slane %v7273_v15, 6  ;;  %v2502_v58 = vadd.f32 %v2442_v14, %v8055_v21  ;;  %v4362_v48 = vmul.f32 -1.442695, %v2520_v53 }
 0x5c3   :  { %v5509_v63 = vpop.eup %5508  ;;  %5528 = vtanh.f32 %v2521_v0  ;;  %v2506_v41 = vadd.f32 %v2446_v22, %v6588_v34  ;;  %v4363_v49 = vmul.f32 -1.442695, %v2524_v54  ;;  %v2514_v14 = vadd.f32 %v2454_v31, %v6606_v28 }
 0x5c4   :  { %v5511_v13 = vpop.eup %5510  ;;  %5530 = vtanh.f32 %v2525_v46  ;;  %v2510_v1 = vadd.f32 %v2450_v12, %v6597_v43  ;;  %v4365_v53 = vmul.f32 -1.442695, %v2502_v58 }
 0x5c5   :  { %v5513_v24 = vpop.eup %5512  ;;  %5532 = vtanh.f32 %v2529_v7  ;;  %v4366_v54 = vmul.f32 -1.442695, %v2506_v41  ;;  %v4368_v12 = vmul.f32 -1.442695, %v2514_v14 }
 0x5c6   :  { %v5515_v0 = vpop.eup %5514  ;;  %5534 = vpow2.f32 %v4357_v16  ;;  %v7320_v2 = vmul.f32 %v5513_v24, %v5511_v13  ;;  %v4364_v24 = vmul.f32 -1.442695, %v2528_v36 }
 0x5c7   :  { %v5517_v46 = vpop.eup %5516  ;;  %v7322_v26 = vmul.f32 %v5515_v0, %v5503_v10  ;;  %5536 = vpow2.f32 %v4358_v44  ;;  %v2518_v44 = vadd.f32 %v7273_v15, %v6620_v29 }
 0x5c8   :  { %v5519_v7 = vpop.eup %5518  ;;  %v7325_v40 = vmul.f32 %v5517_v46, %v5505_v59  ;;  %5538 = vpow2.f32 %v4359_v3  ;;  %v4367_v3 = vmul.f32 -1.442695, %v2510_v1  ;;  %v2462_v46 = vrot.slane %v7273_v15, 2 }
 0x5c9   :  { %v5521_v16 = vpop.eup %5520  ;;  %v7328_v51 = vmul.f32 %v5519_v7, %v5507_v45  ;;  %5540 = vpow2.f32 %v4360_v25  ;;  %v4369_v31 = vmul.f32 -1.442695, %v2518_v44 }
 0x5ca   :  { %v5523_v10 = vpop.eup %5522  ;;  %5542 = vpow2.f32 %v4361_v17  ;;  %v7333_v22 = vmul.f32 %v5521_v16, %v5509_v63  ;;  %v2458_v17 = vrot.slane %v7273_v15, 1 }
 0x5cb   :  { %v5525_v59 = vpop.eup %5524  ;;  %5544 = vpow2.f32 %v4362_v48 }
 0x5cc   :  { %v5527_v13 = vpop.eup %5526  ;;  %5546 = vpow2.f32 %v4363_v49  ;;  %v2522_v14 = vadd.f32 %v2458_v17, %v6687_v18 }
 0x5cd   :  { %v5529_v45 = vpop.eup %5528  ;;  %5548 = vpow2.f32 %v4364_v24 }
 0x5ce   :  { %v5531_v36 = vpop.eup %5530  ;;  %5550 = vpow2.f32 %v4365_v53  ;;  %v7335_v25 = vmul.f32 %v5529_v45, %v5523_v10  ;;  %v2526_v53 = vadd.f32 %v2462_v46, %v6694_v23  ;;  %v2466_v45 = vrot.slane %v7273_v15, 3 }
 0x5cf   :  { %v5533_v0 = vpop.eup %5532  ;;  %5552 = vpow2.f32 %v4366_v54  ;;  %v7338_v63 = vmul.f32 %v5531_v36, %v5525_v59 }
 0x5d0   :  { %v5535_v58 = vpop.eup %5534  ;;  %5554 = vpow2.f32 %v4367_v3  ;;  %v7341_v48 = vmul.f32 %v5533_v0, %v5527_v13  ;;  %v4371_v17 = vmul.f32 -1.442695, %v2526_v53 }
 0x5d1   :  { %v5537_v41 = vpop.eup %5536  ;;  %v2603_v7 = vadd.f32 1.0, %v5535_v58  ;;  %5556 = vpow2.f32 %v4368_v12 }
 0x5d2   :  { %v5539_v49 = vpop.eup %5538  ;;  %v2604_v1 = vadd.f32 1.0, %v5537_v41  ;;  %5558 = vpow2.f32 %v4369_v31  ;;  %v4370_v31 = vmul.f32 -1.442695, %v2522_v14 }
 0x5d3   :  { %v5541_v16 = vpop.eup %5540  ;;  %v2605_v24 = vadd.f32 1.0, %v5539_v49  ;;  %5560 = vrcp.f32 %v2603_v7  ;;  %v2530_v49 = vadd.f32 %v2466_v45, %v6703_v33 }
 0x5d4   :  { %v5543_v10 = vpop.eup %5542  ;;  %v2606_v44 = vadd.f32 1.0, %v5541_v16  ;;  %5562 = vrcp.f32 %v2604_v1 }
 0x5d5   :  { %v5545_v59 = vpop.eup %5544  ;;  %v2607_v54 = vadd.f32 1.0, %v5543_v10  ;;  %5564 = vrcp.f32 %v2605_v24  ;;  %v2691_v10 = vrot.slane %v7194_v11, 7  ;;  %v2695_v11 = vrot.slane %v7210_v19, 7 }
 0x5d6   :  { %v5547_v13 = vpop.eup %5546  ;;  %v2608_v3 = vadd.f32 1.0, %v5545_v59  ;;  %5566 = vrcp.f32 %v2606_v44  ;;  %v2692_v59 = vrot.slane %v7198_v27, 7 }
 0x5d7   :  { %v5549_v12 = vpop.eup %5548  ;;  %v2609_v36 = vadd.f32 1.0, %v5547_v13  ;;  %5568 = vrcp.f32 %v2607_v54  ;;  %v2693_v13 = vrot.slane %v7202_v20, 7 }
 0x5d8   :  { %v5551_v0 = vpop.eup %5550  ;;  %v2610_v58 = vadd.f32 1.0, %v5549_v12  ;;  %5570 = vrcp.f32 %v2608_v3  ;;  %v4372_v3 = vmul.f32 -1.442695, %v2530_v49 }
 0x5d9   :  { %v5553_v41 = vpop.eup %5552  ;;  %5572 = vrcp.f32 %v2609_v36  ;;  %v2659_v7 = vadd.f32 1.0, %v5551_v0  ;;  %v2694_v36 = vrot.slane %v7206_v4, 7  ;;  %v2697_v4 = vrot.slane %v7218_v55, 7 }
 0x5da   :  { %v5555_v46 = vpop.eup %5554  ;;  %5574 = vrcp.f32 %v2610_v58  ;;  %v2660_v1 = vadd.f32 1.0, %v5553_v41  ;;  %v2696_v41 = vrot.slane %v7214_v8, 7 }
 0x5db   :  { %v5557_v16 = vpop.eup %5556  ;;  %5576 = vpow2.f32 %v4370_v31  ;;  %v2661_v24 = vadd.f32 1.0, %v5555_v46 }
 0x5dc   :  { %v5559_v15 = vpop.eup %5558  ;;  %5578 = vpow2.f32 %v4371_v17  ;;  %v2662_v14 = vadd.f32 1.0, %v5557_v16 }
 0x5dd   :  { %v5561_v44 = vpop.eup %5560  ;;  %v2663_v53 = vadd.f32 1.0, %v5559_v15  ;;  %5580 = vrcp.f32 %v2659_v7 }
 0x5de   :  { %v5563_v54 = vpop.eup %5562  ;;  %5582 = vrcp.f32 %v2660_v1  ;;  %v2707_v45 = vmul.f32 %v5561_v44, %v2691_v10 }
 0x5df   :  { %v5565_v12 = vpop.eup %5564  ;;  %5584 = vrcp.f32 %v2661_v24  ;;  %v2708_v31 = vmul.f32 %v5563_v54, %v2692_v59 }
 0x5e0   :  { %v5567_v0 = vpop.eup %5566  ;;  %5586 = vrcp.f32 %v2662_v14  ;;  %v2709_v58 = vmul.f32 %v5565_v12, %v2693_v13  ;;  %v7353_v27 = vadd.f32 %v7322_v26, %v2707_v45  ;;  %v2698_v26 = vrot.slane %v7222_v37, 7 }
 0x5e1   :  { %v5569_v17 = vpop.eup %5568  ;;  %5588 = vrcp.f32 %v2663_v53  ;;  %v2710_v20 = vmul.f32 %v5567_v0, %v2694_v36  ;;  %v7357_v7 = vadd.f32 %v7325_v40, %v2708_v31 }
 0x5e2   :  { %v5571_v46 = vpop.eup %5570  ;;  %5590 = vpow2.f32 %v4372_v3  ;;  %v2711_v49 = vmul.f32 %v5569_v17, %v2695_v11  ;;  %v7361_v19 = vadd.f32 %v7328_v51, %v2709_v58 }
 0x5e3   :  { %v5573_v1 = vpop.eup %5572  ;;  %v2712_v16 = vmul.f32 %v5571_v46, %v2696_v41  ;;  %v7365_v24 = vadd.f32 %v7333_v22, %v2710_v20  ;;  %5592 = vtanh.f32 %v7353_v27 }
 0x5e4   :  { %v5575_v8 = vpop.eup %5574  ;;  %v2713_v40 = vmul.f32 %v5573_v1, %v2697_v4  ;;  %v7369_v15 = vadd.f32 %v7320_v2, %v2711_v49  ;;  %5594 = vtanh.f32 %v7357_v7 }
 0x5e5   :  { %v5577_v55 = vpop.eup %5576  ;;  %v2714_v10 = vmul.f32 %v5575_v8, %v2698_v26  ;;  %v7373_v51 = vadd.f32 %v7335_v25, %v2712_v16  ;;  %5596 = vtanh.f32 %v7361_v19 }
 0x5e6   :  { %v5579_v37 = vpop.eup %5578  ;;  %v2664_v14 = vadd.f32 1.0, %v5577_v55  ;;  %v7377_v22 = vadd.f32 %v7338_v63, %v2713_v40  ;;  %5598 = vtanh.f32 %v7365_v24 }
 0x5e7   :  { %v5581_v44 = vpop.eup %5580  ;;  %v2665_v59 = vadd.f32 1.0, %v5579_v37  ;;  %v7381_v2 = vadd.f32 %v7341_v48, %v2714_v10  ;;  %5600 = vtanh.f32 %v7369_v15 }
 0x5e8   :  { %v5583_v53 = vpop.eup %5582  ;;  %5602 = vrcp.f32 %v2664_v14 }
 0x5e9   :  { %v5585_v25 = vpop.eup %5584  ;;  %5604 = vrcp.f32 %v2665_v59 }
 0x5ea   :  { %v5587_v54 = vpop.eup %5586  ;;  %5606 = vtanh.f32 %v7373_v51 }
 0x5eb   :  { %v5589_v13 = vpop.eup %5588  ;;  %5608 = vtanh.f32 %v7377_v22 }
 0x5ec   :  { %v5591_v63 = vpop.eup %5590  ;;  %5610 = vtanh.f32 %v7381_v2 }
 0x5ed   :  { %v5593_v3 = vpop.eup %5592  ;;  %v2666_v45 = vadd.f32 1.0, %v5591_v63 }
 0x5ee   :  { %v5595_v12 = vpop.eup %5594  ;;  %v2739_v48 = vmul.f32 %v5593_v3, %v5581_v44 }
 0x5ef   :  { %v5597_v36 = vpop.eup %5596  ;;  %5612 = vrcp.f32 %v2666_v45  ;;  %v2740_v31 = vmul.f32 %v5595_v12, %v5583_v53 }
 0x5f0   :  { %v5599_v0 = vpop.eup %5598  ;;  %v2741_v11 = vmul.f32 %v5597_v36, %v5585_v25  ;;  %v2755_v58 = vrot.slane %v2739_v48, 4  ;;  %v7398_v48 = vld [vmem:[#allocation2] sm:$0xff]  ;;  %v8134_v36 = vld [vmem:[#allocation16_spill] sm:$0xff] }
 0x5f1   :  { %v5601_v17 = vpop.eup %5600  ;;  %v2742_v41 = vmul.f32 %v5599_v0, %v5587_v54  ;;  %v2756_v20 = vrot.slane %v2740_v31, 3  ;;  %v8135_v31 = vld [vmem:[#allocation17_spill] sm:$0xff]  ;;  %v8136_v0 = vld [vmem:[#allocation18_spill] sm:$0xff] }
 0x5f2   :  { %v5603_v46 = vpop.eup %5602  ;;  %v2743_v4 = vmul.f32 %v5601_v17, %v5589_v13  ;;  %v2758_v49 = vrot.slane %v2741_v11, 2  ;;  %v8137_v11 = vld [vmem:[#allocation19_spill] sm:$0xff]  ;;  %v8139_v17 = vld [vmem:[#allocation21_spill] sm:$0xff] }
 0x5f3   :  { %v5605_v1 = vpop.eup %5604  ;;  %v2757_v26 = vsel %vm841_vm1, %v2756_v20, %v2755_v58  ;;  %v2760_v16 = vrot.slane %v2742_v41, 1  ;;  %v8138_v58 = vld [vmem:[#allocation20_spill] sm:$0xff]  ;;  %v8140_v41 = vld [vmem:[#allocation22_spill] sm:$0xff]  ;;  %v8141_v20 = vld [vmem:[#allocation23_spill] sm:$0xff] }
 0x5f4   :  { %v5607_v8 = vpop.eup %5606  ;;  %v2759_v40 = vsel %vm844_vm2, %v2758_v49, %v2757_v26  ;;  %v8144_v49 = vld [vmem:[#allocation26_spill] sm:$0xff]  ;;  %v8146_v26 = vld [vmem:[#allocation28_spill] sm:$0xff] }
 0x5f5   :  { %v5609_v55 = vpop.eup %5608  ;;  %v2744_v10 = vmul.f32 %v5607_v8, %v5603_v46  ;;  %v2761_v37 = vsel %vm847_vm3, %v2760_v16, %v2759_v40  ;;  %v8142_v46 = vld [vmem:[#allocation24_spill] sm:$0xff]  ;;  %v8147_v16 = vld [vmem:[#allocation29_spill] sm:$0xff]  ;;  %v8148_v8 = vld [vmem:[#allocation30_spill] sm:$0xff] }
 0x5f6   :  { %v2745_v14 = vmul.f32 %v5609_v55, %v5605_v1  ;;  %v2762_v44 = vsel %vm850_vm4, %v2743_v4, %v2761_v37  ;;  %v5611_v59 = vpop.eup %5610  ;;  %v8143_v4 = vld [vmem:[#allocation25_spill] sm:$0xff]  ;;  %v8145_v1 = vld [vmem:[#allocation27_spill] sm:$0xff]  ;;  %v8149_v40 = vld [vmem:[#allocation4_spill] sm:$0xff] }
 0x5f7   :  { %v2763_v53 = vrot.slane %v2744_v10, 7  ;;  %v8150_v55 = vld [vmem:[#allocation5_spill] sm:$0xff] }
 0x5f8   :  { %v2765_v25 = vrot.slane %v2745_v14, 6 }
 0x5f9   :  { %v5613_v54 = vpop.eup %5612  ;;  %v2764_v13 = vsel %vm853_vm5, %v2763_v53, %v2762_v44 }
 0x5fa   :  { %v2746_v63 = vmul.f32 %v5613_v54, %v5611_v59  ;;  %v2766_v3 = vsel %vm856_vm6, %v2765_v25, %v2764_v13 }
 0x5fc   :  { %v2767_v45 = vrot.slane %v2746_v63, 5 }
 0x5fe   :  { %v2768_v12 = vsel %vm859_vm7, %v2767_v45, %v2766_v3 }
 0x5ff   :  { %2835 = vmatmul.mubr.f32.vlgmr.msra.gmra.mrb[26].mxu0 %v2768_v12  ;;  %2906 = vmatmul.mubr.f32.vlgmr.msra.gmra.mrb[26].mxu1 %v2768_v12  ;;  %v8151_v12 = vld [vmem:[#allocation31_spill] sm:$0xff] }
 0x600   :  { %4848 = vmatpush1.bf16.msra.mxu0 %v6106_v35  ;;  %4880 = vmatpush1.bf16.msra.mxu1 %v6115_v38 }
 0x601   :  { %4850 = vmatprep.subr.bf16.mxu0 %v6127_v42  ;;  %4882 = vmatprep.subr.bf16.mxu1 %v6142_v47 }
 0x602   :  { %3311 = vmatprep.mubr.f32.mxu0 %v7398_v48  ;;  %3382 = vmatprep.mubr.f32.mxu1 %v7398_v48 }
 0x604   :  { %4852 = vmatpush1.bf16.msra.mxu0 %v6152_v50  ;;  %4884 = vmatpush1.bf16.msra.mxu1 %v8017_v6 }
 0x605   :  { %4854 = vmatprep.subr.bf16.mxu0 %v8018_v39  ;;  %4886 = vmatprep.subr.bf16.mxu1 %v8019_v5 }
 0x608   :  { %4856 = vmatpush1.bf16.msra.mxu0 %v8020_v56  ;;  %4888 = vmatpush1.bf16.msra.mxu1 %v8021_v52 }
 0x609   :  { %4858 = vmatprep.subr.bf16.mxu0 %v8022_v30  ;;  %4890 = vmatprep.subr.bf16.mxu1 %v8023_v9 }
 0x60c   :  { %4860 = vmatpush1.bf16.msra.mxu0 %v8024_v60  ;;  %4892 = vmatpush1.bf16.msra.mxu1 %v8056_v32 }
 0x60d   :  { %4862 = vmatprep.subr.bf16.mxu0 %v8094_v62  ;;  %4894 = vmatprep.subr.bf16.mxu1 %v8134_v36 }
 0x610   :  { %4864 = vmatpush1.bf16.msra.mxu0 %v8135_v31  ;;  %4896 = vmatpush1.bf16.msra.mxu1 %v8136_v0 }
 0x611   :  { %4866 = vmatprep.subr.bf16.mxu0 %v8137_v11  ;;  %4898 = vmatprep.subr.bf16.mxu1 %v8138_v58  ;;  %v8157_v58 = vld [vmem:[#allocation38_spill] sm:$0xff] }
 0x614   :  { %4868 = vmatpush1.bf16.msra.mxu0 %v8139_v17  ;;  %4900 = vmatpush1.bf16.msra.mxu1 %v8140_v41 }
 0x615   :  { %4870 = vmatprep.subr.bf16.mxu0 %v8141_v20  ;;  %4902 = vmatprep.subr.bf16.mxu1 %v8142_v46  ;;  %v8156_v20 = vld [vmem:[#allocation37_spill] sm:$0xff] }
 0x618   :  { %4872 = vmatpush1.bf16.msra.mxu0 %v8143_v4  ;;  %4904 = vmatpush1.bf16.msra.mxu1 %v8144_v49  ;;  %v8155_v4 = vld [vmem:[#allocation35_spill] sm:$0xff] }
 0x619   :  { %4874 = vmatprep.subr.bf16.mxu0 %v8145_v1  ;;  %4906 = vmatprep.subr.bf16.mxu1 %v8146_v26  ;;  %v8154_v1 = vld [vmem:[#allocation34_spill] sm:$0xff] }
 0x61c   :  { %4876 = vmatpush1.bf16.msra.mxu0 %v8147_v16  ;;  %4908 = vmatpush1.bf16.msra.mxu1 %v8148_v8  ;;  %v8152_v8 = vld [vmem:[#allocation32_spill] sm:$0xff]  ;;  %v8153_v16 = vld [vmem:[#allocation33_spill] sm:$0xff] }
 0x61d   :  { %4910 = vmatprep.subr.bf16.mxu0 %v8149_v40  ;;  %4942 = vmatprep.subr.bf16.mxu1 %v8150_v55 }
 0x6d2   :  { %v2836_v10 = vpop.f32.mrb[26].mxu0  ;;  %v7430_v37 = vpop.f32.mrb[26].mxu1 }
 0x6d3   :  { %v2916_v14 = vrot.slane %v2836_v10, 3  ;;  %v2920_v44 = vrot.slane %v2836_v10, 4  ;;  %v2924_v59 = vrot.slane %v2836_v10, 5  ;;  %v2928_v53 = vrot.slane %v2836_v10, 6  ;;  %v7432_v25 = vpop.f32.mrb[27].mxu0  ;;  %v7434_v54 = vpop.f32.mrb[27].mxu1 }
 0x6d4   :  { %v2932_v13 = vrot.slane %v2836_v10, 7  ;;  %v2936_v63 = vrot.slane %v2836_v10, 1  ;;  %v2940_v3 = vrot.slane %v2836_v10, 2  ;;  %v2996_v45 = vadd.f32 %v2836_v10, %v8116_v57 }
 0x6d5   :  { %v2976_v40 = vadd.f32 %v2916_v14, %v8151_v12  ;;  %v2980_v55 = vadd.f32 %v2920_v44, %v8152_v8  ;;  %v2984_v26 = vadd.f32 %v2924_v59, %v8153_v16  ;;  %v2988_v49 = vadd.f32 %v2928_v53, %v8154_v1 }
 0x6d6   :  { %v2992_v46 = vadd.f32 %v2932_v13, %v8155_v4  ;;  %v3000_v41 = vadd.f32 %v2936_v63, %v8156_v20  ;;  %v4378_v17 = vmul.f32 -1.442695, %v2996_v45  ;;  %v3004_v11 = vadd.f32 %v2940_v3, %v8157_v58  ;;  %v8167_v4 = vld [vmem:[#allocation47_spill] sm:$0xff] }
 0x6d7   :  { %v4373_v0 = vmul.f32 -1.442695, %v2976_v40  ;;  %v4374_v31 = vmul.f32 -1.442695, %v2980_v55  ;;  %v4375_v36 = vmul.f32 -1.442695, %v2984_v26 }
 0x6d8   :  { %v4376_v62 = vmul.f32 -1.442695, %v2988_v49  ;;  %5614 = vpow2.f32 %v4378_v17  ;;  %v4377_v10 = vmul.f32 -1.442695, %v2992_v46  ;;  %v2918_v14 = vrot.slane %v7430_v37, 3  ;;  %v8158_v26 = vld [vmem:[#allocation40_spill] sm:$0xff] }
 0x6d9   :  { %5616 = vpow2.f32 %v4373_v0  ;;  %v2922_v44 = vrot.slane %v7430_v37, 4  ;;  %v4379_v59 = vmul.f32 -1.442695, %v3000_v41  ;;  %v2926_v53 = vrot.slane %v7430_v37, 5  ;;  %v8159_v0 = vld [vmem:[#allocation41_spill] sm:$0xff]  ;;  %v8160_v46 = vld [vmem:[#allocation42_spill] sm:$0xff] }
 0x6da   :  { %5618 = vpow2.f32 %v4374_v31  ;;  %v4380_v13 = vmul.f32 -1.442695, %v3004_v11  ;;  %v2930_v63 = vrot.slane %v7430_v37, 6  ;;  %v2934_v3 = vrot.slane %v7430_v37, 7  ;;  %v8161_v31 = vld [vmem:[#allocation45_spill] sm:$0xff]  ;;  %v8162_v40 = vld [vmem:[#allocation43_spill] sm:$0xff] }
 0x6db   :  { %5620 = vpow2.f32 %v4375_v36  ;;  %v2978_v49 = vadd.f32 %v2918_v14, %v8158_v26  ;;  %v2982_v17 = vadd.f32 %v2922_v44, %v8159_v0  ;;  %v2986_v45 = vadd.f32 %v2926_v53, %v8160_v46  ;;  %v8166_v26 = vld [vmem:[#allocation46_spill] sm:$0xff] }
 0x6dc   :  { %5622 = vpow2.f32 %v4376_v62  ;;  %v2990_v41 = vadd.f32 %v2930_v63, %v8161_v31  ;;  %v2994_v55 = vadd.f32 %v2934_v3, %v8162_v40  ;;  %v2938_v53 = vrot.slane %v7430_v37, 1  ;;  %v8164_v31 = vld [vmem:[#allocation39_spill] sm:$0xff] }
 0x6dd   :  { %5624 = vpow2.f32 %v4377_v10  ;;  %v2917_v10 = vrot.slane %v7432_v25, 3  ;;  %v2933_v40 = vrot.slane %v7432_v25, 7 }
 0x6de   :  { %5626 = vpow2.f32 %v4379_v59 }
 0x6df   :  { %5628 = vpow2.f32 %v4380_v13  ;;  %v2921_v13 = vrot.slane %v7432_v25, 4 }
 0x6e0   :  { %5630 = vtanh.f32 %v2978_v49  ;;  %v8163_v49 = vld [vmem:[#allocation50_spill] sm:$0xff] }
 0x6e1   :  { %5632 = vtanh.f32 %v2982_v17  ;;  %v2998_v17 = vadd.f32 %v7430_v37, %v8163_v49  ;;  %v8165_v49 = vld [vmem:[#allocation51_spill] sm:$0xff]  ;;  %v2981_v57 = vadd.f32 %v2921_v13, %v8166_v26  ;;  %v8171_v26 = vld [vmem:[#allocation52_spill] sm:$0xff] }
 0x6e2   :  { %v5615_v36 = vpop.eup %5614  ;;  %5634 = vtanh.f32 %v2986_v45  ;;  %v2925_v45 = vrot.slane %v7432_v25, 5  ;;  %v3002_v0 = vadd.f32 %v2938_v53, %v8165_v49  ;;  %v8170_v53 = vld [vmem:[#allocation49_spill] sm:$0xff] }
 0x6e3   :  { %v5617_v62 = vpop.eup %5616  ;;  %v3037_v11 = vadd.f32 1.0, %v5615_v36  ;;  %5636 = vtanh.f32 %v2990_v41  ;;  %v2993_v49 = vadd.f32 %v2933_v40, %v8170_v53 }
 0x6e4   :  { %v5619_v58 = vpop.eup %5618  ;;  %v3032_v14 = vadd.f32 1.0, %v5617_v62  ;;  %5638 = vtanh.f32 %v2994_v55  ;;  %v2942_v55 = vrot.slane %v7430_v37, 2  ;;  %v2937_v37 = vrot.slane %v7432_v25, 1 }
 0x6e5   :  { %v5621_v44 = vpop.eup %5620  ;;  %v3033_v59 = vadd.f32 1.0, %v5619_v58  ;;  %5640 = vrcp.f32 %v3037_v11  ;;  %v2929_v58 = vrot.slane %v7432_v25, 6  ;;  %v2985_v1 = vadd.f32 %v2925_v45, %v8167_v4 }
 0x6e6   :  { %v5623_v63 = vpop.eup %5622  ;;  %v3034_v3 = vadd.f32 1.0, %v5621_v44  ;;  %5642 = vrcp.f32 %v3032_v14  ;;  %v2977_v44 = vadd.f32 %v2917_v10, %v8164_v31  ;;  %v2941_v10 = vrot.slane %v7432_v25, 2  ;;  %v8169_v31 = vld [vmem:[#allocation48_spill] sm:$0xff] }
 0x6e7   :  { %v5625_v41 = vpop.eup %5624  ;;  %v3035_v36 = vadd.f32 1.0, %v5623_v63  ;;  %5644 = vrcp.f32 %v3033_v59  ;;  %v2997_v45 = vadd.f32 %v7432_v25, %v8171_v26  ;;  %v4382_v4 = vmul.f32 -1.442695, %v2981_v57 }
 0x6e8   :  { %v5627_v62 = vpop.eup %5626  ;;  %v3036_v11 = vadd.f32 1.0, %v5625_v41  ;;  %5646 = vrcp.f32 %v3034_v3  ;;  %v8168_v3 = vld [vmem:[#allocation54_spill] sm:$0xff]  ;;  %v4381_v13 = vmul.f32 -1.442695, %v2977_v44  ;;  %v3005_v40 = vadd.f32 %v2941_v10, %v8015_v61 }
 0x6e9   :  { %v5629_v14 = vpop.eup %5628  ;;  %v3038_v46 = vadd.f32 1.0, %v5627_v62  ;;  %5648 = vrcp.f32 %v3035_v36  ;;  %v3006_v16 = vadd.f32 %v2942_v55, %v8168_v3  ;;  %v2989_v62 = vadd.f32 %v2929_v58, %v8169_v31  ;;  %v8172_v3 = vld [vmem:[#allocation53_spill] sm:$0xff] }
 0x6ea   :  { %v5631_v63 = vpop.eup %5630  ;;  %v3039_v59 = vadd.f32 1.0, %v5629_v14  ;;  %5650 = vrcp.f32 %v3036_v11  ;;  %v2919_v14 = vrot.slane %v7434_v54, 3  ;;  %v3001_v8 = vadd.f32 %v2937_v37, %v8172_v3 }
 0x6eb   :  { %v5633_v41 = vpop.eup %5632  ;;  %5652 = vrcp.f32 %v3038_v46  ;;  %v2923_v46 = vrot.slane %v7434_v54, 4  ;;  %v4383_v58 = vmul.f32 -1.442695, %v2985_v1  ;;  %v4384_v44 = vmul.f32 -1.442695, %v2989_v62 }
 0x6ec   :  { %v5635_v36 = vpop.eup %5634  ;;  %5654 = vrcp.f32 %v3039_v59  ;;  %v2927_v59 = vrot.slane %v7434_v54, 5  ;;  %v4385_v25 = vmul.f32 -1.442695, %v2993_v49  ;;  %v2935_v57 = vrot.slane %v7434_v54, 7 }
 0x6ed   :  { %v5637_v11 = vpop.eup %5636  ;;  %5656 = vtanh.f32 %v2998_v17  ;;  %v2931_v17 = vrot.slane %v7434_v54, 6  ;;  %v2979_v26 = vadd.f32 %v2919_v14, %v8055_v21  ;;  %v4386_v1 = vmul.f32 -1.442695, %v2997_v45 }
 0x6ee   :  { %v5639_v55 = vpop.eup %5638  ;;  %5658 = vtanh.f32 %v3002_v0  ;;  %v2983_v37 = vadd.f32 %v2923_v46, %v6588_v34  ;;  %v4387_v10 = vmul.f32 -1.442695, %v3001_v8  ;;  %v2987_v62 = vadd.f32 %v2927_v59, %v6597_v43 }
 0x6ef   :  { %v5641_v31 = vpop.eup %5640  ;;  %5660 = vtanh.f32 %v3006_v16  ;;  %v4388_v61 = vmul.f32 -1.442695, %v3005_v40  ;;  %v2991_v14 = vadd.f32 %v2931_v17, %v6606_v28 }
 0x6f0   :  { %v5643_v53 = vpop.eup %5642  ;;  %5662 = vpow2.f32 %v4381_v13  ;;  %v4390_v46 = vmul.f32 -1.442695, %v2983_v37 }
 0x6f1   :  { %v5645_v0 = vpop.eup %5644  ;;  %v7482_v12 = vmul.f32 %v5643_v53, %v5631_v63  ;;  %5664 = vpow2.f32 %v4382_v4  ;;  %v2995_v4 = vadd.f32 %v2935_v57, %v6620_v29  ;;  %v4389_v53 = vmul.f32 -1.442695, %v2979_v26 }
 0x6f2   :  { %v5647_v16 = vpop.eup %5646  ;;  %v7485_v3 = vmul.f32 %v5645_v0, %v5633_v41  ;;  %5666 = vpow2.f32 %v4383_v58  ;;  %v4392_v40 = vmul.f32 -1.442695, %v2991_v14  ;;  %v2939_v0 = vrot.slane %v7434_v54, 1 }
 0x6f3   :  { %v5649_v13 = vpop.eup %5648  ;;  %v7488_v49 = vmul.f32 %v5647_v16, %v5635_v36  ;;  %5668 = vpow2.f32 %v4384_v44  ;;  %v4391_v36 = vmul.f32 -1.442695, %v2987_v62  ;;  %v4393_v17 = vmul.f32 -1.442695, %v2995_v4 }
 0x6f4   :  { %v5651_v63 = vpop.eup %5650  ;;  %5670 = vpow2.f32 %v4385_v25  ;;  %v7492_v45 = vmul.f32 %v5649_v13, %v5637_v11 }
 0x6f5   :  { %v5653_v41 = vpop.eup %5652  ;;  %5672 = vpow2.f32 %v4386_v1  ;;  %v7494_v8 = vmul.f32 %v5651_v63, %v5639_v55  ;;  %v3003_v63 = vadd.f32 %v2939_v0, %v6694_v23 }
 0x6f6   :  { %v5655_v58 = vpop.eup %5654  ;;  %5674 = vpow2.f32 %v4387_v10 }
 0x6f7   :  { %v5657_v59 = vpop.eup %5656  ;;  %5676 = vpow2.f32 %v4388_v61 }
 0x6f8   :  { %v5659_v44 = vpop.eup %5658  ;;  %5678 = vpow2.f32 %v4389_v53  ;;  %v7496_v25 = vmul.f32 %v5657_v59, %v5641_v31  ;;  %v2999_v31 = vadd.f32 %v7434_v54, %v6687_v18 }
 0x6f9   :  { %v5661_v57 = vpop.eup %5660  ;;  %5680 = vpow2.f32 %v4390_v46  ;;  %v7498_v26 = vmul.f32 %v5659_v44, %v5653_v41 }
 0x6fa   :  { %v5663_v11 = vpop.eup %5662  ;;  %5682 = vpow2.f32 %v4391_v36  ;;  %v7501_v55 = vmul.f32 %v5661_v57, %v5655_v58  ;;  %v2943_v58 = vrot.slane %v7434_v54, 2  ;;  %v4395_v57 = vmul.f32 -1.442695, %v3003_v63 }
 0x6fb   :  { %v5665_v1 = vpop.eup %5664  ;;  %v3080_v37 = vadd.f32 1.0, %v5663_v11  ;;  %5684 = vpow2.f32 %v4392_v40  ;;  %v4394_v40 = vmul.f32 -1.442695, %v2999_v31 }
 0x6fc   :  { %v5667_v61 = vpop.eup %5666  ;;  %v3081_v16 = vadd.f32 1.0, %v5665_v1  ;;  %5686 = vpow2.f32 %v4393_v17 }
 0x6fd   :  { %v5669_v10 = vpop.eup %5668  ;;  %v3082_v62 = vadd.f32 1.0, %v5667_v61  ;;  %5688 = vrcp.f32 %v3080_v37  ;;  %v3007_v37 = vadd.f32 %v2943_v58, %v6703_v33 }
 0x6fe   :  { %v5671_v13 = vpop.eup %5670  ;;  %v3083_v14 = vadd.f32 1.0, %v5669_v10  ;;  %5690 = vrcp.f32 %v3081_v16 }
 0x6ff   :  { %v5673_v4 = vpop.eup %5672  ;;  %v3084_v53 = vadd.f32 1.0, %v5671_v13  ;;  %5692 = vrcp.f32 %v3082_v62  ;;  %v3168_v62 = vrot.slane %v7353_v27, 7  ;;  %v3172_v27 = vrot.slane %v7369_v15, 7 }
 0x700   :  { %v5675_v41 = vpop.eup %5674  ;;  %v3085_v46 = vadd.f32 1.0, %v5673_v4  ;;  %5694 = vrcp.f32 %v3083_v14  ;;  %v3169_v14 = vrot.slane %v7357_v7, 7 }
 0x701   :  { %v5677_v36 = vpop.eup %5676  ;;  %v3086_v59 = vadd.f32 1.0, %v5675_v41  ;;  %5696 = vrcp.f32 %v3084_v53  ;;  %v3170_v53 = vrot.slane %v7361_v19, 7  ;;  %v4396_v41 = vmul.f32 -1.442695, %v3007_v37 }
 0x702   :  { %v5679_v44 = vpop.eup %5678  ;;  %v3087_v17 = vadd.f32 1.0, %v5677_v36  ;;  %5698 = vrcp.f32 %v3085_v46  ;;  %v3171_v36 = vrot.slane %v7365_v24, 7  ;;  %v3174_v24 = vrot.slane %v7377_v22, 7 }
 0x703   :  { %v5681_v11 = vpop.eup %5680  ;;  %5700 = vrcp.f32 %v3086_v59  ;;  %v3136_v1 = vadd.f32 1.0, %v5679_v44 }
 0x704   :  { %v5683_v0 = vpop.eup %5682  ;;  %5702 = vrcp.f32 %v3087_v17  ;;  %v3137_v61 = vadd.f32 1.0, %v5681_v11 }
 0x705   :  { %v5685_v16 = vpop.eup %5684  ;;  %5704 = vpow2.f32 %v4394_v40  ;;  %v3138_v10 = vadd.f32 1.0, %v5683_v0 }
 0x706   :  { %v5687_v54 = vpop.eup %5686  ;;  %5706 = vpow2.f32 %v4395_v57  ;;  %v3139_v31 = vadd.f32 1.0, %v5685_v16  ;;  %v3173_v57 = vrot.slane %v7373_v51, 7 }
 0x707   :  { %v5689_v13 = vpop.eup %5688  ;;  %v3140_v63 = vadd.f32 1.0, %v5687_v54  ;;  %5708 = vrcp.f32 %v3136_v1 }
 0x708   :  { %v5691_v4 = vpop.eup %5690  ;;  %5710 = vrcp.f32 %v3137_v61  ;;  %v3184_v46 = vmul.f32 %v5689_v13, %v3168_v62 }
 0x709   :  { %v5693_v58 = vpop.eup %5692  ;;  %5712 = vrcp.f32 %v3138_v10  ;;  %v3185_v59 = vmul.f32 %v5691_v4, %v3169_v14 }
 0x70a   :  { %v5695_v40 = vpop.eup %5694  ;;  %5714 = vrcp.f32 %v3139_v31  ;;  %v3186_v44 = vmul.f32 %v5693_v58, %v3170_v53  ;;  %v7514_v7 = vadd.f32 %v7482_v12, %v3184_v46  ;;  %v3175_v12 = vrot.slane %v7381_v2, 7 }
 0x70b   :  { %v5697_v17 = vpop.eup %5696  ;;  %5716 = vrcp.f32 %v3140_v63  ;;  %v3187_v19 = vmul.f32 %v5695_v40, %v3171_v36  ;;  %v7518_v11 = vadd.f32 %v7485_v3, %v3185_v59 }
 0x70c   :  { %v5699_v1 = vpop.eup %5698  ;;  %5718 = vpow2.f32 %v4396_v41  ;;  %v3188_v0 = vmul.f32 %v5697_v17, %v3172_v27  ;;  %v7522_v15 = vadd.f32 %v7488_v49, %v3186_v44 }
 0x70d   :  { %v5701_v37 = vpop.eup %5700  ;;  %v3189_v61 = vmul.f32 %v5699_v1, %v3173_v57  ;;  %v7526_v16 = vadd.f32 %v7492_v45, %v3187_v19  ;;  %5720 = vtanh.f32 %v7514_v7 }
 0x70e   :  { %v5703_v51 = vpop.eup %5702  ;;  %v3190_v3 = vmul.f32 %v5701_v37, %v3174_v24  ;;  %v7530_v10 = vadd.f32 %v7494_v8, %v3188_v0  ;;  %5722 = vtanh.f32 %v7518_v11 }
 0x70f   :  { %v5705_v22 = vpop.eup %5704  ;;  %v3191_v54 = vmul.f32 %v5703_v51, %v3175_v12  ;;  %v7534_v49 = vadd.f32 %v7496_v25, %v3189_v61  ;;  %5724 = vtanh.f32 %v7522_v15 }
 0x710   :  { %v5707_v2 = vpop.eup %5706  ;;  %v3141_v62 = vadd.f32 1.0, %v5705_v22  ;;  %v7538_v45 = vadd.f32 %v7498_v26, %v3190_v3  ;;  %5726 = vtanh.f32 %v7526_v16 }
 0x711   :  { %v5709_v31 = vpop.eup %5708  ;;  %v3142_v13 = vadd.f32 1.0, %v5707_v2  ;;  %v7542_v8 = vadd.f32 %v7501_v55, %v3191_v54  ;;  %5728 = vtanh.f32 %v7530_v10 }
 0x712   :  { %v5711_v14 = vpop.eup %5710  ;;  %5730 = vrcp.f32 %v3141_v62 }
 0x713   :  { %v5713_v25 = vpop.eup %5712  ;;  %5732 = vrcp.f32 %v3142_v13 }
 0x714   :  { %v5715_v63 = vpop.eup %5714  ;;  %5734 = vtanh.f32 %v7534_v49 }
 0x715   :  { %v5717_v4 = vpop.eup %5716  ;;  %5736 = vtanh.f32 %v7538_v45 }
 0x716   :  { %v5719_v26 = vpop.eup %5718  ;;  %5738 = vtanh.f32 %v7542_v8 }
 0x717   :  { %v5721_v53 = vpop.eup %5720  ;;  %v3143_v41 = vadd.f32 1.0, %v5719_v26 }
 0x718   :  { %v5723_v46 = vpop.eup %5722  ;;  %v3216_v55 = vmul.f32 %v5721_v53, %v5709_v31 }
 0x719   :  { %v5725_v58 = vpop.eup %5724  ;;  %5740 = vrcp.f32 %v3143_v41  ;;  %v3217_v36 = vmul.f32 %v5723_v46, %v5711_v14  ;;  %v8188_v46 = vld [vmem:[#allocation30_spill] sm:$0xff] }
 0x71a   :  { %v5727_v59 = vpop.eup %5726  ;;  %v3218_v40 = vmul.f32 %v5725_v58, %v5713_v25  ;;  %v3232_v27 = vrot.slane %v3216_v55, 5 }
 0x71b   :  { %v5729_v44 = vpop.eup %5728  ;;  %v3219_v17 = vmul.f32 %v5727_v59, %v5715_v63  ;;  %v3233_v57 = vrot.slane %v3217_v36, 4 }
 0x71c   :  { %v5731_v19 = vpop.eup %5730  ;;  %v3220_v1 = vmul.f32 %v5729_v44, %v5717_v4  ;;  %v3235_v24 = vrot.slane %v3218_v40, 3 }
 0x71d   :  { %v5733_v0 = vpop.eup %5732  ;;  %v3234_v37 = vsel %vm841_vm1, %v3233_v57, %v3232_v27  ;;  %v3237_v12 = vrot.slane %v3219_v17, 2 }
 0x71e   :  { %v5735_v61 = vpop.eup %5734  ;;  %v3236_v51 = vsel %vm844_vm2, %v3235_v24, %v3234_v37  ;;  %v3239_v3 = vrot.slane %v3220_v1, 1 }
 0x71f   :  { %v5737_v22 = vpop.eup %5736  ;;  %v3221_v54 = vmul.f32 %v5735_v61, %v5731_v19  ;;  %v3238_v2 = vsel %vm847_vm3, %v3237_v12, %v3236_v51  ;;  %v8190_v12 = vld [vmem:[#allocation32_spill] sm:$0xff]  ;;  %v8191_v51 = vld [vmem:[#allocation33_spill] sm:$0xff] }
 0x720   :  { %v3222_v62 = vmul.f32 %v5737_v22, %v5733_v0  ;;  %v3240_v31 = vsel %vm850_vm4, %v3239_v3, %v3238_v2  ;;  %v5739_v13 = vpop.eup %5738  ;;  %v8189_v0 = vld [vmem:[#allocation31_spill] sm:$0xff]  ;;  %v8192_v22 = vld [vmem:[#allocation34_spill] sm:$0xff] }
 0x721   :  { %v3241_v14 = vsel %vm853_vm5, %v3221_v54, %v3240_v31  ;;  %v8193_v2 = vld [vmem:[#allocation35_spill] sm:$0xff]  ;;  %v8194_v31 = vld [vmem:[#allocation36_spill] sm:$0xff] }
 0x722   :  { %v3242_v25 = vrot.slane %v3222_v62, 7 }
 0x723   :  { %v5741_v63 = vpop.eup %5740 }
 0x724   :  { %v3223_v4 = vmul.f32 %v5741_v63, %v5739_v13  ;;  %v3243_v26 = vsel %vm856_vm6, %v3242_v25, %v3241_v14  ;;  %v8195_v25 = vld [vmem:[#allocation38_spill] sm:$0xff] }
 0x726   :  { %v3244_v53 = vrot.slane %v3223_v4, 6 }
 0x728   :  { %v3245_v41 = vsel %vm859_vm7, %v3244_v53, %v3243_v26 }
 0x729   :  { %3312 = vmatmul.mubr.f32.vlgmr.msra.gmra.mrb[28].mxu0 %v3245_v41  ;;  %3383 = vmatmul.mubr.f32.vlgmr.msra.gmra.mrb[28].mxu1 %v3245_v41 }
 0x72a   :  { %4912 = vmatpush1.bf16.msra.mxu0 %v6106_v35  ;;  %4944 = vmatpush1.bf16.msra.mxu1 %v6115_v38  ;;  %v8173_v35 = vld [vmem:[#allocation15_spill] sm:$0xff]  ;;  %v8174_v38 = vld [vmem:[#allocation16_spill] sm:$0xff] }
 0x72b   :  { %4914 = vmatprep.subr.bf16.mxu0 %v6127_v42  ;;  %4946 = vmatprep.subr.bf16.mxu1 %v6142_v47  ;;  %v8175_v42 = vld [vmem:[#allocation17_spill] sm:$0xff]  ;;  %v8176_v47 = vld [vmem:[#allocation18_spill] sm:$0xff] }
 0x72c   :  { %3788 = vmatprep.mubr.f32.mxu0 %v7398_v48  ;;  %3859 = vmatprep.mubr.f32.mxu1 %v7398_v48  ;;  %v8187_v48 = vld [vmem:[#allocation29_spill] sm:$0xff] }
 0x72e   :  { %4916 = vmatpush1.bf16.msra.mxu0 %v6152_v50  ;;  %4948 = vmatpush1.bf16.msra.mxu1 %v8017_v6  ;;  %v8177_v50 = vld [vmem:[#allocation19_spill] sm:$0xff]  ;;  %v8178_v6 = vld [vmem:[#allocation20_spill] sm:$0xff] }
 0x72f   :  { %4918 = vmatprep.subr.bf16.mxu0 %v8018_v39  ;;  %4950 = vmatprep.subr.bf16.mxu1 %v8019_v5  ;;  %v8179_v39 = vld [vmem:[#allocation21_spill] sm:$0xff]  ;;  %v8180_v5 = vld [vmem:[#allocation22_spill] sm:$0xff] }
 0x732   :  { %4920 = vmatpush1.bf16.msra.mxu0 %v8020_v56  ;;  %4952 = vmatpush1.bf16.msra.mxu1 %v8021_v52  ;;  %v8181_v56 = vld [vmem:[#allocation23_spill] sm:$0xff]  ;;  %v8182_v52 = vld [vmem:[#allocation24_spill] sm:$0xff] }
 0x733   :  { %4922 = vmatprep.subr.bf16.mxu0 %v8022_v30  ;;  %4954 = vmatprep.subr.bf16.mxu1 %v8023_v9  ;;  %v8183_v30 = vld [vmem:[#allocation25_spill] sm:$0xff]  ;;  %v8184_v9 = vld [vmem:[#allocation26_spill] sm:$0xff] }
 0x736   :  { %4924 = vmatpush1.bf16.msra.mxu0 %v8024_v60  ;;  %4956 = vmatpush1.bf16.msra.mxu1 %v8056_v32  ;;  %v8185_v60 = vld [vmem:[#allocation27_spill] sm:$0xff]  ;;  %v8186_v32 = vld [vmem:[#allocation28_spill] sm:$0xff] }
 0x737   :  { %4926 = vmatprep.subr.bf16.mxu0 %v8173_v35  ;;  %4958 = vmatprep.subr.bf16.mxu1 %v8174_v38 }
 0x73a   :  { %4928 = vmatpush1.bf16.msra.mxu0 %v8175_v42  ;;  %4960 = vmatpush1.bf16.msra.mxu1 %v8176_v47 }
 0x73b   :  { %4930 = vmatprep.subr.bf16.mxu0 %v8177_v50  ;;  %4962 = vmatprep.subr.bf16.mxu1 %v8178_v6 }
 0x73e   :  { %4932 = vmatpush1.bf16.msra.mxu0 %v8179_v39  ;;  %4964 = vmatpush1.bf16.msra.mxu1 %v8180_v5 }
 0x73f   :  { %4934 = vmatprep.subr.bf16.mxu0 %v8181_v56  ;;  %4966 = vmatprep.subr.bf16.mxu1 %v8182_v52  ;;  %v8196_v56 = vld [vmem:[#allocation40_spill] sm:$0xff] }
 0x742   :  { %4936 = vmatpush1.bf16.msra.mxu0 %v8183_v30  ;;  %4968 = vmatpush1.bf16.msra.mxu1 %v8184_v9  ;;  %v8197_v30 = vld [vmem:[#allocation41_spill] sm:$0xff] }
 0x743   :  { %4938 = vmatprep.subr.bf16.mxu0 %v8185_v60  ;;  %4970 = vmatprep.subr.bf16.mxu1 %v8186_v32  ;;  %v8198_v60 = vld [vmem:[#allocation42_spill] sm:$0xff] }
 0x746   :  { %4940 = vmatpush1.bf16.msra.mxu0 %v8187_v48  ;;  %4972 = vmatpush1.bf16.msra.mxu1 %v8188_v46  ;;  %v8199_v48 = vld [vmem:[#allocation45_spill] sm:$0xff] }
 0x7fc   :  { %v3313_v55 = vpop.f32.mrb[28].mxu0  ;;  %v7587_v58 = vpop.f32.mrb[28].mxu1 }
 0x7fd   :  { %v3393_v36 = vrot.slane %v3313_v55, 2  ;;  %v3397_v59 = vrot.slane %v3313_v55, 3  ;;  %v3401_v40 = vrot.slane %v3313_v55, 4  ;;  %v3405_v27 = vrot.slane %v3313_v55, 5  ;;  %v7589_v44 = vpop.f32.mrb[29].mxu0  ;;  %v7591_v17 = vpop.f32.mrb[29].mxu1 }
 0x7fe   :  { %v3409_v57 = vrot.slane %v3313_v55, 6  ;;  %v3413_v19 = vrot.slane %v3313_v55, 7  ;;  %v3417_v1 = vrot.slane %v3313_v55, 1  ;;  %v3477_v24 = vadd.f32 %v3313_v55, %v8156_v20  ;;  %v8200_v55 = vld [vmem:[#allocation43_spill] sm:$0xff] }
 0x7ff   :  { %v3453_v37 = vadd.f32 %v3393_v36, %v8189_v0  ;;  %v3457_v61 = vadd.f32 %v3397_v59, %v8190_v12  ;;  %v3461_v3 = vadd.f32 %v3401_v40, %v8191_v51  ;;  %v3465_v54 = vadd.f32 %v3405_v27, %v8192_v22 }
 0x800   :  { %v3469_v62 = vadd.f32 %v3409_v57, %v8193_v2  ;;  %v3473_v13 = vadd.f32 %v3413_v19, %v8194_v31  ;;  %v4403_v14 = vmul.f32 -1.442695, %v3477_v24  ;;  %v3481_v63 = vadd.f32 %v3417_v1, %v8195_v25 }
 0x801   :  { %v4397_v4 = vmul.f32 -1.442695, %v3453_v37  ;;  %v4398_v26 = vmul.f32 -1.442695, %v3457_v61  ;;  %v4399_v53 = vmul.f32 -1.442695, %v3461_v3 }
 0x802   :  { %v4400_v41 = vmul.f32 -1.442695, %v3465_v54  ;;  %5742 = vpow2.f32 %v4403_v14  ;;  %v4401_v35 = vmul.f32 -1.442695, %v3469_v62  ;;  %v3395_v38 = vrot.slane %v7587_v58, 2 }
 0x803   :  { %5744 = vpow2.f32 %v4397_v4  ;;  %v3399_v42 = vrot.slane %v7587_v58, 3  ;;  %v4402_v47 = vmul.f32 -1.442695, %v3473_v13  ;;  %v3403_v50 = vrot.slane %v7587_v58, 4 }
 0x804   :  { %5746 = vpow2.f32 %v4398_v26  ;;  %v4404_v6 = vmul.f32 -1.442695, %v3481_v63  ;;  %v3407_v39 = vrot.slane %v7587_v58, 5  ;;  %v3411_v5 = vrot.slane %v7587_v58, 6  ;;  %v8201_v26 = vld [vmem:[#allocation50_spill] sm:$0xff] }
 0x805   :  { %5748 = vpow2.f32 %v4399_v53  ;;  %v3455_v52 = vadd.f32 %v3395_v38, %v8196_v56  ;;  %v3459_v9 = vadd.f32 %v3399_v42, %v8197_v30  ;;  %v3463_v32 = vadd.f32 %v3403_v50, %v8198_v60 }
 0x806   :  { %5750 = vpow2.f32 %v4400_v41  ;;  %v3467_v46 = vadd.f32 %v3407_v39, %v8199_v48  ;;  %v3471_v36 = vadd.f32 %v3411_v5, %v8200_v55  ;;  %v3415_v57 = vrot.slane %v7587_v58, 7 }
 0x807   :  { %5752 = vpow2.f32 %v4401_v35  ;;  %v3394_v24 = vrot.slane %v7589_v44, 2  ;;  %v3398_v3 = vrot.slane %v7589_v44, 3  ;;  %v3419_v13 = vrot.slane %v7587_v58, 1 }
 0x808   :  { %5754 = vpow2.f32 %v4402_v47  ;;  %v3402_v14 = vrot.slane %v7589_v44, 4  ;;  %v3475_v53 = vadd.f32 %v3415_v57, %v8201_v26  ;;  %v3406_v41 = vrot.slane %v7589_v44, 5  ;;  %v8202_v47 = vld [vmem:[#allocation39_spill] sm:$0xff] }
 0x809   :  { %5756 = vpow2.f32 %v4404_v6  ;;  %v3410_v42 = vrot.slane %v7589_v44, 6  ;;  %v3454_v50 = vadd.f32 %v3394_v24, %v8202_v47  ;;  %v3414_v5 = vrot.slane %v7589_v44, 7 }
 0x80a   :  { %5758 = vtanh.f32 %v3455_v52  ;;  %v8203_v52 = vld [vmem:[#allocation46_spill] sm:$0xff]  ;;  %v3418_v24 = vrot.slane %v7589_v44, 1 }
 0x80b   :  { %5760 = vtanh.f32 %v3459_v9  ;;  %v3458_v9 = vadd.f32 %v3398_v3, %v8203_v52 }
 0x80c   :  { %v5743_v59 = vpop.eup %5742  ;;  %5762 = vtanh.f32 %v3463_v32 }
 0x80d   :  { %v5745_v40 = vpop.eup %5744  ;;  %v3515_v27 = vadd.f32 1.0, %v5743_v59  ;;  %5764 = vtanh.f32 %v3467_v46 }
 0x80e   :  { %v5747_v19 = vpop.eup %5746  ;;  %v3509_v1 = vadd.f32 1.0, %v5745_v40  ;;  %5766 = vtanh.f32 %v3471_v36  ;;  %v8204_v36 = vld [vmem:[#allocation51_spill] sm:$0xff] }
 0x80f   :  { %v5749_v37 = vpop.eup %5748  ;;  %v3510_v61 = vadd.f32 1.0, %v5747_v19  ;;  %5768 = vrcp.f32 %v3515_v27  ;;  %v3479_v59 = vadd.f32 %v7587_v58, %v8204_v36  ;;  %v8205_v40 = vld [vmem:[#allocation47_spill] sm:$0xff]  ;;  %v8206_v19 = vld [vmem:[#allocation54_spill] sm:$0xff]  ;;  %v8209_v58 = vld [vmem:[#allocation52_spill] sm:$0xff] }
 0x810   :  { %v5751_v54 = vpop.eup %5750  ;;  %v3511_v62 = vadd.f32 1.0, %v5749_v37  ;;  %5770 = vrcp.f32 %v3509_v1  ;;  %v3462_v27 = vadd.f32 %v3402_v14, %v8205_v40  ;;  %v3483_v1 = vadd.f32 %v3419_v13, %v8206_v19  ;;  %v8207_v37 = vld [vmem:[#allocation48_spill] sm:$0xff]  ;;  %v8210_v13 = vld [vmem:[#allocation53_spill] sm:$0xff] }
 0x811   :  { %v5753_v63 = vpop.eup %5752  ;;  %v3512_v4 = vadd.f32 1.0, %v5751_v54  ;;  %5772 = vrcp.f32 %v3510_v61  ;;  %v3466_v61 = vadd.f32 %v3406_v41, %v8207_v37  ;;  %v4406_v14 = vmul.f32 -1.442695, %v3458_v9 }
 0x812   :  { %v5755_v35 = vpop.eup %5754  ;;  %v3513_v38 = vadd.f32 1.0, %v5753_v63  ;;  %5774 = vrcp.f32 %v3511_v62  ;;  %v8208_v62 = vld [vmem:[#allocation49_spill] sm:$0xff]  ;;  %v4405_v63 = vmul.f32 -1.442695, %v3454_v50  ;;  %v3478_v19 = vadd.f32 %v7589_v44, %v8210_v13 }
 0x813   :  { %v5757_v6 = vpop.eup %5756  ;;  %v3514_v39 = vadd.f32 1.0, %v5755_v35  ;;  %5776 = vrcp.f32 %v3512_v4  ;;  %v3470_v3 = vadd.f32 %v3410_v42, %v8208_v62  ;;  %v3396_v4 = vrot.slane %v7591_v17, 2  ;;  %v8211_v42 = vld [vmem:[#allocation55_spill] sm:$0xff] }
 0x814   :  { %v5759_v32 = vpop.eup %5758  ;;  %v3516_v46 = vadd.f32 1.0, %v5757_v6  ;;  %5778 = vrcp.f32 %v3513_v38  ;;  %v3474_v38 = vadd.f32 %v3414_v5, %v8209_v58  ;;  %v3400_v6 = vrot.slane %v7591_v17, 3 }
 0x815   :  { %v5761_v57 = vpop.eup %5760  ;;  %5780 = vrcp.f32 %v3514_v39  ;;  %v4407_v41 = vmul.f32 -1.442695, %v3462_v27  ;;  %v3482_v50 = vadd.f32 %v3418_v24, %v8211_v42  ;;  %v4408_v62 = vmul.f32 -1.442695, %v3466_v61 }
 0x816   :  { %v5763_v54 = vpop.eup %5762  ;;  %5782 = vrcp.f32 %v3516_v46  ;;  %v3404_v46 = vrot.slane %v7591_v17, 4  ;;  %v4409_v5 = vmul.f32 -1.442695, %v3470_v3  ;;  %v3412_v9 = vrot.slane %v7591_v17, 6 }
 0x817   :  { %v5765_v35 = vpop.eup %5764  ;;  %5784 = vtanh.f32 %v3475_v53  ;;  %v3408_v53 = vrot.slane %v7591_v17, 5  ;;  %v4410_v44 = vmul.f32 -1.442695, %v3474_v38  ;;  %v3460_v27 = vadd.f32 %v3400_v6, %v6588_v34 }
 0x818   :  { %v5767_v39 = vpop.eup %5766  ;;  %5786 = vtanh.f32 %v3479_v59  ;;  %v3456_v59 = vadd.f32 %v3396_v4, %v8055_v21  ;;  %v4411_v24 = vmul.f32 -1.442695, %v3478_v19  ;;  %v3464_v61 = vadd.f32 %v3404_v46, %v6597_v43 }
 0x819   :  { %v5769_v37 = vpop.eup %5768  ;;  %5788 = vtanh.f32 %v3483_v1  ;;  %v4412_v42 = vmul.f32 -1.442695, %v3482_v50  ;;  %v3468_v4 = vadd.f32 %v3408_v53, %v6606_v28 }
 0x81a   :  { %v5771_v40 = vpop.eup %5770  ;;  %5790 = vpow2.f32 %v4405_v63  ;;  %v4413_v38 = vmul.f32 -1.442695, %v3456_v59 }
 0x81b   :  { %v5773_v58 = vpop.eup %5772  ;;  %v7639_v52 = vmul.f32 %v5771_v40, %v5759_v32  ;;  %5792 = vpow2.f32 %v4406_v14  ;;  %v3472_v40 = vadd.f32 %v3412_v9, %v6620_v29 }
 0x81c   :  { %v5775_v1 = vpop.eup %5774  ;;  %v7642_v13 = vmul.f32 %v5773_v58, %v5761_v57  ;;  %5794 = vpow2.f32 %v4407_v41  ;;  %v4414_v58 = vmul.f32 -1.442695, %v3460_v27 }
 0x81d   :  { %v5777_v63 = vpop.eup %5776  ;;  %v7645_v3 = vmul.f32 %v5775_v1, %v5763_v54  ;;  %5796 = vpow2.f32 %v4408_v62  ;;  %v4415_v54 = vmul.f32 -1.442695, %v3464_v61  ;;  %v4416_v62 = vmul.f32 -1.442695, %v3468_v4 }
 0x81e   :  { %v5779_v32 = vpop.eup %5778  ;;  %5798 = vpow2.f32 %v4409_v5  ;;  %v7649_v14 = vmul.f32 %v5777_v63, %v5765_v35  ;;  %v4417_v50 = vmul.f32 -1.442695, %v3472_v40  ;;  %v3416_v35 = vrot.slane %v7591_v17, 7 }
 0x81f   :  { %v5781_v57 = vpop.eup %5780  ;;  %5800 = vpow2.f32 %v4410_v44  ;;  %v7651_v19 = vmul.f32 %v5779_v32, %v5767_v39 }
 0x820   :  { %v5783_v6 = vpop.eup %5782  ;;  %5802 = vpow2.f32 %v4411_v24  ;;  %v3476_v63 = vadd.f32 %v3416_v35, %v6687_v18 }
 0x821   :  { %v5785_v41 = vpop.eup %5784  ;;  %5804 = vpow2.f32 %v4412_v42 }
 0x822   :  { %v5787_v46 = vpop.eup %5786  ;;  %5806 = vpow2.f32 %v4413_v38  ;;  %v7653_v53 = vmul.f32 %v5785_v41, %v5781_v57 }
 0x823   :  { %v5789_v5 = vpop.eup %5788  ;;  %5808 = vpow2.f32 %v4414_v58  ;;  %v7656_v9 = vmul.f32 %v5787_v46, %v5769_v37  ;;  %v3480_v37 = vadd.f32 %v7591_v17, %v6694_v23 }
 0x824   :  { %v5791_v59 = vpop.eup %5790  ;;  %5810 = vpow2.f32 %v4415_v54  ;;  %v7658_v39 = vmul.f32 %v5789_v5, %v5783_v6  ;;  %v3420_v6 = vrot.slane %v7591_v17, 1 }
 0x825   :  { %v5793_v44 = vpop.eup %5792  ;;  %v3557_v27 = vadd.f32 1.0, %v5791_v59  ;;  %5812 = vpow2.f32 %v4416_v62  ;;  %v4418_v62 = vmul.f32 -1.442695, %v3476_v63  ;;  %v4419_v5 = vmul.f32 -1.442695, %v3480_v37 }
 0x826   :  { %v5795_v42 = vpop.eup %5794  ;;  %v3558_v1 = vadd.f32 1.0, %v5793_v44  ;;  %5814 = vpow2.f32 %v4417_v50 }
 0x827   :  { %v5797_v24 = vpop.eup %5796  ;;  %v3559_v61 = vadd.f32 1.0, %v5795_v42  ;;  %5816 = vrcp.f32 %v3557_v27  ;;  %v3484_v27 = vadd.f32 %v3420_v6, %v6703_v33 }
 0x828   :  { %v5799_v4 = vpop.eup %5798  ;;  %v3560_v32 = vadd.f32 1.0, %v5797_v24  ;;  %5818 = vrcp.f32 %v3558_v1 }
 0x829   :  { %v5801_v40 = vpop.eup %5800  ;;  %v3561_v38 = vadd.f32 1.0, %v5799_v4  ;;  %5820 = vrcp.f32 %v3559_v61  ;;  %v3645_v61 = vrot.slane %v7514_v7, 7  ;;  %v3649_v7 = vrot.slane %v7530_v10, 7 }
 0x82a   :  { %v5803_v57 = vpop.eup %5802  ;;  %v3562_v58 = vadd.f32 1.0, %v5801_v40  ;;  %5822 = vrcp.f32 %v3560_v32  ;;  %v3646_v32 = vrot.slane %v7518_v11, 7 }
 0x82b   :  { %v5805_v54 = vpop.eup %5804  ;;  %v3563_v41 = vadd.f32 1.0, %v5803_v57  ;;  %5824 = vrcp.f32 %v3561_v38  ;;  %v3647_v38 = vrot.slane %v7522_v15, 7  ;;  %v4420_v57 = vmul.f32 -1.442695, %v3484_v27 }
 0x82c   :  { %v5807_v46 = vpop.eup %5806  ;;  %v3564_v50 = vadd.f32 1.0, %v5805_v54  ;;  %5826 = vrcp.f32 %v3562_v58  ;;  %v3648_v54 = vrot.slane %v7526_v16, 7  ;;  %v3651_v16 = vrot.slane %v7538_v45, 7 }
 0x82d   :  { %v5809_v35 = vpop.eup %5808  ;;  %5828 = vrcp.f32 %v3563_v41  ;;  %v3613_v59 = vadd.f32 1.0, %v5807_v46 }
 0x82e   :  { %v5811_v44 = vpop.eup %5810  ;;  %5830 = vrcp.f32 %v3564_v50  ;;  %v3614_v42 = vadd.f32 1.0, %v5809_v35 }
 0x82f   :  { %v5813_v1 = vpop.eup %5812  ;;  %5832 = vpow2.f32 %v4418_v62  ;;  %v3615_v24 = vadd.f32 1.0, %v5811_v44 }
 0x830   :  { %v5815_v17 = vpop.eup %5814  ;;  %5834 = vpow2.f32 %v4419_v5  ;;  %v3616_v63 = vadd.f32 1.0, %v5813_v1  ;;  %v3650_v5 = vrot.slane %v7534_v49, 7 }
 0x831   :  { %v5817_v4 = vpop.eup %5816  ;;  %v3617_v37 = vadd.f32 1.0, %v5815_v17  ;;  %5836 = vrcp.f32 %v3613_v59 }
 0x832   :  { %v5819_v40 = vpop.eup %5818  ;;  %5838 = vrcp.f32 %v3614_v42  ;;  %v3661_v58 = vmul.f32 %v5817_v4, %v3645_v61 }
 0x833   :  { %v5821_v6 = vpop.eup %5820  ;;  %5840 = vrcp.f32 %v3615_v24  ;;  %v3662_v41 = vmul.f32 %v5819_v40, %v3646_v32 }
 0x834   :  { %v5823_v62 = vpop.eup %5822  ;;  %5842 = vrcp.f32 %v3616_v63  ;;  %v3663_v46 = vmul.f32 %v5821_v6, %v3647_v38  ;;  %v7671_v11 = vadd.f32 %v7639_v52, %v3661_v58  ;;  %v3652_v52 = vrot.slane %v7542_v8, 7 }
 0x835   :  { %v5825_v50 = vpop.eup %5824  ;;  %5844 = vrcp.f32 %v3617_v37  ;;  %v3664_v15 = vmul.f32 %v5823_v62, %v3648_v54  ;;  %v7675_v35 = vadd.f32 %v7642_v13, %v3662_v41 }
 0x836   :  { %v5827_v59 = vpop.eup %5826  ;;  %5846 = vpow2.f32 %v4420_v57  ;;  %v3665_v44 = vmul.f32 %v5825_v50, %v3649_v7  ;;  %v7679_v10 = vadd.f32 %v7645_v3, %v3663_v46 }
 0x837   :  { %v5829_v27 = vpop.eup %5828  ;;  %v3666_v42 = vmul.f32 %v5827_v59, %v3650_v5  ;;  %v7683_v1 = vadd.f32 %v7649_v14, %v3664_v15  ;;  %5848 = vtanh.f32 %v7671_v11 }
 0x838   :  { %v5831_v49 = vpop.eup %5830  ;;  %v3667_v13 = vmul.f32 %v5829_v27, %v3651_v16  ;;  %v7687_v24 = vadd.f32 %v7651_v19, %v3665_v44  ;;  %5850 = vtanh.f32 %v7675_v35 }
 0x839   :  { %v5833_v45 = vpop.eup %5832  ;;  %v3668_v17 = vmul.f32 %v5831_v49, %v3652_v52  ;;  %v7691_v3 = vadd.f32 %v7653_v53, %v3666_v42  ;;  %5852 = vtanh.f32 %v7679_v10 }
 0x83a   :  { %v5835_v8 = vpop.eup %5834  ;;  %v3618_v61 = vadd.f32 1.0, %v5833_v45  ;;  %v7695_v14 = vadd.f32 %v7656_v9, %v3667_v13  ;;  %5854 = vtanh.f32 %v7683_v1 }
 0x83b   :  { %v5837_v63 = vpop.eup %5836  ;;  %v3619_v4 = vadd.f32 1.0, %v5835_v8  ;;  %v7699_v19 = vadd.f32 %v7658_v39, %v3668_v17  ;;  %5856 = vtanh.f32 %v7687_v24 }
 0x83c   :  { %v5839_v32 = vpop.eup %5838  ;;  %5858 = vrcp.f32 %v3618_v61 }
 0x83d   :  { %v5841_v53 = vpop.eup %5840  ;;  %5860 = vrcp.f32 %v3619_v4 }
 0x83e   :  { %v5843_v37 = vpop.eup %5842  ;;  %5862 = vtanh.f32 %v7691_v3 }
 0x83f   :  { %v5845_v40 = vpop.eup %5844  ;;  %5864 = vtanh.f32 %v7695_v14 }
 0x840   :  { %v5847_v9 = vpop.eup %5846  ;;  %5866 = vtanh.f32 %v7699_v19 }
 0x841   :  { %v5849_v38 = vpop.eup %5848  ;;  %v3620_v57 = vadd.f32 1.0, %v5847_v9 }
 0x842   :  { %v5851_v58 = vpop.eup %5850  ;;  %v3693_v39 = vmul.f32 %v5849_v38, %v5837_v63 }
 0x843   :  { %v5853_v6 = vpop.eup %5852  ;;  %5868 = vrcp.f32 %v3620_v57  ;;  %v3694_v54 = vmul.f32 %v5851_v58, %v5839_v32 }
 0x844   :  { %v5855_v41 = vpop.eup %5854  ;;  %v3695_v62 = vmul.f32 %v5853_v6, %v5841_v53  ;;  %v3709_v7 = vrot.slane %v3693_v39, 6 }
 0x845   :  { %v5857_v46 = vpop.eup %5856  ;;  %v3696_v50 = vmul.f32 %v5855_v41, %v5843_v37  ;;  %v3710_v5 = vrot.slane %v3694_v54, 5 }
 0x846   :  { %v5859_v15 = vpop.eup %5858  ;;  %v3697_v59 = vmul.f32 %v5857_v46, %v5845_v40  ;;  %v3712_v16 = vrot.slane %v3695_v62, 4 }
 0x847   :  { %v5861_v44 = vpop.eup %5860  ;;  %v3711_v27 = vsel %vm841_vm1, %v3710_v5, %v3709_v7  ;;  %v3714_v52 = vrot.slane %v3696_v50, 3 }
 0x848   :  { %v5863_v42 = vpop.eup %5862  ;;  %v3713_v49 = vsel %vm844_vm2, %v3712_v16, %v3711_v27  ;;  %v3716_v13 = vrot.slane %v3697_v59, 2 }
 0x849   :  { %v5865_v45 = vpop.eup %5864  ;;  %v3698_v17 = vmul.f32 %v5863_v42, %v5859_v15  ;;  %v3715_v8 = vsel %vm847_vm3, %v3714_v52, %v3713_v49 }
 0x84a   :  { %v3699_v61 = vmul.f32 %v5865_v45, %v5861_v44  ;;  %v3717_v63 = vsel %vm850_vm4, %v3716_v13, %v3715_v8  ;;  %v5867_v4 = vpop.eup %5866 }
 0x84b   :  { %v3718_v32 = vrot.slane %v3698_v17, 1 }
 0x84d   :  { %v5869_v53 = vpop.eup %5868  ;;  %v3719_v37 = vsel %vm853_vm5, %v3718_v32, %v3717_v63 }
 0x84e   :  { %v3700_v40 = vmul.f32 %v5869_v53, %v5867_v4  ;;  %v3720_v9 = vsel %vm856_vm6, %v3699_v61, %v3719_v37 }
 0x850   :  { %v3721_v38 = vrot.slane %v3700_v40, 7 }
 0x852   :  { %v3722_v57 = vsel %vm859_vm7, %v3721_v38, %v3720_v9 }
 0x853   :  { %3789 = vmatmul.mubr.f32.vlgmr.msra.gmra.mrb[30].mxu0 %v3722_v57  ;;  %3860 = vmatmul.mubr.f32.vlgmr.msra.gmra.mrb[30].mxu1 %v3722_v57 }
 0x926   :  { %v3790_v58 = vpop.f32.mrb[30].mxu0  ;;  %v7712_v39 = vpop.f32.mrb[30].mxu1 }
 0x927   :  { %v3870_v6 = vrot.slane %v3790_v58, 1  ;;  %v3874_v54 = vrot.slane %v3790_v58, 2  ;;  %v3878_v41 = vrot.slane %v3790_v58, 3  ;;  %v3882_v62 = vrot.slane %v3790_v58, 4  ;;  %v7714_v7 = vpop.f32.mrb[31].mxu0  ;;  %v7716_v46 = vpop.f32.mrb[31].mxu1 }
 0x928   :  { %v3886_v50 = vrot.slane %v3790_v58, 5  ;;  %v3890_v5 = vrot.slane %v3790_v58, 6  ;;  %v3894_v15 = vrot.slane %v3790_v58, 7  ;;  %v3958_v59 = vadd.f32 %v3790_v58, %v8195_v25 }
 0x929   :  { %v3930_v16 = vadd.f32 %v3870_v6, %v8189_v0  ;;  %v3934_v44 = vadd.f32 %v3874_v54, %v8190_v12  ;;  %v3938_v27 = vadd.f32 %v3878_v41, %v8191_v51  ;;  %v3942_v52 = vadd.f32 %v3882_v62, %v8192_v22 }
 0x92a   :  { %v3946_v42 = vadd.f32 %v3886_v50, %v8193_v2  ;;  %v3950_v49 = vadd.f32 %v3890_v5, %v8194_v31  ;;  %v4428_v13 = vmul.f32 -1.442695, %v3958_v59  ;;  %v3954_v45 = vadd.f32 %v3894_v15, %v8156_v20 }
 0x92b   :  { %v4421_v17 = vmul.f32 -1.442695, %v3930_v16  ;;  %v4422_v8 = vmul.f32 -1.442695, %v3934_v44  ;;  %v4423_v61 = vmul.f32 -1.442695, %v3938_v27 }
 0x92c   :  { %v4424_v63 = vmul.f32 -1.442695, %v3942_v52  ;;  %5870 = vpow2.f32 %v4428_v13  ;;  %v4425_v0 = vmul.f32 -1.442695, %v3946_v42  ;;  %v3872_v12 = vrot.slane %v7712_v39, 1 }
 0x92d   :  { %5872 = vpow2.f32 %v4421_v17  ;;  %v3876_v51 = vrot.slane %v7712_v39, 2  ;;  %v4426_v22 = vmul.f32 -1.442695, %v3950_v49  ;;  %v3880_v2 = vrot.slane %v7712_v39, 3  ;;  %v8212_v17 = vld [vmem:[#allocation46_spill] sm:$0xff] }
 0x92e   :  { %5874 = vpow2.f32 %v4422_v8  ;;  %v4427_v31 = vmul.f32 -1.442695, %v3954_v45  ;;  %v3884_v25 = vrot.slane %v7712_v39, 4  ;;  %v3888_v20 = vrot.slane %v7712_v39, 5 }
 0x92f   :  { %5876 = vpow2.f32 %v4423_v61  ;;  %v3932_v4 = vadd.f32 %v3872_v12, %v8196_v56  ;;  %v3936_v32 = vadd.f32 %v3876_v51, %v8197_v30  ;;  %v3940_v53 = vadd.f32 %v3880_v2, %v8198_v60 }
 0x930   :  { %5878 = vpow2.f32 %v4424_v63  ;;  %v3944_v37 = vadd.f32 %v3884_v25, %v8199_v48  ;;  %v3948_v40 = vadd.f32 %v3888_v20, %v8200_v55  ;;  %v3892_v38 = vrot.slane %v7712_v39, 6  ;;  %v8216_v20 = vld [vmem:[#allocation49_spill] sm:$0xff] }
 0x931   :  { %5880 = vpow2.f32 %v4425_v0  ;;  %v3896_v56 = vrot.slane %v7712_v39, 7  ;;  %v3871_v60 = vrot.slane %v7714_v7, 1  ;;  %v3875_v55 = vrot.slane %v7714_v7, 2  ;;  %v8213_v0 = vld [vmem:[#allocation47_spill] sm:$0xff] }
 0x932   :  { %5882 = vpow2.f32 %v4426_v22  ;;  %v3952_v50 = vadd.f32 %v3892_v38, %v8201_v26  ;;  %v3879_v5 = vrot.slane %v7714_v7, 3  ;;  %v3883_v44 = vrot.slane %v7714_v7, 4  ;;  %v8214_v22 = vld [vmem:[#allocation54_spill] sm:$0xff] }
 0x933   :  { %5884 = vpow2.f32 %v4427_v31  ;;  %v3956_v16 = vadd.f32 %v3896_v56, %v8204_v36  ;;  %v3887_v42 = vrot.slane %v7714_v7, 5  ;;  %v3931_v49 = vadd.f32 %v3871_v60, %v8202_v47  ;;  %v8215_v47 = vld [vmem:[#allocation48_spill] sm:$0xff]  ;;  %v8218_v56 = vld [vmem:[#allocation53_spill] sm:$0xff] }
 0x934   :  { %5886 = vtanh.f32 %v3932_v4  ;;  %v3891_v26 = vrot.slane %v7714_v7, 6  ;;  %v3935_v8 = vadd.f32 %v3875_v55, %v8212_v17  ;;  %v3895_v36 = vrot.slane %v7714_v7, 7 }
 0x935   :  { %5888 = vtanh.f32 %v3936_v32  ;;  %v3939_v12 = vadd.f32 %v3879_v5, %v8213_v0  ;;  %v3960_v2 = vadd.f32 %v7712_v39, %v8214_v22  ;;  %v3943_v31 = vadd.f32 %v3883_v44, %v8215_v47 }
 0x936   :  { %v5871_v9 = vpop.eup %5870  ;;  %5890 = vtanh.f32 %v3940_v53  ;;  %v3947_v4 = vadd.f32 %v3887_v42, %v8216_v20  ;;  %v4429_v32 = vmul.f32 -1.442695, %v3931_v49  ;;  %v3873_v53 = vrot.slane %v7716_v46, 1 }
 0x937   :  { %v5873_v57 = vpop.eup %5872  ;;  %v3993_v58 = vadd.f32 1.0, %v5871_v9  ;;  %5892 = vtanh.f32 %v3944_v37  ;;  %v4430_v38 = vmul.f32 -1.442695, %v3935_v8  ;;  %v3955_v39 = vadd.f32 %v3895_v36, %v8218_v56 }
 0x938   :  { %v5875_v30 = vpop.eup %5874  ;;  %v3986_v6 = vadd.f32 1.0, %v5873_v57  ;;  %5894 = vtanh.f32 %v3948_v40  ;;  %v8217_v40 = vld [vmem:[#allocation52_spill] sm:$0xff]  ;;  %v3877_v57 = vrot.slane %v7716_v46, 2  ;;  %v4432_v55 = vmul.f32 -1.442695, %v3943_v31 }
 0x939   :  { %v5877_v54 = vpop.eup %5876  ;;  %v3987_v48 = vadd.f32 1.0, %v5875_v30  ;;  %5896 = vrcp.f32 %v3993_v58  ;;  %v3951_v9 = vadd.f32 %v3891_v26, %v8217_v40  ;;  %v4431_v30 = vmul.f32 -1.442695, %v3939_v12 }
 0x93a   :  { %v5879_v41 = vpop.eup %5878  ;;  %v3988_v62 = vadd.f32 1.0, %v5877_v54  ;;  %5898 = vrcp.f32 %v3986_v6  ;;  %v3881_v6 = vrot.slane %v7716_v46, 3  ;;  %v8219_v54 = vld [vmem:[#allocation55_spill] sm:$0xff]  ;;  %v3889_v5 = vrot.slane %v7716_v46, 5 }
 0x93b   :  { %v5881_v15 = vpop.eup %5880  ;;  %v3989_v59 = vadd.f32 1.0, %v5879_v41  ;;  %5900 = vrcp.f32 %v3987_v48  ;;  %v3959_v48 = vadd.f32 %v7714_v7, %v8219_v54  ;;  %v3885_v41 = vrot.slane %v7716_v46, 4 }
 0x93c   :  { %v5883_v27 = vpop.eup %5882  ;;  %v3990_v52 = vadd.f32 1.0, %v5881_v15  ;;  %5902 = vrcp.f32 %v3988_v62  ;;  %v3933_v15 = vadd.f32 %v3873_v53, %v8055_v21  ;;  %v4434_v44 = vmul.f32 -1.442695, %v3951_v9 }
 0x93d   :  { %v5885_v13 = vpop.eup %5884  ;;  %v3991_v45 = vadd.f32 1.0, %v5883_v27  ;;  %5904 = vrcp.f32 %v3989_v59  ;;  %v3937_v27 = vadd.f32 %v3877_v57, %v6588_v34  ;;  %v4435_v7 = vmul.f32 -1.442695, %v3955_v39 }
 0x93e   :  { %v5887_v61 = vpop.eup %5886  ;;  %v3992_v63 = vadd.f32 1.0, %v5885_v13  ;;  %5906 = vrcp.f32 %v3990_v52  ;;  %v3941_v49 = vadd.f32 %v3881_v6, %v6597_v43  ;;  %v4436_v26 = vmul.f32 -1.442695, %v3959_v48 }
 0x93f   :  { %v5889_v51 = vpop.eup %5888  ;;  %5908 = vrcp.f32 %v3991_v45  ;;  %v3945_v21 = vadd.f32 %v3885_v41, %v6606_v28  ;;  %v3949_v34 = vadd.f32 %v3889_v5, %v6620_v29  ;;  %v4438_v0 = vmul.f32 -1.442695, %v3937_v27 }
 0x940   :  { %v5891_v25 = vpop.eup %5890  ;;  %5910 = vrcp.f32 %v3992_v63  ;;  %v4439_v12 = vmul.f32 -1.442695, %v3941_v49  ;;  %v3893_v29 = vrot.slane %v7716_v46, 6  ;;  %v3961_v54 = vadd.f32 %v7716_v46, %v6703_v33 }
 0x941   :  { %v5893_v37 = vpop.eup %5892  ;;  %5912 = vtanh.f32 %v3952_v50  ;;  %v4433_v50 = vmul.f32 -1.442695, %v3947_v4  ;;  %v4440_v22 = vmul.f32 -1.442695, %v3945_v21  ;;  %v4441_v47 = vmul.f32 -1.442695, %v3949_v34 }
 0x942   :  { %v5895_v58 = vpop.eup %5894  ;;  %5914 = vtanh.f32 %v3956_v16  ;;  %v4125_v34 = vrot.slane %v7683_v1, 7  ;;  %v4129_v1 = vrot.slane %v7699_v19, 7 }
 0x943   :  { %v5897_v60 = vpop.eup %5896  ;;  %5916 = vtanh.f32 %v3960_v2 }
 0x944   :  { %v5899_v62 = vpop.eup %5898  ;;  %5918 = vpow2.f32 %v4429_v32  ;;  %v3897_v32 = vrot.slane %v7716_v46, 7 }
 0x945   :  { %v5901_v59 = vpop.eup %5900  ;;  %v7764_v16 = vmul.f32 %v5899_v62, %v5887_v61  ;;  %5920 = vpow2.f32 %v4430_v38  ;;  %v4437_v61 = vmul.f32 -1.442695, %v3933_v15 }
 0x946   :  { %v5903_v52 = vpop.eup %5902  ;;  %v7767_v42 = vmul.f32 %v5901_v59, %v5889_v51  ;;  %5922 = vpow2.f32 %v4431_v30  ;;  %v3957_v30 = vadd.f32 %v3897_v32, %v6694_v23  ;;  %v4444_v23 = vmul.f32 -1.442695, %v3961_v54 }
 0x947   :  { %v5905_v13 = vpop.eup %5904  ;;  %v7770_v45 = vmul.f32 %v5903_v52, %v5891_v25  ;;  %5924 = vpow2.f32 %v4432_v55 }
 0x948   :  { %v5907_v17 = vpop.eup %5906  ;;  %v7773_v8 = vmul.f32 %v5905_v13, %v5893_v37  ;;  %5926 = vpow2.f32 %v4433_v50  ;;  %v4443_v15 = vmul.f32 -1.442695, %v3957_v30 }
 0x949   :  { %v5909_v63 = vpop.eup %5908  ;;  %v7776_v36 = vmul.f32 %v5907_v17, %v5895_v58  ;;  %5928 = vpow2.f32 %v4434_v44  ;;  %v3953_v58 = vadd.f32 %v3893_v29, %v6687_v18 }
 0x94a   :  { %v5911_v43 = vpop.eup %5910  ;;  %5930 = vpow2.f32 %v4435_v7  ;;  %v4122_v7 = vrot.slane %v7671_v11, 7 }
 0x94b   :  { %v5913_v51 = vpop.eup %5912  ;;  %5932 = vpow2.f32 %v4436_v26  ;;  %v4442_v50 = vmul.f32 -1.442695, %v3953_v58  ;;  %v4123_v26 = vrot.slane %v7675_v35, 7 }
 0x94c   :  { %v5915_v2 = vpop.eup %5914  ;;  %v7778_v28 = vmul.f32 %v5913_v51, %v5909_v63  ;;  %5934 = vpow2.f32 %v4437_v61  ;;  %v4124_v61 = vrot.slane %v7679_v10, 7 }
 0x94d   :  { %v5917_v31 = vpop.eup %5916  ;;  %v7780_v25 = vmul.f32 %v5915_v2, %v5911_v43  ;;  %5936 = vpow2.f32 %v4438_v0  ;;  %v4126_v43 = vrot.slane %v7687_v24, 7 }
 0x94e   :  { %v5919_v20 = vpop.eup %5918  ;;  %v7783_v4 = vmul.f32 %v5917_v31, %v5897_v60  ;;  %5938 = vpow2.f32 %v4439_v12  ;;  %v4127_v12 = vrot.slane %v7691_v3, 7 }
 0x94f   :  { %v5921_v53 = vpop.eup %5920  ;;  %v4034_v37 = vadd.f32 1.0, %v5919_v20  ;;  %5940 = vpow2.f32 %v4440_v22  ;;  %v4128_v22 = vrot.slane %v7695_v14, 7 }
 0x950   :  { %v5923_v40 = vpop.eup %5922  ;;  %v4035_v9 = vadd.f32 1.0, %v5921_v53  ;;  %5942 = vpow2.f32 %v4441_v47 }
 0x951   :  { %v5925_v38 = vpop.eup %5924  ;;  %v4036_v57 = vadd.f32 1.0, %v5923_v40  ;;  %5944 = vrcp.f32 %v4034_v37 }
 0x952   :  { %v5927_v56 = vpop.eup %5926  ;;  %v4037_v39 = vadd.f32 1.0, %v5925_v38  ;;  %5946 = vrcp.f32 %v4035_v9 }
 0x953   :  { %v5929_v6 = vpop.eup %5928  ;;  %v4038_v60 = vadd.f32 1.0, %v5927_v56  ;;  %5948 = vrcp.f32 %v4036_v57 }
 0x954   :  { %v5931_v48 = vpop.eup %5930  ;;  %v4039_v55 = vadd.f32 1.0, %v5929_v6  ;;  %5950 = vrcp.f32 %v4037_v39 }
 0x955   :  { %v5933_v41 = vpop.eup %5932  ;;  %v4040_v62 = vadd.f32 1.0, %v5931_v48  ;;  %5952 = vrcp.f32 %v4038_v60 }
 0x956   :  { %v5935_v5 = vpop.eup %5934  ;;  %v4041_v18 = vadd.f32 1.0, %v5933_v41  ;;  %5954 = vrcp.f32 %v4039_v55 }
 0x957   :  { %v5937_v59 = vpop.eup %5936  ;;  %5956 = vrcp.f32 %v4040_v62  ;;  %v4090_v27 = vadd.f32 1.0, %v5935_v5 }
 0x958   :  { %v5939_v44 = vpop.eup %5938  ;;  %5958 = vrcp.f32 %v4041_v18  ;;  %v4091_v33 = vadd.f32 1.0, %v5937_v59 }
 0x959   :  { %v5941_v52 = vpop.eup %5940  ;;  %5960 = vpow2.f32 %v4442_v50  ;;  %v4092_v49 = vadd.f32 1.0, %v5939_v44 }
 0x95a   :  { %v5943_v46 = vpop.eup %5942  ;;  %5962 = vpow2.f32 %v4443_v15  ;;  %v4093_v21 = vadd.f32 1.0, %v5941_v52 }
 0x95b   :  { %v5945_v13 = vpop.eup %5944  ;;  %5964 = vpow2.f32 %v4444_v23  ;;  %v4094_v20 = vadd.f32 1.0, %v5943_v46 }
 0x95c   :  { %v5947_v17 = vpop.eup %5946  ;;  %v4138_v63 = vmul.f32 %v5945_v13, %v4122_v7  ;;  %5966 = vrcp.f32 %v4090_v27 }
 0x95d   :  { %v5949_v0 = vpop.eup %5948  ;;  %v4139_v11 = vmul.f32 %v5947_v17, %v4123_v26  ;;  %5968 = vrcp.f32 %v4091_v33 }
 0x95e   :  { %v5951_v51 = vpop.eup %5950  ;;  %v4140_v35 = vmul.f32 %v5949_v0, %v4124_v61  ;;  %v4154_v2 = vadd.f32 %v7764_v16, %v4138_v63  ;;  %5970 = vrcp.f32 %v4092_v49 }
 0x95f   :  { %v5953_v47 = vpop.eup %5952  ;;  %v4141_v10 = vmul.f32 %v5951_v51, %v4125_v34  ;;  %v4155_v31 = vadd.f32 %v7767_v42, %v4139_v11  ;;  %5972 = vrcp.f32 %v4093_v21 }
 0x960   :  { %v5955_v29 = vpop.eup %5954  ;;  %v4142_v24 = vmul.f32 %v5953_v47, %v4126_v43  ;;  %v4156_v3 = vadd.f32 %v7770_v45, %v4140_v35  ;;  %5974 = vtanh.f32 %v4154_v2 }
 0x961   :  { %v5957_v32 = vpop.eup %5956  ;;  %v4143_v53 = vmul.f32 %v5955_v29, %v4127_v12  ;;  %v4157_v14 = vadd.f32 %v7773_v8, %v4141_v10  ;;  %5976 = vtanh.f32 %v4155_v31 }
 0x962   :  { %v5959_v16 = vpop.eup %5958  ;;  %v4144_v37 = vmul.f32 %v5957_v32, %v4128_v22  ;;  %v4158_v40 = vadd.f32 %v7776_v36, %v4142_v24  ;;  %5978 = vtanh.f32 %v4156_v3 }
 0x963   :  { %v5961_v19 = vpop.eup %5960  ;;  %v4145_v9 = vmul.f32 %v5959_v16, %v4129_v1  ;;  %v4159_v42 = vadd.f32 %v7778_v28, %v4143_v53  ;;  %5980 = vtanh.f32 %v4157_v14 }
 0x964   :  { %v5963_v38 = vpop.eup %5962  ;;  %v4160_v45 = vadd.f32 %v7780_v25, %v4144_v37  ;;  %5982 = vtanh.f32 %v4158_v40  ;;  %v4095_v56 = vadd.f32 1.0, %v5961_v19 }
 0x965   :  { %v5965_v57 = vpop.eup %5964  ;;  %v4161_v58 = vadd.f32 %v7783_v4, %v4145_v9  ;;  %5984 = vtanh.f32 %v4159_v42  ;;  %v4096_v36 = vadd.f32 1.0, %v5963_v38 }
 0x966   :  { %v5967_v8 = vpop.eup %5966  ;;  %5986 = vtanh.f32 %v4160_v45  ;;  %v4097_v6 = vadd.f32 1.0, %v5965_v57 }
 0x967   :  { %v5969_v39 = vpop.eup %5968  ;;  %5988 = vtanh.f32 %v4161_v58 }
 0x968   :  { %v5971_v30 = vpop.eup %5970  ;;  %5990 = vrcp.f32 %v4094_v20 }
 0x969   :  { %v5973_v60 = vpop.eup %5972  ;;  %5992 = vrcp.f32 %v4095_v56 }
 0x96a   :  { %v5975_v28 = vpop.eup %5974  ;;  %5994 = vrcp.f32 %v4096_v36 }
 0x96b   :  { %v5977_v54 = vpop.eup %5976  ;;  %5996 = vrcp.f32 %v4097_v6  ;;  %v4170_v25 = vmul.f32 %v5975_v28, %v5967_v8 }
 0x96c   :  { %v5979_v48 = vpop.eup %5978  ;;  %v4171_v55 = vmul.f32 %v5977_v54, %v5969_v39 }
 0x96d   :  { %v5981_v4 = vpop.eup %5980  ;;  %v4172_v41 = vmul.f32 %v5979_v48, %v5971_v30  ;;  %4201 = vst [vmem:[#allocation2 - $0x7] sm:$0x80] %v4170_v25  ;;  %4231 = vst [vmem:[%s7822_s4 - $0x7] sm:$0x80] %v4170_v25 }
 0x96e   :  { %v5983_v62 = vpop.eup %5982  ;;  %v4173_v50 = vmul.f32 %v5981_v4, %v5973_v60  ;;  %v4186_v5 = vrot.slane %v4171_v55, 7 }
 0x96f   :  { %v5985_v18 = vpop.eup %5984  ;;  %v4187_v15 = vrot.slane %v4172_v41, 6 }
 0x970   :  { %v5987_v59 = vpop.eup %5986  ;;  %v4189_v23 = vrot.slane %v4173_v50, 5 }
 0x971   :  { %v5989_v44 = vpop.eup %5988  ;;  %v4188_v27 = vsel %vm841_vm1, %v4187_v15, %v4186_v5 }
 0x972   :  { %v5991_v52 = vpop.eup %5990  ;;  %v4190_v33 = vsel %vm844_vm2, %v4189_v23, %v4188_v27 }
 0x973   :  { %v5993_v46 = vpop.eup %5992  ;;  %v4174_v7 = vmul.f32 %v5991_v52, %v5983_v62 }
 0x974   :  { %v5995_v49 = vpop.eup %5994  ;;  %v4175_v13 = vmul.f32 %v5993_v46, %v5985_v18 }
 0x975   :  { %v5997_v26 = vpop.eup %5996  ;;  %v4176_v21 = vmul.f32 %v5995_v49, %v5987_v59  ;;  %v4191_v17 = vrot.slane %v4174_v7, 4 }
 0x976   :  { %v4177_v34 = vmul.f32 %v5997_v26, %v5989_v44  ;;  %v4193_v61 = vrot.slane %v4175_v13, 3 }
 0x977   :  { %v4192_v63 = vsel %vm847_vm3, %v4191_v17, %v4190_v33  ;;  %v4195_v0 = vrot.slane %v4176_v21, 2 }
 0x978   :  { %v4194_v43 = vsel %vm850_vm4, %v4193_v61, %v4192_v63  ;;  %v4197_v12 = vrot.slane %v4177_v34, 1 }
 0x979   :  { %v4196_v11 = vsel %vm853_vm5, %v4195_v0, %v4194_v43 }
 0x97a   :  { %v4198_v51 = vsel %vm856_vm6, %v4197_v12, %v4196_v11 }
 0x97b   :  { %4202 = vst [vmem:[#allocation2 + $0x1] sm:$0x7f] %v4198_v51  ;;  %4232 = vst [vmem:[%s7822_s4 + $0x1] sm:$0x7f] %v4198_v51 }

</bundles_post_ra>
